<compile_context>
chip_gen: v6e
topology: v6e:2x2x1
jax: 0.10.0
libtpu: 0.0.40
codegen_flags: <defaults>
</compile_context>

<pallas_src>
import functools

import jax
import jax.numpy as jnp
from jax import lax
from jax.experimental import pallas as pl
from jax.experimental.pallas import tpu as pltpu

_NEG_SLOPE = 0.2
_BN_EPS = 1e-5

# (conv name, bn name, stride, apply LeakyReLU)
_LAYERS = (
    ("conv1_2", "bn1_2", 2, True),
    ("conv2", "bn2", 1, True),
    ("conv3", "bn3", 2, True),
    ("conv4", "bn4", 1, True),
    ("classifier", None, 2, False),
)


# --------------------------------------------------------------------------- kernels
def _conv3x3_s1_kernel(x_ref, w_ref, b_ref, o_ref, pad_ref, *, H, W, Cin, Cout, act):
    """3x3 conv, stride 1, pad 1, fused folded-BN bias + optional LeakyReLU.

    x_ref  : (1, H, W, Cin)    bf16  unpadded input (one batch element)
    w_ref  : (3, 3*Cin, Cout)  bf16  weights, K is kw-major [kw*Cin + cin]
    b_ref  : (1, Cout)         f32   folded bias
    o_ref  : (1, H, W, Cout)
    pad_ref: (H+2, W+2, Cin)   bf16  VMEM scratch holding the zero-padded tile
    """
    # Zero only the 1-pixel border (bf16, narrow strips); the interior is fully
    # overwritten every step, so this stays correct if the "parallel" batch axis
    # is split across TensorCores (scratch is per-core).
    zrow = jnp.zeros((1, W + 2, Cin), jnp.bfloat16)
    zcol = jnp.zeros((H + 2, 1, Cin), jnp.bfloat16)
    pad_ref[0:1, :, :] = zrow
    pad_ref[H + 1:H + 2, :, :] = zrow
    pad_ref[:, 0:1, :] = zcol
    pad_ref[:, W + 1:W + 2, :] = zcol
    pad_ref[1:1 + H, 1:1 + W, :] = x_ref[0]          # bf16 -> bf16, no cast

    M = H * W
    acc = jnp.zeros((M, Cout), jnp.float32)
    for kh in range(3):
        for kw in range(3):
            # Direct bf16 slice of the scratch; leading-dim collapse only.
            patch = pad_ref[kh:kh + H, kw:kw + W, :].reshape(M, Cin)
            acc = acc + jnp.dot(patch, w_ref[kh, kw * Cin:(kw + 1) * Cin, :],
                                preferred_element_type=jnp.float32)
    y = acc + b_ref[0]
    if act:
        y = jnp.where(y > 0, y, _NEG_SLOPE * y)
    o_ref[0] = y.reshape(H, W, Cout).astype(o_ref.dtype)


def _conv3x3_s2_kernel(s_ref, w_ref, b_ref, o_ref, *, Ho, Wo, Cin, Cout, act):
    """3x3 conv, stride 2, pad 1, from a channel-stacked 2x2 space-to-depth view.

    s_ref : (1, Ho+1, Wo+1, 4*Cin) bf16 with
            s[i, j, (2*rh + rw)*Cin + c] == padded_input[2i+rh, 2j+rw, c].
    For each kh, kw=0 and kw=1 taps are channel-adjacent -> one K=2*Cin dot;
    kw=2 reuses the rw=0 plane shifted one column -> one K=Cin dot.
    All slices are static, 128-aligned for Cin=64, no f32 materialization.
    """
    M = Ho * Wo
    acc = jnp.zeros((M, Cout), jnp.float32)
    for kh in range(3):
        dr, rh = kh // 2, kh % 2
        c0 = 2 * rh * Cin
        # kw = 0,1 combined (K = 2*Cin)
        p01 = s_ref[0, dr:dr + Ho, 0:Wo, c0:c0 + 2 * Cin].reshape(M, 2 * Cin)
        acc = acc + jnp.dot(p01, w_ref[kh, 0:2 * Cin, :],
                            preferred_element_type=jnp.float32)
        # kw = 2 (K = Cin)
        p2 = s_ref[0, dr:dr + Ho, 1:1 + Wo, c0:c0 + Cin].reshape(M, Cin)
        acc = acc + jnp.dot(p2, w_ref[kh, 2 * Cin:3 * Cin, :],
                            preferred_element_type=jnp.float32)
    y = acc + b_ref[0]
    if act:
        y = jnp.where(y > 0, y, _NEG_SLOPE * y)
    o_ref[0] = y.reshape(Ho, Wo, Cout).astype(o_ref.dtype)


# --------------------------------------------------------------------------- wrappers
def _space_to_depth(x, Ho, Wo):
    """(B,H,W,C) -> (B, Ho+1, Wo+1, 4*C) channel-stacked pad-1 2x2 sub-grids.

    out[b, i, j, (2*rh + rw)*C + c] == padded_input[b, 2i+rh, 2j+rw, c]
    """
    B, H, W, C = x.shape
    Hp, Wp = 2 * (Ho + 1), 2 * (Wo + 1)
    xp = jnp.pad(x, ((0, 0), (1, Hp - H - 1), (1, Wp - W - 1), (0, 0)))
    xp = xp.reshape(B, Ho + 1, 2, Wo + 1, 2, C)
    xp = jnp.transpose(xp, (0, 1, 3, 2, 4, 5))      # (B, Ho+1, Wo+1, rh, rw, C)
    return xp.reshape(B, Ho + 1, Wo + 1, 4 * C)


def _vmem_limit(num_bytes):
    """Derived VMEM budget: 2x headroom, clamped below v7x's 64 MiB physical."""
    return int(min(60 * 2**20, max(32 * 2**20, 2 * num_bytes)))


def _conv3x3(x_nhwc, w_oihw, b, *, stride, act, out_dtype):
    """One fused conv3x3(pad=1) + folded bias + optional LeakyReLU Pallas layer."""
    B, H, W, Cin = x_nhwc.shape
    Cout = w_oihw.shape[0]
    # (Cout, Cin, 3, 3) -> (kh, kw, Cin, Cout) -> (3, 3*Cin, Cout), kw-major K, bf16.
    w3 = jnp.transpose(w_oihw, (2, 3, 1, 0)).reshape(3, 3 * Cin, Cout)
    w3 = w3.astype(jnp.bfloat16)
    b2 = b.reshape(1, Cout).astype(jnp.float32)
    x_bf16 = x_nhwc.astype(jnp.bfloat16)

    out_isize = jnp.dtype(out_dtype).itemsize
    w_bytes = 9 * Cin * Cout * 2
    b_bytes = Cout * 4

    if stride == 1:
        Ho, Wo = H, W
        src = x_bf16
        kernel = functools.partial(_conv3x3_s1_kernel,
                                   H=H, W=W, Cin=Cin, Cout=Cout, act=act)
        src_block = (1, H, W, Cin)
        scratch = [pltpu.VMEM((H + 2, W + 2, Cin), jnp.bfloat16)]
        src_bytes = H * W * Cin * 2
        scratch_bytes = (H + 2) * (W + 2) * Cin * 2
        tmp_bytes = H * W * (Cin * 2 + Cout * 4)          # tap patch + f32 acc
    else:
        Ho, Wo = (H - 1) // 2 + 1, (W - 1) // 2 + 1
        src = _space_to_depth(x_bf16, Ho, Wo)
        kernel = functools.partial(_conv3x3_s2_kernel,
                                   Ho=Ho, Wo=Wo, Cin=Cin, Cout=Cout, act=act)
        src_block = (1, Ho + 1, Wo + 1, 4 * Cin)
        scratch = []
        src_bytes = (Ho + 1) * (Wo + 1) * 4 * Cin * 2
        scratch_bytes = 0
        tmp_bytes = Ho * Wo * (2 * Cin * 2 + Cout * 4)    # widest patch + f32 acc

    out_bytes = Ho * Wo * Cout * out_isize
    need = 2 * (src_bytes + w_bytes + b_bytes + out_bytes) + scratch_bytes + tmp_bytes

    out = pl.pallas_call(
        kernel,
        out_shape=jax.ShapeDtypeStruct((B, Ho, Wo, Cout), out_dtype),
        grid_spec=pltpu.PrefetchScalarGridSpec(
            num_scalar_prefetch=0,
            grid=(B,),
            in_specs=[
                pl.BlockSpec(src_block, lambda bi: (bi, 0, 0, 0)),
                pl.BlockSpec((3, 3 * Cin, Cout), lambda bi: (0, 0, 0)),
                pl.BlockSpec((1, Cout), lambda bi: (0, 0)),
            ],
            out_specs=pl.BlockSpec((1, Ho, Wo, Cout), lambda bi: (bi, 0, 0, 0)),
            scratch_shapes=scratch,
        ),
        compiler_params=pltpu.CompilerParams(
            dimension_semantics=("parallel",),
            vmem_limit_bytes=_vmem_limit(need),
        ),
    )(src, w3, b2)
    return out


def _fold_bn(w, b, bn):
    """Fold inference-mode BatchNorm (running stats) into the preceding conv."""
    s = bn["gamma"] / jnp.sqrt(bn["var"] + _BN_EPS)
    return w * s[:, None, None, None], (b - bn["mean"]) * s + bn["beta"]


def fc_discriminator(x, pred, params):
    """x: (B,3,H,W), pred: (B,1,H,W) NCHW f32 -> (B,1,H//8,W//8) f32."""
    h = jnp.transpose(jnp.concatenate([x, pred], axis=1), (0, 2, 3, 1))   # NHWC once
    for i, (cname, bnname, stride, act) in enumerate(_LAYERS):
        w, b = params[cname]["w"], params[cname]["b"]
        if bnname is not None:
            w, b = _fold_bn(w, b, params[bnname])
        last = i == len(_LAYERS) - 1
        h = _conv3x3(h, w, b, stride=stride, act=act,
                     out_dtype=jnp.float32 if last else jnp.bfloat16)
    return jnp.transpose(h, (0, 3, 1, 2))                                 # back to NCHW


# --------------------------------------------------------------------------- reference
def _reference(x, pred, params):
    """Pure-JAX reference mirroring the kernel's bf16 quantization (f32 accumulate)."""
    h = jnp.transpose(jnp.concatenate([x, pred], axis=1),
                      (0, 2, 3, 1)).astype(jnp.bfloat16)
    for i, (cname, bnname, stride, act) in enumerate(_LAYERS):
        w, b = params[cname]["w"], params[cname]["b"]
        if bnname is not None:
            w, b = _fold_bn(w, b, params[bnname])
        wq = jnp.transpose(w, (2, 3, 1, 0)).astype(jnp.bfloat16)          # HWIO
        y = lax.conv_general_dilated(
            h, wq, (stride, stride), ((1, 1), (1, 1)),
            dimension_numbers=("NHWC", "HWIO", "NHWC"),
            preferred_element_type=jnp.float32)
        y = y + b.reshape(1, 1, 1, -1)
        if act:
            y = jnp.where(y > 0, y, _NEG_SLOPE * y)
        h = y if i == len(_LAYERS) - 1 else y.astype(jnp.bfloat16)
    return jnp.transpose(h, (0, 3, 1, 2))


def _init_params(key, ndf=64):
    def conv(k, cout, cin):
        kw, kb = jax.random.split(k)
        return {"w": 0.1 * jax.random.normal(kw, (cout, cin, 3, 3), jnp.float32),
                "b": 0.1 * jax.random.normal(kb, (cout,), jnp.float32)}

    def bn(k, c):
        k1, k2, k3, k4 = jax.random.split(k, 4)
        return {"gamma": 1.0 + 0.1 * jax.random.normal(k1, (c,), jnp.float32),
                "beta": 0.1 * jax.random.normal(k2, (c,), jnp.float32),
                "mean": 0.1 * jax.random.normal(k3, (c,), jnp.float32),
                "var": 0.5 + 0.5 * jnp.abs(jax.random.normal(k4, (c,), jnp.float32))}

    ks = jax.random.split(key, 9)
    return {
        "conv1_2": conv(ks[0], ndf, 4), "bn1_2": bn(ks[1], ndf),
        "conv2": conv(ks[2], ndf, ndf), "bn2": bn(ks[3], ndf),
        "conv3": conv(ks[4], ndf, ndf), "bn3": bn(ks[5], ndf),
        "conv4": conv(ks[6], ndf, ndf), "bn4": bn(ks[7], ndf),
        "classifier": conv(ks[8], 1, ndf),
    }


if __name__ == "__main__":
    B, H, W = 2, 16, 16
    key = jax.random.PRNGKey(0)
    kx, kp, kparam = jax.random.split(key, 3)
    x = jax.random.normal(kx, (B, 3, H, W), jnp.float32)
    pred = jax.random.normal(kp, (B, 1, H, W), jnp.float32)
    params = _init_params(kparam, ndf=64)

    out = jax.block_until_ready(jax.jit(fc_discriminator)(x, pred, params))
    ref = _reference(x, pred, params)

    assert out.shape == (B, 1, H // 8, W // 8), out.shape
    max_err = float(jnp.max(jnp.abs(out - ref)))
    assert jnp.allclose(out, ref, atol=1e-2, rtol=1e-2), f"mismatch vs reference: {max_err}"
    print("KERNEL_OK")
</pallas_src>

<mosaic_0001>
module attributes {stable_mosaic.version = 11 : i64} {
  func.func @_conv3x3_s2_kernel(%arg0: i32, %arg1: memref<1x9x9x16xbf16, #tpu.memory_space<vmem>>, %arg2: memref<3x12x64xbf16, #tpu.memory_space<vmem>>, %arg3: memref<1x64xf32, #tpu.memory_space<vmem>>, %arg4: memref<1x8x8x64xbf16, #tpu.memory_space<vmem>>) attributes {dimension_semantics = [#tpu.dimension_semantics<parallel>], iteration_bounds = array<i64: 2>, scalar_prefetch = 0 : i64, scratch_operands = 0 : i64, tpu.core_type = #tpu.core_type<tc>, window_params = [{transform_indices = @transform_0, window_bounds = array<i64: 1, 9, 9, 16>}, {pipeline_mode = #tpu.pipeline_mode<synchronous>, transform_indices = @transform_1, window_bounds = array<i64: 3, 12, 64>}, {pipeline_mode = #tpu.pipeline_mode<synchronous>, transform_indices = @transform_2, window_bounds = array<i64: 1, 64>}, {transform_indices = @transform_3, window_bounds = array<i64: 1, 8, 8, 64>}]} {
    %cst = arith.constant 0.000000e+00 : f32
    %0 = vector.broadcast %cst : f32 to vector<64x64xf32>
    %c0 = arith.constant 0 : index
    %c0_0 = arith.constant 0 : index
    %c0_1 = arith.constant 0 : index
    %c0_2 = arith.constant 0 : index
    %1 = vector.load %arg1[%c0, %c0_0, %c0_1, %c0_2] : memref<1x9x9x16xbf16, #tpu.memory_space<vmem>>, vector<1x8x8x8xbf16>
    %2 = vector.shape_cast %1 : vector<1x8x8x8xbf16> to vector<8x8x8xbf16>
    %3 = vector.shape_cast %2 : vector<8x8x8xbf16> to vector<64x8xbf16>
    %c0_3 = arith.constant 0 : index
    %c0_4 = arith.constant 0 : index
    %c0_5 = arith.constant 0 : index
    %4 = vector.load %arg2[%c0_3, %c0_4, %c0_5] : memref<3x12x64xbf16, #tpu.memory_space<vmem>>, vector<1x8x64xbf16>
    %5 = vector.shape_cast %4 : vector<1x8x64xbf16> to vector<8x64xbf16>
    %cst_6 = arith.constant dense<0.000000e+00> : vector<64x64xf32>
    %6 = tpu.matmul %3, %5, %cst_6 {dimension_numbers = #tpu.dot_dimension_numbers<[1], [0], [0], [1], [0, 0, 1, 1], [], []>} : vector<64x8xbf16>, vector<8x64xbf16>, vector<64x64xf32> -> vector<64x64xf32>
    %7 = arith.addf %0, %6 : vector<64x64xf32>
    %c0_7 = arith.constant 0 : index
    %c0_8 = arith.constant 0 : index
    %c1 = arith.constant 1 : index
    %c0_9 = arith.constant 0 : index
    %8 = vector.load %arg1[%c0_7, %c0_8, %c1, %c0_9] : memref<1x9x9x16xbf16, #tpu.memory_space<vmem>>, vector<1x8x8x4xbf16>
    %9 = vector.shape_cast %8 : vector<1x8x8x4xbf16> to vector<8x8x4xbf16>
    %10 = vector.shape_cast %9 : vector<8x8x4xbf16> to vector<64x4xbf16>
    %c0_10 = arith.constant 0 : index
    %c8 = arith.constant 8 : index
    %c0_11 = arith.constant 0 : index
    %11 = vector.load %arg2[%c0_10, %c8, %c0_11] : memref<3x12x64xbf16, #tpu.memory_space<vmem>>, vector<1x4x64xbf16>
    %12 = vector.shape_cast %11 : vector<1x4x64xbf16> to vector<4x64xbf16>
    %cst_12 = arith.constant dense<0.000000e+00> : vector<64x64xf32>
    %13 = tpu.matmul %10, %12, %cst_12 {dimension_numbers = #tpu.dot_dimension_numbers<[1], [0], [0], [1], [0, 0, 1, 1], [], []>} : vector<64x4xbf16>, vector<4x64xbf16>, vector<64x64xf32> -> vector<64x64xf32>
    %14 = arith.addf %7, %13 : vector<64x64xf32>
    %c0_13 = arith.constant 0 : index
    %c0_14 = arith.constant 0 : index
    %c0_15 = arith.constant 0 : index
    %c8_16 = arith.constant 8 : index
    %15 = vector.load %arg1[%c0_13, %c0_14, %c0_15, %c8_16] : memref<1x9x9x16xbf16, #tpu.memory_space<vmem>>, vector<1x8x8x8xbf16>
    %16 = vector.shape_cast %15 : vector<1x8x8x8xbf16> to vector<8x8x8xbf16>
    %17 = vector.shape_cast %16 : vector<8x8x8xbf16> to vector<64x8xbf16>
    %c1_17 = arith.constant 1 : index
    %c0_18 = arith.constant 0 : index
    %c0_19 = arith.constant 0 : index
    %18 = vector.load %arg2[%c1_17, %c0_18, %c0_19] : memref<3x12x64xbf16, #tpu.memory_space<vmem>>, vector<1x8x64xbf16>
    %19 = vector.shape_cast %18 : vector<1x8x64xbf16> to vector<8x64xbf16>
    %cst_20 = arith.constant dense<0.000000e+00> : vector<64x64xf32>
    %20 = tpu.matmul %17, %19, %cst_20 {dimension_numbers = #tpu.dot_dimension_numbers<[1], [0], [0], [1], [0, 0, 1, 1], [], []>} : vector<64x8xbf16>, vector<8x64xbf16>, vector<64x64xf32> -> vector<64x64xf32>
    %21 = arith.addf %14, %20 : vector<64x64xf32>
    %c0_21 = arith.constant 0 : index
    %c0_22 = arith.constant 0 : index
    %c1_23 = arith.constant 1 : index
    %c8_24 = arith.constant 8 : index
    %22 = vector.load %arg1[%c0_21, %c0_22, %c1_23, %c8_24] : memref<1x9x9x16xbf16, #tpu.memory_space<vmem>>, vector<1x8x8x4xbf16>
    %23 = vector.shape_cast %22 : vector<1x8x8x4xbf16> to vector<8x8x4xbf16>
    %24 = vector.shape_cast %23 : vector<8x8x4xbf16> to vector<64x4xbf16>
    %c1_25 = arith.constant 1 : index
    %c8_26 = arith.constant 8 : index
    %c0_27 = arith.constant 0 : index
    %25 = vector.load %arg2[%c1_25, %c8_26, %c0_27] : memref<3x12x64xbf16, #tpu.memory_space<vmem>>, vector<1x4x64xbf16>
    %26 = vector.shape_cast %25 : vector<1x4x64xbf16> to vector<4x64xbf16>
    %cst_28 = arith.constant dense<0.000000e+00> : vector<64x64xf32>
    %27 = tpu.matmul %24, %26, %cst_28 {dimension_numbers = #tpu.dot_dimension_numbers<[1], [0], [0], [1], [0, 0, 1, 1], [], []>} : vector<64x4xbf16>, vector<4x64xbf16>, vector<64x64xf32> -> vector<64x64xf32>
    %28 = arith.addf %21, %27 : vector<64x64xf32>
    %c0_29 = arith.constant 0 : index
    %c1_30 = arith.constant 1 : index
    %c0_31 = arith.constant 0 : index
    %c0_32 = arith.constant 0 : index
    %29 = vector.load %arg1[%c0_29, %c1_30, %c0_31, %c0_32] : memref<1x9x9x16xbf16, #tpu.memory_space<vmem>>, vector<1x8x8x8xbf16>
    %30 = vector.shape_cast %29 : vector<1x8x8x8xbf16> to vector<8x8x8xbf16>
    %31 = vector.shape_cast %30 : vector<8x8x8xbf16> to vector<64x8xbf16>
    %c2 = arith.constant 2 : index
    %c0_33 = arith.constant 0 : index
    %c0_34 = arith.constant 0 : index
    %32 = vector.load %arg2[%c2, %c0_33, %c0_34] : memref<3x12x64xbf16, #tpu.memory_space<vmem>>, vector<1x8x64xbf16>
    %33 = vector.shape_cast %32 : vector<1x8x64xbf16> to vector<8x64xbf16>
    %cst_35 = arith.constant dense<0.000000e+00> : vector<64x64xf32>
    %34 = tpu.matmul %31, %33, %cst_35 {dimension_numbers = #tpu.dot_dimension_numbers<[1], [0], [0], [1], [0, 0, 1, 1], [], []>} : vector<64x8xbf16>, vector<8x64xbf16>, vector<64x64xf32> -> vector<64x64xf32>
    %35 = arith.addf %28, %34 : vector<64x64xf32>
    %c0_36 = arith.constant 0 : index
    %c1_37 = arith.constant 1 : index
    %c1_38 = arith.constant 1 : index
    %c0_39 = arith.constant 0 : index
    %36 = vector.load %arg1[%c0_36, %c1_37, %c1_38, %c0_39] : memref<1x9x9x16xbf16, #tpu.memory_space<vmem>>, vector<1x8x8x4xbf16>
    %37 = vector.shape_cast %36 : vector<1x8x8x4xbf16> to vector<8x8x4xbf16>
    %38 = vector.shape_cast %37 : vector<8x8x4xbf16> to vector<64x4xbf16>
    %c2_40 = arith.constant 2 : index
    %c8_41 = arith.constant 8 : index
    %c0_42 = arith.constant 0 : index
    %39 = vector.load %arg2[%c2_40, %c8_41, %c0_42] : memref<3x12x64xbf16, #tpu.memory_space<vmem>>, vector<1x4x64xbf16>
    %40 = vector.shape_cast %39 : vector<1x4x64xbf16> to vector<4x64xbf16>
    %cst_43 = arith.constant dense<0.000000e+00> : vector<64x64xf32>
    %41 = tpu.matmul %38, %40, %cst_43 {dimension_numbers = #tpu.dot_dimension_numbers<[1], [0], [0], [1], [0, 0, 1, 1], [], []>} : vector<64x4xbf16>, vector<4x64xbf16>, vector<64x64xf32> -> vector<64x64xf32>
    %42 = arith.addf %35, %41 : vector<64x64xf32>
    %c0_44 = arith.constant 0 : index
    %c0_45 = arith.constant 0 : index
    %43 = vector.load %arg3[%c0_44, %c0_45] : memref<1x64xf32, #tpu.memory_space<vmem>>, vector<1x64xf32>
    %44 = vector.shape_cast %43 : vector<1x64xf32> to vector<64xf32>
    %45 = vector.shape_cast %44 : vector<64xf32> to vector<1x64xf32>
    %46 = vector.broadcast %45 : vector<1x64xf32> to vector<64x64xf32>
    %47 = arith.addf %42, %46 : vector<64x64xf32>
    %cst_46 = arith.constant 0.000000e+00 : f32
    %48 = vector.broadcast %cst_46 : f32 to vector<64x64xf32>
    %49 = arith.cmpf ogt, %47, %48 : vector<64x64xf32>
    %cst_47 = arith.constant 2.000000e-01 : f32
    %50 = vector.broadcast %cst_47 : f32 to vector<64x64xf32>
    %51 = arith.mulf %50, %47 : vector<64x64xf32>
    %52 = arith.select %49, %47, %51 : vector<64x64xi1>, vector<64x64xf32>
    %53 = vector.shape_cast %52 : vector<64x64xf32> to vector<8x8x64xf32>
    %54 = arith.truncf %53 : vector<8x8x64xf32> to vector<8x8x64xbf16>
    %c0_48 = arith.constant 0 : index
    %c0_49 = arith.constant 0 : index
    %c0_50 = arith.constant 0 : index
    %c0_51 = arith.constant 0 : index
    %55 = vector.load %arg4[%c0_48, %c0_49, %c0_50, %c0_51] : memref<1x8x8x64xbf16, #tpu.memory_space<vmem>>, vector<1x8x8x64xbf16>
    %56 = vector.shape_cast %55 : vector<1x8x8x64xbf16> to vector<8x8x64xbf16>
    %57 = vector.shape_cast %54 : vector<8x8x64xbf16> to vector<1x8x8x64xbf16>
    tpu.vector_store %arg4[%c0_48, %c0_49, %c0_50, %c0_51], %57 {strides = array<i32>} : memref<1x8x8x64xbf16, #tpu.memory_space<vmem>>, vector<1x8x8x64xbf16>,
    return
  }
  func.func @transform_0(%arg0: i32) -> (i32, i32, i32, i32) {
    %c0_i32 = arith.constant 0 : i32
    %c0_i32_0 = arith.constant 0 : i32
    %c0_i32_1 = arith.constant 0 : i32
    %c0_i32_2 = arith.constant 0 : i32
    return %arg0, %c0_i32, %c0_i32_0, %c0_i32_1 : i32, i32, i32, i32
  }
  func.func @transform_1(%arg0: i32) -> (i32, i32, i32) {
    %c0_i32 = arith.constant 0 : i32
    %c0_i32_0 = arith.constant 0 : i32
    %c0_i32_1 = arith.constant 0 : i32
    %c0_i32_2 = arith.constant 0 : i32
    return %c0_i32, %c0_i32_0, %c0_i32_1 : i32, i32, i32
  }
  func.func @transform_2(%arg0: i32) -> (i32, i32) {
    %c0_i32 = arith.constant 0 : i32
    %c0_i32_0 = arith.constant 0 : i32
    %c0_i32_1 = arith.constant 0 : i32
    return %c0_i32, %c0_i32_0 : i32, i32
  }
  func.func @transform_3(%arg0: i32) -> (i32, i32, i32, i32) {
    %c0_i32 = arith.constant 0 : i32
    %c0_i32_0 = arith.constant 0 : i32
    %c0_i32_1 = arith.constant 0 : i32
    %c0_i32_2 = arith.constant 0 : i32
    return %arg0, %c0_i32, %c0_i32_0, %c0_i32_1 : i32, i32, i32, i32
  }
}

module attributes {stable_mosaic.version = 11 : i64} {
  func.func @_conv3x3_s1_kernel(%arg0: i32, %arg1: memref<1x8x8x64xbf16, #tpu.memory_space<vmem>>, %arg2: memref<3x192x64xbf16, #tpu.memory_space<vmem>>, %arg3: memref<1x64xf32, #tpu.memory_space<vmem>>, %arg4: memref<1x8x8x64xbf16, #tpu.memory_space<vmem>>, %arg5: memref<10x10x64xbf16, #tpu.memory_space<vmem>>) attributes {dimension_semantics = [#tpu.dimension_semantics<parallel>], iteration_bounds = array<i64: 2>, scalar_prefetch = 0 : i64, scratch_operands = 1 : i64, tpu.core_type = #tpu.core_type<tc>, window_params = [{transform_indices = @transform_0, window_bounds = array<i64: 1, 8, 8, 64>}, {pipeline_mode = #tpu.pipeline_mode<synchronous>, transform_indices = @transform_1, window_bounds = array<i64: 3, 192, 64>}, {pipeline_mode = #tpu.pipeline_mode<synchronous>, transform_indices = @transform_2, window_bounds = array<i64: 1, 64>}, {transform_indices = @transform_3, window_bounds = array<i64: 1, 8, 8, 64>}]} {
    %cst = arith.constant 0.000000e+00 : bf16
    %0 = vector.broadcast %cst : bf16 to vector<1x10x64xbf16>
    %cst_0 = arith.constant 0.000000e+00 : bf16
    %1 = vector.broadcast %cst_0 : bf16 to vector<10x1x64xbf16>
    %c0 = arith.constant 0 : index
    %c0_1 = arith.constant 0 : index
    %c0_2 = arith.constant 0 : index
    %2 = vector.load %arg5[%c0, %c0_1, %c0_2] : memref<10x10x64xbf16, #tpu.memory_space<vmem>>, vector<1x10x64xbf16>
    tpu.vector_store %arg5[%c0, %c0_1, %c0_2], %0 {strides = array<i32>} : memref<10x10x64xbf16, #tpu.memory_space<vmem>>, vector<1x10x64xbf16>,
    %c9 = arith.constant 9 : index
    %c0_3 = arith.constant 0 : index
    %c0_4 = arith.constant 0 : index
    %3 = vector.load %arg5[%c9, %c0_3, %c0_4] : memref<10x10x64xbf16, #tpu.memory_space<vmem>>, vector<1x10x64xbf16>
    tpu.vector_store %arg5[%c9, %c0_3, %c0_4], %0 {strides = array<i32>} : memref<10x10x64xbf16, #tpu.memory_space<vmem>>, vector<1x10x64xbf16>,
    %c0_5 = arith.constant 0 : index
    %c0_6 = arith.constant 0 : index
    %c0_7 = arith.constant 0 : index
    %4 = vector.load %arg5[%c0_5, %c0_6, %c0_7] : memref<10x10x64xbf16, #tpu.memory_space<vmem>>, vector<10x1x64xbf16>
    tpu.vector_store %arg5[%c0_5, %c0_6, %c0_7], %1 {strides = array<i32>} : memref<10x10x64xbf16, #tpu.memory_space<vmem>>, vector<10x1x64xbf16>,
    %c0_8 = arith.constant 0 : index
    %c9_9 = arith.constant 9 : index
    %c0_10 = arith.constant 0 : index
    %5 = vector.load %arg5[%c0_8, %c9_9, %c0_10] : memref<10x10x64xbf16, #tpu.memory_space<vmem>>, vector<10x1x64xbf16>
    tpu.vector_store %arg5[%c0_8, %c9_9, %c0_10], %1 {strides = array<i32>} : memref<10x10x64xbf16, #tpu.memory_space<vmem>>, vector<10x1x64xbf16>,
    %c0_11 = arith.constant 0 : index
    %c0_12 = arith.constant 0 : index
    %c0_13 = arith.constant 0 : index
    %c0_14 = arith.constant 0 : index
    %6 = vector.load %arg1[%c0_11, %c0_12, %c0_13, %c0_14] : memref<1x8x8x64xbf16, #tpu.memory_space<vmem>>, vector<1x8x8x64xbf16>
    %7 = vector.shape_cast %6 : vector<1x8x8x64xbf16> to vector<8x8x64xbf16>
    %c1 = arith.constant 1 : index
    %c1_15 = arith.constant 1 : index
    %c0_16 = arith.constant 0 : index
    %8 = vector.load %arg5[%c1, %c1_15, %c0_16] : memref<10x10x64xbf16, #tpu.memory_space<vmem>>, vector<8x8x64xbf16>
    tpu.vector_store %arg5[%c1, %c1_15, %c0_16], %7 {strides = array<i32>} : memref<10x10x64xbf16, #tpu.memory_space<vmem>>, vector<8x8x64xbf16>,
    %cst_17 = arith.constant 0.000000e+00 : f32
    %9 = vector.broadcast %cst_17 : f32 to vector<64x64xf32>
    %c0_18 = arith.constant 0 : index
    %c0_19 = arith.constant 0 : index
    %c0_20 = arith.constant 0 : index
    %10 = vector.load %arg5[%c0_18, %c0_19, %c0_20] : memref<10x10x64xbf16, #tpu.memory_space<vmem>>, vector<8x8x64xbf16>
    %11 = vector.shape_cast %10 : vector<8x8x64xbf16> to vector<64x64xbf16>
    %c0_21 = arith.constant 0 : index
    %c0_22 = arith.constant 0 : index
    %c0_23 = arith.constant 0 : index
    %12 = vector.load %arg2[%c0_21, %c0_22, %c0_23] : memref<3x192x64xbf16, #tpu.memory_space<vmem>>, vector<1x64x64xbf16>
    %13 = vector.shape_cast %12 : vector<1x64x64xbf16> to vector<64x64xbf16>
    %cst_24 = arith.constant dense<0.000000e+00> : vector<64x64xf32>
    %14 = tpu.matmul %11, %13, %cst_24 {dimension_numbers = #tpu.dot_dimension_numbers<[1], [0], [0], [1], [0, 0, 1, 1], [], []>} : vector<64x64xbf16>, vector<64x64xbf16>, vector<64x64xf32> -> vector<64x64xf32>
    %15 = arith.addf %9, %14 : vector<64x64xf32>
    %c0_25 = arith.constant 0 : index
    %c1_26 = arith.constant 1 : index
    %c0_27 = arith.constant 0 : index
    %16 = vector.load %arg5[%c0_25, %c1_26, %c0_27] : memref<10x10x64xbf16, #tpu.memory_space<vmem>>, vector<8x8x64xbf16>
    %17 = vector.shape_cast %16 : vector<8x8x64xbf16> to vector<64x64xbf16>
    %c0_28 = arith.constant 0 : index
    %c64 = arith.constant 64 : index
    %c0_29 = arith.constant 0 : index
    %18 = vector.load %arg2[%c0_28, %c64, %c0_29] : memref<3x192x64xbf16, #tpu.memory_space<vmem>>, vector<1x64x64xbf16>
    %19 = vector.shape_cast %18 : vector<1x64x64xbf16> to vector<64x64xbf16>
    %cst_30 = arith.constant dense<0.000000e+00> : vector<64x64xf32>
    %20 = tpu.matmul %17, %19, %cst_30 {dimension_numbers = #tpu.dot_dimension_numbers<[1], [0], [0], [1], [0, 0, 1, 1], [], []>} : vector<64x64xbf16>, vector<64x64xbf16>, vector<64x64xf32> -> vector<64x64xf32>
    %21 = arith.addf %15, %20 : vector<64x64xf32>
    %c0_31 = arith.constant 0 : index
    %c2 = arith.constant 2 : index
    %c0_32 = arith.constant 0 : index
    %22 = vector.load %arg5[%c0_31, %c2, %c0_32] : memref<10x10x64xbf16, #tpu.memory_space<vmem>>, vector<8x8x64xbf16>
    %23 = vector.shape_cast %22 : vector<8x8x64xbf16> to vector<64x64xbf16>
    %c0_33 = arith.constant 0 : index
    %c128 = arith.constant 128 : index
    %c0_34 = arith.constant 0 : index
    %24 = vector.load %arg2[%c0_33, %c128, %c0_34] : memref<3x192x64xbf16, #tpu.memory_space<vmem>>, vector<1x64x64xbf16>
    %25 = vector.shape_cast %24 : vector<1x64x64xbf16> to vector<64x64xbf16>
    %cst_35 = arith.constant dense<0.000000e+00> : vector<64x64xf32>
    %26 = tpu.matmul %23, %25, %cst_35 {dimension_numbers = #tpu.dot_dimension_numbers<[1], [0], [0], [1], [0, 0, 1, 1], [], []>} : vector<64x64xbf16>, vector<64x64xbf16>, vector<64x64xf32> -> vector<64x64xf32>
    %27 = arith.addf %21, %26 : vector<64x64xf32>
    %c1_36 = arith.constant 1 : index
    %c0_37 = arith.constant 0 : index
    %c0_38 = arith.constant 0 : index
    %28 = vector.load %arg5[%c1_36, %c0_37, %c0_38] : memref<10x10x64xbf16, #tpu.memory_space<vmem>>, vector<8x8x64xbf16>
    %29 = vector.shape_cast %28 : vector<8x8x64xbf16> to vector<64x64xbf16>
    %c1_39 = arith.constant 1 : index
    %c0_40 = arith.constant 0 : index
    %c0_41 = arith.constant 0 : index
    %30 = vector.load %arg2[%c1_39, %c0_40, %c0_41] : memref<3x192x64xbf16, #tpu.memory_space<vmem>>, vector<1x64x64xbf16>
    %31 = vector.shape_cast %30 : vector<1x64x64xbf16> to vector<64x64xbf16>
    %cst_42 = arith.constant dense<0.000000e+00> : vector<64x64xf32>
    %32 = tpu.matmul %29, %31, %cst_42 {dimension_numbers = #tpu.dot_dimension_numbers<[1], [0], [0], [1], [0, 0, 1, 1], [], []>} : vector<64x64xbf16>, vector<64x64xbf16>, vector<64x64xf32> -> vector<64x64xf32>
    %33 = arith.addf %27, %32 : vector<64x64xf32>
    %c1_43 = arith.constant 1 : index
    %c1_44 = arith.constant 1 : index
    %c0_45 = arith.constant 0 : index
    %34 = vector.load %arg5[%c1_43, %c1_44, %c0_45] : memref<10x10x64xbf16, #tpu.memory_space<vmem>>, vector<8x8x64xbf16>
    %35 = vector.shape_cast %34 : vector<8x8x64xbf16> to vector<64x64xbf16>
    %c1_46 = arith.constant 1 : index
    %c64_47 = arith.constant 64 : index
    %c0_48 = arith.constant 0 : index
    %36 = vector.load %arg2[%c1_46, %c64_47, %c0_48] : memref<3x192x64xbf16, #tpu.memory_space<vmem>>, vector<1x64x64xbf16>
    %37 = vector.shape_cast %36 : vector<1x64x64xbf16> to vector<64x64xbf16>
    %cst_49 = arith.constant dense<0.000000e+00> : vector<64x64xf32>
    %38 = tpu.matmul %35, %37, %cst_49 {dimension_numbers = #tpu.dot_dimension_numbers<[1], [0], [0], [1], [0, 0, 1, 1], [], []>} : vector<64x64xbf16>, vector<64x64xbf16>, vector<64x64xf32> -> vector<64x64xf32>
    %39 = arith.addf %33, %38 : vector<64x64xf32>
    %c1_50 = arith.constant 1 : index
    %c2_51 = arith.constant 2 : index
    %c0_52 = arith.constant 0 : index
    %40 = vector.load %arg5[%c1_50, %c2_51, %c0_52] : memref<10x10x64xbf16, #tpu.memory_space<vmem>>, vector<8x8x64xbf16>
    %41 = vector.shape_cast %40 : vector<8x8x64xbf16> to vector<64x64xbf16>
    %c1_53 = arith.constant 1 : index
    %c128_54 = arith.constant 128 : index
    %c0_55 = arith.constant 0 : index
    %42 = vector.load %arg2[%c1_53, %c128_54, %c0_55] : memref<3x192x64xbf16, #tpu.memory_space<vmem>>, vector<1x64x64xbf16>
    %43 = vector.shape_cast %42 : vector<1x64x64xbf16> to vector<64x64xbf16>
    %cst_56 = arith.constant dense<0.000000e+00> : vector<64x64xf32>
    %44 = tpu.matmul %41, %43, %cst_56 {dimension_numbers = #tpu.dot_dimension_numbers<[1], [0], [0], [1], [0, 0, 1, 1], [], []>} : vector<64x64xbf16>, vector<64x64xbf16>, vector<64x64xf32> -> vector<64x64xf32>
    %45 = arith.addf %39, %44 : vector<64x64xf32>
    %c2_57 = arith.constant 2 : index
    %c0_58 = arith.constant 0 : index
    %c0_59 = arith.constant 0 : index
    %46 = vector.load %arg5[%c2_57, %c0_58, %c0_59] : memref<10x10x64xbf16, #tpu.memory_space<vmem>>, vector<8x8x64xbf16>
    %47 = vector.shape_cast %46 : vector<8x8x64xbf16> to vector<64x64xbf16>
    %c2_60 = arith.constant 2 : index
    %c0_61 = arith.constant 0 : index
    %c0_62 = arith.constant 0 : index
    %48 = vector.load %arg2[%c2_60, %c0_61, %c0_62] : memref<3x192x64xbf16, #tpu.memory_space<vmem>>, vector<1x64x64xbf16>
    %49 = vector.shape_cast %48 : vector<1x64x64xbf16> to vector<64x64xbf16>
    %cst_63 = arith.constant dense<0.000000e+00> : vector<64x64xf32>
    %50 = tpu.matmul %47, %49, %cst_63 {dimension_numbers = #tpu.dot_dimension_numbers<[1], [0], [0], [1], [0, 0, 1, 1], [], []>} : vector<64x64xbf16>, vector<64x64xbf16>, vector<64x64xf32> -> vector<64x64xf32>
    %51 = arith.addf %45, %50 : vector<64x64xf32>
    %c2_64 = arith.constant 2 : index
    %c1_65 = arith.constant 1 : index
    %c0_66 = arith.constant 0 : index
    %52 = vector.load %arg5[%c2_64, %c1_65, %c0_66] : memref<10x10x64xbf16, #tpu.memory_space<vmem>>, vector<8x8x64xbf16>
    %53 = vector.shape_cast %52 : vector<8x8x64xbf16> to vector<64x64xbf16>
    %c2_67 = arith.constant 2 : index
    %c64_68 = arith.constant 64 : index
    %c0_69 = arith.constant 0 : index
    %54 = vector.load %arg2[%c2_67, %c64_68, %c0_69] : memref<3x192x64xbf16, #tpu.memory_space<vmem>>, vector<1x64x64xbf16>
    %55 = vector.shape_cast %54 : vector<1x64x64xbf16> to vector<64x64xbf16>
    %cst_70 = arith.constant dense<0.000000e+00> : vector<64x64xf32>
    %56 = tpu.matmul %53, %55, %cst_70 {dimension_numbers = #tpu.dot_dimension_numbers<[1], [0], [0], [1], [0, 0, 1, 1], [], []>} : vector<64x64xbf16>, vector<64x64xbf16>, vector<64x64xf32> -> vector<64x64xf32>
    %57 = arith.addf %51, %56 : vector<64x64xf32>
    %c2_71 = arith.constant 2 : index
    %c2_72 = arith.constant 2 : index
    %c0_73 = arith.constant 0 : index
    %58 = vector.load %arg5[%c2_71, %c2_72, %c0_73] : memref<10x10x64xbf16, #tpu.memory_space<vmem>>, vector<8x8x64xbf16>
    %59 = vector.shape_cast %58 : vector<8x8x64xbf16> to vector<64x64xbf16>
    %c2_74 = arith.constant 2 : index
    %c128_75 = arith.constant 128 : index
    %c0_76 = arith.constant 0 : index
    %60 = vector.load %arg2[%c2_74, %c128_75, %c0_76] : memref<3x192x64xbf16, #tpu.memory_space<vmem>>, vector<1x64x64xbf16>
    %61 = vector.shape_cast %60 : vector<1x64x64xbf16> to vector<64x64xbf16>
    %cst_77 = arith.constant dense<0.000000e+00> : vector<64x64xf32>
    %62 = tpu.matmul %59, %61, %cst_77 {dimension_numbers = #tpu.dot_dimension_numbers<[1], [0], [0], [1], [0, 0, 1, 1], [], []>} : vector<64x64xbf16>, vector<64x64xbf16>, vector<64x64xf32> -> vector<64x64xf32>
    %63 = arith.addf %57, %62 : vector<64x64xf32>
    %c0_78 = arith.constant 0 : index
    %c0_79 = arith.constant 0 : index
    %64 = vector.load %arg3[%c0_78, %c0_79] : memref<1x64xf32, #tpu.memory_space<vmem>>, vector<1x64xf32>
    %65 = vector.shape_cast %64 : vector<1x64xf32> to vector<64xf32>
    %66 = vector.shape_cast %65 : vector<64xf32> to vector<1x64xf32>
    %67 = vector.broadcast %66 : vector<1x64xf32> to vector<64x64xf32>
    %68 = arith.addf %63, %67 : vector<64x64xf32>
    %cst_80 = arith.constant 0.000000e+00 : f32
    %69 = vector.broadcast %cst_80 : f32 to vector<64x64xf32>
    %70 = arith.cmpf ogt, %68, %69 : vector<64x64xf32>
    %cst_81 = arith.constant 2.000000e-01 : f32
    %71 = vector.broadcast %cst_81 : f32 to vector<64x64xf32>
    %72 = arith.mulf %71, %68 : vector<64x64xf32>
    %73 = arith.select %70, %68, %72 : vector<64x64xi1>, vector<64x64xf32>
    %74 = vector.shape_cast %73 : vector<64x64xf32> to vector<8x8x64xf32>
    %75 = arith.truncf %74 : vector<8x8x64xf32> to vector<8x8x64xbf16>
    %c0_82 = arith.constant 0 : index
    %c0_83 = arith.constant 0 : index
    %c0_84 = arith.constant 0 : index
    %c0_85 = arith.constant 0 : index
    %76 = vector.load %arg4[%c0_82, %c0_83, %c0_84, %c0_85] : memref<1x8x8x64xbf16, #tpu.memory_space<vmem>>, vector<1x8x8x64xbf16>
    %77 = vector.shape_cast %76 : vector<1x8x8x64xbf16> to vector<8x8x64xbf16>
    %78 = vector.shape_cast %75 : vector<8x8x64xbf16> to vector<1x8x8x64xbf16>
    tpu.vector_store %arg4[%c0_82, %c0_83, %c0_84, %c0_85], %78 {strides = array<i32>} : memref<1x8x8x64xbf16, #tpu.memory_space<vmem>>, vector<1x8x8x64xbf16>,
    return
  }
  func.func @transform_0(%arg0: i32) -> (i32, i32, i32, i32) {
    %c0_i32 = arith.constant 0 : i32
    %c0_i32_0 = arith.constant 0 : i32
    %c0_i32_1 = arith.constant 0 : i32
    %c0_i32_2 = arith.constant 0 : i32
    return %arg0, %c0_i32, %c0_i32_0, %c0_i32_1 : i32, i32, i32, i32
  }
  func.func @transform_1(%arg0: i32) -> (i32, i32, i32) {
    %c0_i32 = arith.constant 0 : i32
    %c0_i32_0 = arith.constant 0 : i32
    %c0_i32_1 = arith.constant 0 : i32
    %c0_i32_2 = arith.constant 0 : i32
    return %c0_i32, %c0_i32_0, %c0_i32_1 : i32, i32, i32
  }
  func.func @transform_2(%arg0: i32) -> (i32, i32) {
    %c0_i32 = arith.constant 0 : i32
    %c0_i32_0 = arith.constant 0 : i32
    %c0_i32_1 = arith.constant 0 : i32
    return %c0_i32, %c0_i32_0 : i32, i32
  }
  func.func @transform_3(%arg0: i32) -> (i32, i32, i32, i32) {
    %c0_i32 = arith.constant 0 : i32
    %c0_i32_0 = arith.constant 0 : i32
    %c0_i32_1 = arith.constant 0 : i32
    %c0_i32_2 = arith.constant 0 : i32
    return %arg0, %c0_i32, %c0_i32_0, %c0_i32_1 : i32, i32, i32, i32
  }
}

module attributes {stable_mosaic.version = 11 : i64} {
  func.func @_conv3x3_s2_kernel(%arg0: i32, %arg1: memref<1x5x5x256xbf16, #tpu.memory_space<vmem>>, %arg2: memref<3x192x64xbf16, #tpu.memory_space<vmem>>, %arg3: memref<1x64xf32, #tpu.memory_space<vmem>>, %arg4: memref<1x4x4x64xbf16, #tpu.memory_space<vmem>>) attributes {dimension_semantics = [#tpu.dimension_semantics<parallel>], iteration_bounds = array<i64: 2>, scalar_prefetch = 0 : i64, scratch_operands = 0 : i64, tpu.core_type = #tpu.core_type<tc>, window_params = [{transform_indices = @transform_0, window_bounds = array<i64: 1, 5, 5, 256>}, {pipeline_mode = #tpu.pipeline_mode<synchronous>, transform_indices = @transform_1, window_bounds = array<i64: 3, 192, 64>}, {pipeline_mode = #tpu.pipeline_mode<synchronous>, transform_indices = @transform_2, window_bounds = array<i64: 1, 64>}, {transform_indices = @transform_3, window_bounds = array<i64: 1, 4, 4, 64>}]} {
    %cst = arith.constant 0.000000e+00 : f32
    %0 = vector.broadcast %cst : f32 to vector<16x64xf32>
    %c0 = arith.constant 0 : index
    %c0_0 = arith.constant 0 : index
    %c0_1 = arith.constant 0 : index
    %c0_2 = arith.constant 0 : index
    %1 = vector.load %arg1[%c0, %c0_0, %c0_1, %c0_2] : memref<1x5x5x256xbf16, #tpu.memory_space<vmem>>, vector<1x4x4x128xbf16>
    %2 = vector.shape_cast %1 : vector<1x4x4x128xbf16> to vector<4x4x128xbf16>
    %3 = vector.shape_cast %2 : vector<4x4x128xbf16> to vector<16x128xbf16>
    %c0_3 = arith.constant 0 : index
    %c0_4 = arith.constant 0 : index
    %c0_5 = arith.constant 0 : index
    %4 = vector.load %arg2[%c0_3, %c0_4, %c0_5] : memref<3x192x64xbf16, #tpu.memory_space<vmem>>, vector<1x128x64xbf16>
    %5 = vector.shape_cast %4 : vector<1x128x64xbf16> to vector<128x64xbf16>
    %cst_6 = arith.constant dense<0.000000e+00> : vector<16x64xf32>
    %6 = tpu.matmul %3, %5, %cst_6 {dimension_numbers = #tpu.dot_dimension_numbers<[1], [0], [0], [1], [0, 0, 1, 1], [], []>} : vector<16x128xbf16>, vector<128x64xbf16>, vector<16x64xf32> -> vector<16x64xf32>
    %7 = arith.addf %0, %6 : vector<16x64xf32>
    %c0_7 = arith.constant 0 : index
    %c0_8 = arith.constant 0 : index
    %c1 = arith.constant 1 : index
    %c0_9 = arith.constant 0 : index
    %8 = vector.load %arg1[%c0_7, %c0_8, %c1, %c0_9] : memref<1x5x5x256xbf16, #tpu.memory_space<vmem>>, vector<1x4x4x64xbf16>
    %9 = vector.shape_cast %8 : vector<1x4x4x64xbf16> to vector<4x4x64xbf16>
    %10 = vector.shape_cast %9 : vector<4x4x64xbf16> to vector<16x64xbf16>
    %c0_10 = arith.constant 0 : index
    %c128 = arith.constant 128 : index
    %c0_11 = arith.constant 0 : index
    %11 = vector.load %arg2[%c0_10, %c128, %c0_11] : memref<3x192x64xbf16, #tpu.memory_space<vmem>>, vector<1x64x64xbf16>
    %12 = vector.shape_cast %11 : vector<1x64x64xbf16> to vector<64x64xbf16>
    %cst_12 = arith.constant dense<0.000000e+00> : vector<16x64xf32>
    %13 = tpu.matmul %10, %12, %cst_12 {dimension_numbers = #tpu.dot_dimension_numbers<[1], [0], [0], [1], [0, 0, 1, 1], [], []>} : vector<16x64xbf16>, vector<64x64xbf16>, vector<16x64xf32> -> vector<16x64xf32>
    %14 = arith.addf %7, %13 : vector<16x64xf32>
    %c0_13 = arith.constant 0 : index
    %c0_14 = arith.constant 0 : index
    %c0_15 = arith.constant 0 : index
    %c128_16 = arith.constant 128 : index
    %15 = vector.load %arg1[%c0_13, %c0_14, %c0_15, %c128_16] : memref<1x5x5x256xbf16, #tpu.memory_space<vmem>>, vector<1x4x4x128xbf16>
    %16 = vector.shape_cast %15 : vector<1x4x4x128xbf16> to vector<4x4x128xbf16>
    %17 = vector.shape_cast %16 : vector<4x4x128xbf16> to vector<16x128xbf16>
    %c1_17 = arith.constant 1 : index
    %c0_18 = arith.constant 0 : index
    %c0_19 = arith.constant 0 : index
    %18 = vector.load %arg2[%c1_17, %c0_18, %c0_19] : memref<3x192x64xbf16, #tpu.memory_space<vmem>>, vector<1x128x64xbf16>
    %19 = vector.shape_cast %18 : vector<1x128x64xbf16> to vector<128x64xbf16>
    %cst_20 = arith.constant dense<0.000000e+00> : vector<16x64xf32>
    %20 = tpu.matmul %17, %19, %cst_20 {dimension_numbers = #tpu.dot_dimension_numbers<[1], [0], [0], [1], [0, 0, 1, 1], [], []>} : vector<16x128xbf16>, vector<128x64xbf16>, vector<16x64xf32> -> vector<16x64xf32>
    %21 = arith.addf %14, %20 : vector<16x64xf32>
    %c0_21 = arith.constant 0 : index
    %c0_22 = arith.constant 0 : index
    %c1_23 = arith.constant 1 : index
    %c128_24 = arith.constant 128 : index
    %22 = vector.load %arg1[%c0_21, %c0_22, %c1_23, %c128_24] : memref<1x5x5x256xbf16, #tpu.memory_space<vmem>>, vector<1x4x4x64xbf16>
    %23 = vector.shape_cast %22 : vector<1x4x4x64xbf16> to vector<4x4x64xbf16>
    %24 = vector.shape_cast %23 : vector<4x4x64xbf16> to vector<16x64xbf16>
    %c1_25 = arith.constant 1 : index
    %c128_26 = arith.constant 128 : index
    %c0_27 = arith.constant 0 : index
    %25 = vector.load %arg2[%c1_25, %c128_26, %c0_27] : memref<3x192x64xbf16, #tpu.memory_space<vmem>>, vector<1x64x64xbf16>
    %26 = vector.shape_cast %25 : vector<1x64x64xbf16> to vector<64x64xbf16>
    %cst_28 = arith.constant dense<0.000000e+00> : vector<16x64xf32>
    %27 = tpu.matmul %24, %26, %cst_28 {dimension_numbers = #tpu.dot_dimension_numbers<[1], [0], [0], [1], [0, 0, 1, 1], [], []>} : vector<16x64xbf16>, vector<64x64xbf16>, vector<16x64xf32> -> vector<16x64xf32>
    %28 = arith.addf %21, %27 : vector<16x64xf32>
    %c0_29 = arith.constant 0 : index
    %c1_30 = arith.constant 1 : index
    %c0_31 = arith.constant 0 : index
    %c0_32 = arith.constant 0 : index
    %29 = vector.load %arg1[%c0_29, %c1_30, %c0_31, %c0_32] : memref<1x5x5x256xbf16, #tpu.memory_space<vmem>>, vector<1x4x4x128xbf16>
    %30 = vector.shape_cast %29 : vector<1x4x4x128xbf16> to vector<4x4x128xbf16>
    %31 = vector.shape_cast %30 : vector<4x4x128xbf16> to vector<16x128xbf16>
    %c2 = arith.constant 2 : index
    %c0_33 = arith.constant 0 : index
    %c0_34 = arith.constant 0 : index
    %32 = vector.load %arg2[%c2, %c0_33, %c0_34] : memref<3x192x64xbf16, #tpu.memory_space<vmem>>, vector<1x128x64xbf16>
    %33 = vector.shape_cast %32 : vector<1x128x64xbf16> to vector<128x64xbf16>
    %cst_35 = arith.constant dense<0.000000e+00> : vector<16x64xf32>
    %34 = tpu.matmul %31, %33, %cst_35 {dimension_numbers = #tpu.dot_dimension_numbers<[1], [0], [0], [1], [0, 0, 1, 1], [], []>} : vector<16x128xbf16>, vector<128x64xbf16>, vector<16x64xf32> -> vector<16x64xf32>
    %35 = arith.addf %28, %34 : vector<16x64xf32>
    %c0_36 = arith.constant 0 : index
    %c1_37 = arith.constant 1 : index
    %c1_38 = arith.constant 1 : index
    %c0_39 = arith.constant 0 : index
    %36 = vector.load %arg1[%c0_36, %c1_37, %c1_38, %c0_39] : memref<1x5x5x256xbf16, #tpu.memory_space<vmem>>, vector<1x4x4x64xbf16>
    %37 = vector.shape_cast %36 : vector<1x4x4x64xbf16> to vector<4x4x64xbf16>
    %38 = vector.shape_cast %37 : vector<4x4x64xbf16> to vector<16x64xbf16>
    %c2_40 = arith.constant 2 : index
    %c128_41 = arith.constant 128 : index
    %c0_42 = arith.constant 0 : index
    %39 = vector.load %arg2[%c2_40, %c128_41, %c0_42] : memref<3x192x64xbf16, #tpu.memory_space<vmem>>, vector<1x64x64xbf16>
    %40 = vector.shape_cast %39 : vector<1x64x64xbf16> to vector<64x64xbf16>
    %cst_43 = arith.constant dense<0.000000e+00> : vector<16x64xf32>
    %41 = tpu.matmul %38, %40, %cst_43 {dimension_numbers = #tpu.dot_dimension_numbers<[1], [0], [0], [1], [0, 0, 1, 1], [], []>} : vector<16x64xbf16>, vector<64x64xbf16>, vector<16x64xf32> -> vector<16x64xf32>
    %42 = arith.addf %35, %41 : vector<16x64xf32>
    %c0_44 = arith.constant 0 : index
    %c0_45 = arith.constant 0 : index
    %43 = vector.load %arg3[%c0_44, %c0_45] : memref<1x64xf32, #tpu.memory_space<vmem>>, vector<1x64xf32>
    %44 = vector.shape_cast %43 : vector<1x64xf32> to vector<64xf32>
    %45 = vector.shape_cast %44 : vector<64xf32> to vector<1x64xf32>
    %46 = vector.broadcast %45 : vector<1x64xf32> to vector<16x64xf32>
    %47 = arith.addf %42, %46 : vector<16x64xf32>
    %cst_46 = arith.constant 0.000000e+00 : f32
    %48 = vector.broadcast %cst_46 : f32 to vector<16x64xf32>
    %49 = arith.cmpf ogt, %47, %48 : vector<16x64xf32>
    %cst_47 = arith.constant 2.000000e-01 : f32
    %50 = vector.broadcast %cst_47 : f32 to vector<16x64xf32>
    %51 = arith.mulf %50, %47 : vector<16x64xf32>
    %52 = arith.select %49, %47, %51 : vector<16x64xi1>, vector<16x64xf32>
    %53 = vector.shape_cast %52 : vector<16x64xf32> to vector<4x4x64xf32>
    %54 = arith.truncf %53 : vector<4x4x64xf32> to vector<4x4x64xbf16>
    %c0_48 = arith.constant 0 : index
    %c0_49 = arith.constant 0 : index
    %c0_50 = arith.constant 0 : index
    %c0_51 = arith.constant 0 : index
    %55 = vector.load %arg4[%c0_48, %c0_49, %c0_50, %c0_51] : memref<1x4x4x64xbf16, #tpu.memory_space<vmem>>, vector<1x4x4x64xbf16>
    %56 = vector.shape_cast %55 : vector<1x4x4x64xbf16> to vector<4x4x64xbf16>
    %57 = vector.shape_cast %54 : vector<4x4x64xbf16> to vector<1x4x4x64xbf16>
    tpu.vector_store %arg4[%c0_48, %c0_49, %c0_50, %c0_51], %57 {strides = array<i32>} : memref<1x4x4x64xbf16, #tpu.memory_space<vmem>>, vector<1x4x4x64xbf16>,
    return
  }
  func.func @transform_0(%arg0: i32) -> (i32, i32, i32, i32) {
    %c0_i32 = arith.constant 0 : i32
    %c0_i32_0 = arith.constant 0 : i32
    %c0_i32_1 = arith.constant 0 : i32
    %c0_i32_2 = arith.constant 0 : i32
    return %arg0, %c0_i32, %c0_i32_0, %c0_i32_1 : i32, i32, i32, i32
  }
  func.func @transform_1(%arg0: i32) -> (i32, i32, i32) {
    %c0_i32 = arith.constant 0 : i32
    %c0_i32_0 = arith.constant 0 : i32
    %c0_i32_1 = arith.constant 0 : i32
    %c0_i32_2 = arith.constant 0 : i32
    return %c0_i32, %c0_i32_0, %c0_i32_1 : i32, i32, i32
  }
  func.func @transform_2(%arg0: i32) -> (i32, i32) {
    %c0_i32 = arith.constant 0 : i32
    %c0_i32_0 = arith.constant 0 : i32
    %c0_i32_1 = arith.constant 0 : i32
    return %c0_i32, %c0_i32_0 : i32, i32
  }
  func.func @transform_3(%arg0: i32) -> (i32, i32, i32, i32) {
    %c0_i32 = arith.constant 0 : i32
    %c0_i32_0 = arith.constant 0 : i32
    %c0_i32_1 = arith.constant 0 : i32
    %c0_i32_2 = arith.constant 0 : i32
    return %arg0, %c0_i32, %c0_i32_0, %c0_i32_1 : i32, i32, i32, i32
  }
}

module attributes {stable_mosaic.version = 11 : i64} {
  func.func @_conv3x3_s1_kernel(%arg0: i32, %arg1: memref<1x4x4x64xbf16, #tpu.memory_space<vmem>>, %arg2: memref<3x192x64xbf16, #tpu.memory_space<vmem>>, %arg3: memref<1x64xf32, #tpu.memory_space<vmem>>, %arg4: memref<1x4x4x64xbf16, #tpu.memory_space<vmem>>, %arg5: memref<6x6x64xbf16, #tpu.memory_space<vmem>>) attributes {dimension_semantics = [#tpu.dimension_semantics<parallel>], iteration_bounds = array<i64: 2>, scalar_prefetch = 0 : i64, scratch_operands = 1 : i64, tpu.core_type = #tpu.core_type<tc>, window_params = [{transform_indices = @transform_0, window_bounds = array<i64: 1, 4, 4, 64>}, {pipeline_mode = #tpu.pipeline_mode<synchronous>, transform_indices = @transform_1, window_bounds = array<i64: 3, 192, 64>}, {pipeline_mode = #tpu.pipeline_mode<synchronous>, transform_indices = @transform_2, window_bounds = array<i64: 1, 64>}, {transform_indices = @transform_3, window_bounds = array<i64: 1, 4, 4, 64>}]} {
    %cst = arith.constant 0.000000e+00 : bf16
    %0 = vector.broadcast %cst : bf16 to vector<1x6x64xbf16>
    %cst_0 = arith.constant 0.000000e+00 : bf16
    %1 = vector.broadcast %cst_0 : bf16 to vector<6x1x64xbf16>
    %c0 = arith.constant 0 : index
    %c0_1 = arith.constant 0 : index
    %c0_2 = arith.constant 0 : index
    %2 = vector.load %arg5[%c0, %c0_1, %c0_2] : memref<6x6x64xbf16, #tpu.memory_space<vmem>>, vector<1x6x64xbf16>
    tpu.vector_store %arg5[%c0, %c0_1, %c0_2], %0 {strides = array<i32>} : memref<6x6x64xbf16, #tpu.memory_space<vmem>>, vector<1x6x64xbf16>,
    %c5 = arith.constant 5 : index
    %c0_3 = arith.constant 0 : index
    %c0_4 = arith.constant 0 : index
    %3 = vector.load %arg5[%c5, %c0_3, %c0_4] : memref<6x6x64xbf16, #tpu.memory_space<vmem>>, vector<1x6x64xbf16>
    tpu.vector_store %arg5[%c5, %c0_3, %c0_4], %0 {strides = array<i32>} : memref<6x6x64xbf16, #tpu.memory_space<vmem>>, vector<1x6x64xbf16>,
    %c0_5 = arith.constant 0 : index
    %c0_6 = arith.constant 0 : index
    %c0_7 = arith.constant 0 : index
    %4 = vector.load %arg5[%c0_5, %c0_6, %c0_7] : memref<6x6x64xbf16, #tpu.memory_space<vmem>>, vector<6x1x64xbf16>
    tpu.vector_store %arg5[%c0_5, %c0_6, %c0_7], %1 {strides = array<i32>} : memref<6x6x64xbf16, #tpu.memory_space<vmem>>, vector<6x1x64xbf16>,
    %c0_8 = arith.constant 0 : index
    %c5_9 = arith.constant 5 : index
    %c0_10 = arith.constant 0 : index
    %5 = vector.load %arg5[%c0_8, %c5_9, %c0_10] : memref<6x6x64xbf16, #tpu.memory_space<vmem>>, vector<6x1x64xbf16>
    tpu.vector_store %arg5[%c0_8, %c5_9, %c0_10], %1 {strides = array<i32>} : memref<6x6x64xbf16, #tpu.memory_space<vmem>>, vector<6x1x64xbf16>,
    %c0_11 = arith.constant 0 : index
    %c0_12 = arith.constant 0 : index
    %c0_13 = arith.constant 0 : index
    %c0_14 = arith.constant 0 : index
    %6 = vector.load %arg1[%c0_11, %c0_12, %c0_13, %c0_14] : memref<1x4x4x64xbf16, #tpu.memory_space<vmem>>, vector<1x4x4x64xbf16>
    %7 = vector.shape_cast %6 : vector<1x4x4x64xbf16> to vector<4x4x64xbf16>
    %c1 = arith.constant 1 : index
    %c1_15 = arith.constant 1 : index
    %c0_16 = arith.constant 0 : index
    %8 = vector.load %arg5[%c1, %c1_15, %c0_16] : memref<6x6x64xbf16, #tpu.memory_space<vmem>>, vector<4x4x64xbf16>
    tpu.vector_store %arg5[%c1, %c1_15, %c0_16], %7 {strides = array<i32>} : memref<6x6x64xbf16, #tpu.memory_space<vmem>>, vector<4x4x64xbf16>,
    %cst_17 = arith.constant 0.000000e+00 : f32
    %9 = vector.broadcast %cst_17 : f32 to vector<16x64xf32>
    %c0_18 = arith.constant 0 : index
    %c0_19 = arith.constant 0 : index
    %c0_20 = arith.constant 0 : index
    %10 = vector.load %arg5[%c0_18, %c0_19, %c0_20] : memref<6x6x64xbf16, #tpu.memory_space<vmem>>, vector<4x4x64xbf16>
    %11 = vector.shape_cast %10 : vector<4x4x64xbf16> to vector<16x64xbf16>
    %c0_21 = arith.constant 0 : index
    %c0_22 = arith.constant 0 : index
    %c0_23 = arith.constant 0 : index
    %12 = vector.load %arg2[%c0_21, %c0_22, %c0_23] : memref<3x192x64xbf16, #tpu.memory_space<vmem>>, vector<1x64x64xbf16>
    %13 = vector.shape_cast %12 : vector<1x64x64xbf16> to vector<64x64xbf16>
    %cst_24 = arith.constant dense<0.000000e+00> : vector<16x64xf32>
    %14 = tpu.matmul %11, %13, %cst_24 {dimension_numbers = #tpu.dot_dimension_numbers<[1], [0], [0], [1], [0, 0, 1, 1], [], []>} : vector<16x64xbf16>, vector<64x64xbf16>, vector<16x64xf32> -> vector<16x64xf32>
    %15 = arith.addf %9, %14 : vector<16x64xf32>
    %c0_25 = arith.constant 0 : index
    %c1_26 = arith.constant 1 : index
    %c0_27 = arith.constant 0 : index
    %16 = vector.load %arg5[%c0_25, %c1_26, %c0_27] : memref<6x6x64xbf16, #tpu.memory_space<vmem>>, vector<4x4x64xbf16>
    %17 = vector.shape_cast %16 : vector<4x4x64xbf16> to vector<16x64xbf16>
    %c0_28 = arith.constant 0 : index
    %c64 = arith.constant 64 : index
    %c0_29 = arith.constant 0 : index
    %18 = vector.load %arg2[%c0_28, %c64, %c0_29] : memref<3x192x64xbf16, #tpu.memory_space<vmem>>, vector<1x64x64xbf16>
    %19 = vector.shape_cast %18 : vector<1x64x64xbf16> to vector<64x64xbf16>
    %cst_30 = arith.constant dense<0.000000e+00> : vector<16x64xf32>
    %20 = tpu.matmul %17, %19, %cst_30 {dimension_numbers = #tpu.dot_dimension_numbers<[1], [0], [0], [1], [0, 0, 1, 1], [], []>} : vector<16x64xbf16>, vector<64x64xbf16>, vector<16x64xf32> -> vector<16x64xf32>
    %21 = arith.addf %15, %20 : vector<16x64xf32>
    %c0_31 = arith.constant 0 : index
    %c2 = arith.constant 2 : index
    %c0_32 = arith.constant 0 : index
    %22 = vector.load %arg5[%c0_31, %c2, %c0_32] : memref<6x6x64xbf16, #tpu.memory_space<vmem>>, vector<4x4x64xbf16>
    %23 = vector.shape_cast %22 : vector<4x4x64xbf16> to vector<16x64xbf16>
    %c0_33 = arith.constant 0 : index
    %c128 = arith.constant 128 : index
    %c0_34 = arith.constant 0 : index
    %24 = vector.load %arg2[%c0_33, %c128, %c0_34] : memref<3x192x64xbf16, #tpu.memory_space<vmem>>, vector<1x64x64xbf16>
    %25 = vector.shape_cast %24 : vector<1x64x64xbf16> to vector<64x64xbf16>
    %cst_35 = arith.constant dense<0.000000e+00> : vector<16x64xf32>
    %26 = tpu.matmul %23, %25, %cst_35 {dimension_numbers = #tpu.dot_dimension_numbers<[1], [0], [0], [1], [0, 0, 1, 1], [], []>} : vector<16x64xbf16>, vector<64x64xbf16>, vector<16x64xf32> -> vector<16x64xf32>
    %27 = arith.addf %21, %26 : vector<16x64xf32>
    %c1_36 = arith.constant 1 : index
    %c0_37 = arith.constant 0 : index
    %c0_38 = arith.constant 0 : index
    %28 = vector.load %arg5[%c1_36, %c0_37, %c0_38] : memref<6x6x64xbf16, #tpu.memory_space<vmem>>, vector<4x4x64xbf16>
    %29 = vector.shape_cast %28 : vector<4x4x64xbf16> to vector<16x64xbf16>
    %c1_39 = arith.constant 1 : index
    %c0_40 = arith.constant 0 : index
    %c0_41 = arith.constant 0 : index
    %30 = vector.load %arg2[%c1_39, %c0_40, %c0_41] : memref<3x192x64xbf16, #tpu.memory_space<vmem>>, vector<1x64x64xbf16>
    %31 = vector.shape_cast %30 : vector<1x64x64xbf16> to vector<64x64xbf16>
    %cst_42 = arith.constant dense<0.000000e+00> : vector<16x64xf32>
    %32 = tpu.matmul %29, %31, %cst_42 {dimension_numbers = #tpu.dot_dimension_numbers<[1], [0], [0], [1], [0, 0, 1, 1], [], []>} : vector<16x64xbf16>, vector<64x64xbf16>, vector<16x64xf32> -> vector<16x64xf32>
    %33 = arith.addf %27, %32 : vector<16x64xf32>
    %c1_43 = arith.constant 1 : index
    %c1_44 = arith.constant 1 : index
    %c0_45 = arith.constant 0 : index
    %34 = vector.load %arg5[%c1_43, %c1_44, %c0_45] : memref<6x6x64xbf16, #tpu.memory_space<vmem>>, vector<4x4x64xbf16>
    %35 = vector.shape_cast %34 : vector<4x4x64xbf16> to vector<16x64xbf16>
    %c1_46 = arith.constant 1 : index
    %c64_47 = arith.constant 64 : index
    %c0_48 = arith.constant 0 : index
    %36 = vector.load %arg2[%c1_46, %c64_47, %c0_48] : memref<3x192x64xbf16, #tpu.memory_space<vmem>>, vector<1x64x64xbf16>
    %37 = vector.shape_cast %36 : vector<1x64x64xbf16> to vector<64x64xbf16>
    %cst_49 = arith.constant dense<0.000000e+00> : vector<16x64xf32>
    %38 = tpu.matmul %35, %37, %cst_49 {dimension_numbers = #tpu.dot_dimension_numbers<[1], [0], [0], [1], [0, 0, 1, 1], [], []>} : vector<16x64xbf16>, vector<64x64xbf16>, vector<16x64xf32> -> vector<16x64xf32>
    %39 = arith.addf %33, %38 : vector<16x64xf32>
    %c1_50 = arith.constant 1 : index
    %c2_51 = arith.constant 2 : index
    %c0_52 = arith.constant 0 : index
    %40 = vector.load %arg5[%c1_50, %c2_51, %c0_52] : memref<6x6x64xbf16, #tpu.memory_space<vmem>>, vector<4x4x64xbf16>
    %41 = vector.shape_cast %40 : vector<4x4x64xbf16> to vector<16x64xbf16>
    %c1_53 = arith.constant 1 : index
    %c128_54 = arith.constant 128 : index
    %c0_55 = arith.constant 0 : index
    %42 = vector.load %arg2[%c1_53, %c128_54, %c0_55] : memref<3x192x64xbf16, #tpu.memory_space<vmem>>, vector<1x64x64xbf16>
    %43 = vector.shape_cast %42 : vector<1x64x64xbf16> to vector<64x64xbf16>
    %cst_56 = arith.constant dense<0.000000e+00> : vector<16x64xf32>
    %44 = tpu.matmul %41, %43, %cst_56 {dimension_numbers = #tpu.dot_dimension_numbers<[1], [0], [0], [1], [0, 0, 1, 1], [], []>} : vector<16x64xbf16>, vector<64x64xbf16>, vector<16x64xf32> -> vector<16x64xf32>
    %45 = arith.addf %39, %44 : vector<16x64xf32>
    %c2_57 = arith.constant 2 : index
    %c0_58 = arith.constant 0 : index
    %c0_59 = arith.constant 0 : index
    %46 = vector.load %arg5[%c2_57, %c0_58, %c0_59] : memref<6x6x64xbf16, #tpu.memory_space<vmem>>, vector<4x4x64xbf16>
    %47 = vector.shape_cast %46 : vector<4x4x64xbf16> to vector<16x64xbf16>
    %c2_60 = arith.constant 2 : index
    %c0_61 = arith.constant 0 : index
    %c0_62 = arith.constant 0 : index
    %48 = vector.load %arg2[%c2_60, %c0_61, %c0_62] : memref<3x192x64xbf16, #tpu.memory_space<vmem>>, vector<1x64x64xbf16>
    %49 = vector.shape_cast %48 : vector<1x64x64xbf16> to vector<64x64xbf16>
    %cst_63 = arith.constant dense<0.000000e+00> : vector<16x64xf32>
    %50 = tpu.matmul %47, %49, %cst_63 {dimension_numbers = #tpu.dot_dimension_numbers<[1], [0], [0], [1], [0, 0, 1, 1], [], []>} : vector<16x64xbf16>, vector<64x64xbf16>, vector<16x64xf32> -> vector<16x64xf32>
    %51 = arith.addf %45, %50 : vector<16x64xf32>
    %c2_64 = arith.constant 2 : index
    %c1_65 = arith.constant 1 : index
    %c0_66 = arith.constant 0 : index
    %52 = vector.load %arg5[%c2_64, %c1_65, %c0_66] : memref<6x6x64xbf16, #tpu.memory_space<vmem>>, vector<4x4x64xbf16>
    %53 = vector.shape_cast %52 : vector<4x4x64xbf16> to vector<16x64xbf16>
    %c2_67 = arith.constant 2 : index
    %c64_68 = arith.constant 64 : index
    %c0_69 = arith.constant 0 : index
    %54 = vector.load %arg2[%c2_67, %c64_68, %c0_69] : memref<3x192x64xbf16, #tpu.memory_space<vmem>>, vector<1x64x64xbf16>
    %55 = vector.shape_cast %54 : vector<1x64x64xbf16> to vector<64x64xbf16>
    %cst_70 = arith.constant dense<0.000000e+00> : vector<16x64xf32>
    %56 = tpu.matmul %53, %55, %cst_70 {dimension_numbers = #tpu.dot_dimension_numbers<[1], [0], [0], [1], [0, 0, 1, 1], [], []>} : vector<16x64xbf16>, vector<64x64xbf16>, vector<16x64xf32> -> vector<16x64xf32>
    %57 = arith.addf %51, %56 : vector<16x64xf32>
    %c2_71 = arith.constant 2 : index
    %c2_72 = arith.constant 2 : index
    %c0_73 = arith.constant 0 : index
    %58 = vector.load %arg5[%c2_71, %c2_72, %c0_73] : memref<6x6x64xbf16, #tpu.memory_space<vmem>>, vector<4x4x64xbf16>
    %59 = vector.shape_cast %58 : vector<4x4x64xbf16> to vector<16x64xbf16>
    %c2_74 = arith.constant 2 : index
    %c128_75 = arith.constant 128 : index
    %c0_76 = arith.constant 0 : index
    %60 = vector.load %arg2[%c2_74, %c128_75, %c0_76] : memref<3x192x64xbf16, #tpu.memory_space<vmem>>, vector<1x64x64xbf16>
    %61 = vector.shape_cast %60 : vector<1x64x64xbf16> to vector<64x64xbf16>
    %cst_77 = arith.constant dense<0.000000e+00> : vector<16x64xf32>
    %62 = tpu.matmul %59, %61, %cst_77 {dimension_numbers = #tpu.dot_dimension_numbers<[1], [0], [0], [1], [0, 0, 1, 1], [], []>} : vector<16x64xbf16>, vector<64x64xbf16>, vector<16x64xf32> -> vector<16x64xf32>
    %63 = arith.addf %57, %62 : vector<16x64xf32>
    %c0_78 = arith.constant 0 : index
    %c0_79 = arith.constant 0 : index
    %64 = vector.load %arg3[%c0_78, %c0_79] : memref<1x64xf32, #tpu.memory_space<vmem>>, vector<1x64xf32>
    %65 = vector.shape_cast %64 : vector<1x64xf32> to vector<64xf32>
    %66 = vector.shape_cast %65 : vector<64xf32> to vector<1x64xf32>
    %67 = vector.broadcast %66 : vector<1x64xf32> to vector<16x64xf32>
    %68 = arith.addf %63, %67 : vector<16x64xf32>
    %cst_80 = arith.constant 0.000000e+00 : f32
    %69 = vector.broadcast %cst_80 : f32 to vector<16x64xf32>
    %70 = arith.cmpf ogt, %68, %69 : vector<16x64xf32>
    %cst_81 = arith.constant 2.000000e-01 : f32
    %71 = vector.broadcast %cst_81 : f32 to vector<16x64xf32>
    %72 = arith.mulf %71, %68 : vector<16x64xf32>
    %73 = arith.select %70, %68, %72 : vector<16x64xi1>, vector<16x64xf32>
    %74 = vector.shape_cast %73 : vector<16x64xf32> to vector<4x4x64xf32>
    %75 = arith.truncf %74 : vector<4x4x64xf32> to vector<4x4x64xbf16>
    %c0_82 = arith.constant 0 : index
    %c0_83 = arith.constant 0 : index
    %c0_84 = arith.constant 0 : index
    %c0_85 = arith.constant 0 : index
    %76 = vector.load %arg4[%c0_82, %c0_83, %c0_84, %c0_85] : memref<1x4x4x64xbf16, #tpu.memory_space<vmem>>, vector<1x4x4x64xbf16>
    %77 = vector.shape_cast %76 : vector<1x4x4x64xbf16> to vector<4x4x64xbf16>
    %78 = vector.shape_cast %75 : vector<4x4x64xbf16> to vector<1x4x4x64xbf16>
    tpu.vector_store %arg4[%c0_82, %c0_83, %c0_84, %c0_85], %78 {strides = array<i32>} : memref<1x4x4x64xbf16, #tpu.memory_space<vmem>>, vector<1x4x4x64xbf16>,
    return
  }
  func.func @transform_0(%arg0: i32) -> (i32, i32, i32, i32) {
    %c0_i32 = arith.constant 0 : i32
    %c0_i32_0 = arith.constant 0 : i32
    %c0_i32_1 = arith.constant 0 : i32
    %c0_i32_2 = arith.constant 0 : i32
    return %arg0, %c0_i32, %c0_i32_0, %c0_i32_1 : i32, i32, i32, i32
  }
  func.func @transform_1(%arg0: i32) -> (i32, i32, i32) {
    %c0_i32 = arith.constant 0 : i32
    %c0_i32_0 = arith.constant 0 : i32
    %c0_i32_1 = arith.constant 0 : i32
    %c0_i32_2 = arith.constant 0 : i32
    return %c0_i32, %c0_i32_0, %c0_i32_1 : i32, i32, i32
  }
  func.func @transform_2(%arg0: i32) -> (i32, i32) {
    %c0_i32 = arith.constant 0 : i32
    %c0_i32_0 = arith.constant 0 : i32
    %c0_i32_1 = arith.constant 0 : i32
    return %c0_i32, %c0_i32_0 : i32, i32
  }
  func.func @transform_3(%arg0: i32) -> (i32, i32, i32, i32) {
    %c0_i32 = arith.constant 0 : i32
    %c0_i32_0 = arith.constant 0 : i32
    %c0_i32_1 = arith.constant 0 : i32
    %c0_i32_2 = arith.constant 0 : i32
    return %arg0, %c0_i32, %c0_i32_0, %c0_i32_1 : i32, i32, i32, i32
  }
}

module attributes {stable_mosaic.version = 11 : i64} {
  func.func @_conv3x3_s2_kernel(%arg0: i32, %arg1: memref<1x3x3x256xbf16, #tpu.memory_space<vmem>>, %arg2: memref<3x192x1xbf16, #tpu.memory_space<vmem>>, %arg3: memref<1x1xf32, #tpu.memory_space<vmem>>, %arg4: memref<1x2x2x1xf32, #tpu.memory_space<vmem>>) attributes {dimension_semantics = [#tpu.dimension_semantics<parallel>], iteration_bounds = array<i64: 2>, scalar_prefetch = 0 : i64, scratch_operands = 0 : i64, tpu.core_type = #tpu.core_type<tc>, window_params = [{transform_indices = @transform_0, window_bounds = array<i64: 1, 3, 3, 256>}, {pipeline_mode = #tpu.pipeline_mode<synchronous>, transform_indices = @transform_1, window_bounds = array<i64: 3, 192, 1>}, {pipeline_mode = #tpu.pipeline_mode<synchronous>, transform_indices = @transform_2, window_bounds = array<i64: 1, 1>}, {transform_indices = @transform_3, window_bounds = array<i64: 1, 2, 2, 1>}]} {
    %cst = arith.constant 0.000000e+00 : f32
    %0 = vector.broadcast %cst : f32 to vector<4x1xf32>
    %c0 = arith.constant 0 : index
    %c0_0 = arith.constant 0 : index
    %c0_1 = arith.constant 0 : index
    %c0_2 = arith.constant 0 : index
    %1 = vector.load %arg1[%c0, %c0_0, %c0_1, %c0_2] : memref<1x3x3x256xbf16, #tpu.memory_space<vmem>>, vector<1x2x2x128xbf16>
    %2 = vector.shape_cast %1 : vector<1x2x2x128xbf16> to vector<2x2x128xbf16>
    %3 = vector.shape_cast %2 : vector<2x2x128xbf16> to vector<4x128xbf16>
    %c0_3 = arith.constant 0 : index
    %c0_4 = arith.constant 0 : index
    %c0_5 = arith.constant 0 : index
    %4 = vector.load %arg2[%c0_3, %c0_4, %c0_5] : memref<3x192x1xbf16, #tpu.memory_space<vmem>>, vector<1x128x1xbf16>
    %5 = vector.shape_cast %4 : vector<1x128x1xbf16> to vector<128x1xbf16>
    %cst_6 = arith.constant dense<0.000000e+00> : vector<4x1xf32>
    %6 = tpu.matmul %3, %5, %cst_6 {dimension_numbers = #tpu.dot_dimension_numbers<[1], [0], [0], [1], [0, 0, 1, 1], [], []>} : vector<4x128xbf16>, vector<128x1xbf16>, vector<4x1xf32> -> vector<4x1xf32>
    %7 = arith.addf %0, %6 : vector<4x1xf32>
    %c0_7 = arith.constant 0 : index
    %c0_8 = arith.constant 0 : index
    %c1 = arith.constant 1 : index
    %c0_9 = arith.constant 0 : index
    %8 = vector.load %arg1[%c0_7, %c0_8, %c1, %c0_9] : memref<1x3x3x256xbf16, #tpu.memory_space<vmem>>, vector<1x2x2x64xbf16>
    %9 = vector.shape_cast %8 : vector<1x2x2x64xbf16> to vector<2x2x64xbf16>
    %10 = vector.shape_cast %9 : vector<2x2x64xbf16> to vector<4x64xbf16>
    %c0_10 = arith.constant 0 : index
    %c128 = arith.constant 128 : index
    %c0_11 = arith.constant 0 : index
    %11 = vector.load %arg2[%c0_10, %c128, %c0_11] : memref<3x192x1xbf16, #tpu.memory_space<vmem>>, vector<1x64x1xbf16>
    %12 = vector.shape_cast %11 : vector<1x64x1xbf16> to vector<64x1xbf16>
    %cst_12 = arith.constant dense<0.000000e+00> : vector<4x1xf32>
    %13 = tpu.matmul %10, %12, %cst_12 {dimension_numbers = #tpu.dot_dimension_numbers<[1], [0], [0], [1], [0, 0, 1, 1], [], []>} : vector<4x64xbf16>, vector<64x1xbf16>, vector<4x1xf32> -> vector<4x1xf32>
    %14 = arith.addf %7, %13 : vector<4x1xf32>
    %c0_13 = arith.constant 0 : index
    %c0_14 = arith.constant 0 : index
    %c0_15 = arith.constant 0 : index
    %c128_16 = arith.constant 128 : index
    %15 = vector.load %arg1[%c0_13, %c0_14, %c0_15, %c128_16] : memref<1x3x3x256xbf16, #tpu.memory_space<vmem>>, vector<1x2x2x128xbf16>
    %16 = vector.shape_cast %15 : vector<1x2x2x128xbf16> to vector<2x2x128xbf16>
    %17 = vector.shape_cast %16 : vector<2x2x128xbf16> to vector<4x128xbf16>
    %c1_17 = arith.constant 1 : index
    %c0_18 = arith.constant 0 : index
    %c0_19 = arith.constant 0 : index
    %18 = vector.load %arg2[%c1_17, %c0_18, %c0_19] : memref<3x192x1xbf16, #tpu.memory_space<vmem>>, vector<1x128x1xbf16>
    %19 = vector.shape_cast %18 : vector<1x128x1xbf16> to vector<128x1xbf16>
    %cst_20 = arith.constant dense<0.000000e+00> : vector<4x1xf32>
    %20 = tpu.matmul %17, %19, %cst_20 {dimension_numbers = #tpu.dot_dimension_numbers<[1], [0], [0], [1], [0, 0, 1, 1], [], []>} : vector<4x128xbf16>, vector<128x1xbf16>, vector<4x1xf32> -> vector<4x1xf32>
    %21 = arith.addf %14, %20 : vector<4x1xf32>
    %c0_21 = arith.constant 0 : index
    %c0_22 = arith.constant 0 : index
    %c1_23 = arith.constant 1 : index
    %c128_24 = arith.constant 128 : index
    %22 = vector.load %arg1[%c0_21, %c0_22, %c1_23, %c128_24] : memref<1x3x3x256xbf16, #tpu.memory_space<vmem>>, vector<1x2x2x64xbf16>
    %23 = vector.shape_cast %22 : vector<1x2x2x64xbf16> to vector<2x2x64xbf16>
    %24 = vector.shape_cast %23 : vector<2x2x64xbf16> to vector<4x64xbf16>
    %c1_25 = arith.constant 1 : index
    %c128_26 = arith.constant 128 : index
    %c0_27 = arith.constant 0 : index
    %25 = vector.load %arg2[%c1_25, %c128_26, %c0_27] : memref<3x192x1xbf16, #tpu.memory_space<vmem>>, vector<1x64x1xbf16>
    %26 = vector.shape_cast %25 : vector<1x64x1xbf16> to vector<64x1xbf16>
    %cst_28 = arith.constant dense<0.000000e+00> : vector<4x1xf32>
    %27 = tpu.matmul %24, %26, %cst_28 {dimension_numbers = #tpu.dot_dimension_numbers<[1], [0], [0], [1], [0, 0, 1, 1], [], []>} : vector<4x64xbf16>, vector<64x1xbf16>, vector<4x1xf32> -> vector<4x1xf32>
    %28 = arith.addf %21, %27 : vector<4x1xf32>
    %c0_29 = arith.constant 0 : index
    %c1_30 = arith.constant 1 : index
    %c0_31 = arith.constant 0 : index
    %c0_32 = arith.constant 0 : index
    %29 = vector.load %arg1[%c0_29, %c1_30, %c0_31, %c0_32] : memref<1x3x3x256xbf16, #tpu.memory_space<vmem>>, vector<1x2x2x128xbf16>
    %30 = vector.shape_cast %29 : vector<1x2x2x128xbf16> to vector<2x2x128xbf16>
    %31 = vector.shape_cast %30 : vector<2x2x128xbf16> to vector<4x128xbf16>
    %c2 = arith.constant 2 : index
    %c0_33 = arith.constant 0 : index
    %c0_34 = arith.constant 0 : index
    %32 = vector.load %arg2[%c2, %c0_33, %c0_34] : memref<3x192x1xbf16, #tpu.memory_space<vmem>>, vector<1x128x1xbf16>
    %33 = vector.shape_cast %32 : vector<1x128x1xbf16> to vector<128x1xbf16>
    %cst_35 = arith.constant dense<0.000000e+00> : vector<4x1xf32>
    %34 = tpu.matmul %31, %33, %cst_35 {dimension_numbers = #tpu.dot_dimension_numbers<[1], [0], [0], [1], [0, 0, 1, 1], [], []>} : vector<4x128xbf16>, vector<128x1xbf16>, vector<4x1xf32> -> vector<4x1xf32>
    %35 = arith.addf %28, %34 : vector<4x1xf32>
    %c0_36 = arith.constant 0 : index
    %c1_37 = arith.constant 1 : index
    %c1_38 = arith.constant 1 : index
    %c0_39 = arith.constant 0 : index
    %36 = vector.load %arg1[%c0_36, %c1_37, %c1_38, %c0_39] : memref<1x3x3x256xbf16, #tpu.memory_space<vmem>>, vector<1x2x2x64xbf16>
    %37 = vector.shape_cast %36 : vector<1x2x2x64xbf16> to vector<2x2x64xbf16>
    %38 = vector.shape_cast %37 : vector<2x2x64xbf16> to vector<4x64xbf16>
    %c2_40 = arith.constant 2 : index
    %c128_41 = arith.constant 128 : index
    %c0_42 = arith.constant 0 : index
    %39 = vector.load %arg2[%c2_40, %c128_41, %c0_42] : memref<3x192x1xbf16, #tpu.memory_space<vmem>>, vector<1x64x1xbf16>
    %40 = vector.shape_cast %39 : vector<1x64x1xbf16> to vector<64x1xbf16>
    %cst_43 = arith.constant dense<0.000000e+00> : vector<4x1xf32>
    %41 = tpu.matmul %38, %40, %cst_43 {dimension_numbers = #tpu.dot_dimension_numbers<[1], [0], [0], [1], [0, 0, 1, 1], [], []>} : vector<4x64xbf16>, vector<64x1xbf16>, vector<4x1xf32> -> vector<4x1xf32>
    %42 = arith.addf %35, %41 : vector<4x1xf32>
    %c0_44 = arith.constant 0 : index
    %c0_45 = arith.constant 0 : index
    %43 = vector.load %arg3[%c0_44, %c0_45] : memref<1x1xf32, #tpu.memory_space<vmem>>, vector<1x1xf32>
    %44 = vector.shape_cast %43 : vector<1x1xf32> to vector<1xf32>
    %45 = vector.shape_cast %44 : vector<1xf32> to vector<1x1xf32>
    %46 = vector.broadcast %45 : vector<1x1xf32> to vector<4x1xf32>
    %47 = arith.addf %42, %46 : vector<4x1xf32>
    %48 = vector.shape_cast %47 : vector<4x1xf32> to vector<2x2x1xf32>
    %c0_46 = arith.constant 0 : index
    %c0_47 = arith.constant 0 : index
    %c0_48 = arith.constant 0 : index
    %c0_49 = arith.constant 0 : index
    %49 = vector.load %arg4[%c0_46, %c0_47, %c0_48, %c0_49] : memref<1x2x2x1xf32, #tpu.memory_space<vmem>>, vector<1x2x2x1xf32>
    %50 = vector.shape_cast %49 : vector<1x2x2x1xf32> to vector<2x2x1xf32>
    %51 = vector.shape_cast %48 : vector<2x2x1xf32> to vector<1x2x2x1xf32>
    tpu.vector_store %arg4[%c0_46, %c0_47, %c0_48, %c0_49], %51 {strides = array<i32>} : memref<1x2x2x1xf32, #tpu.memory_space<vmem>>, vector<1x2x2x1xf32>,
    return
  }
  func.func @transform_0(%arg0: i32) -> (i32, i32, i32, i32) {
    %c0_i32 = arith.constant 0 : i32
    %c0_i32_0 = arith.constant 0 : i32
    %c0_i32_1 = arith.constant 0 : i32
    %c0_i32_2 = arith.constant 0 : i32
    return %arg0, %c0_i32, %c0_i32_0, %c0_i32_1 : i32, i32, i32, i32
  }
  func.func @transform_1(%arg0: i32) -> (i32, i32, i32) {
    %c0_i32 = arith.constant 0 : i32
    %c0_i32_0 = arith.constant 0 : i32
    %c0_i32_1 = arith.constant 0 : i32
    %c0_i32_2 = arith.constant 0 : i32
    return %c0_i32, %c0_i32_0, %c0_i32_1 : i32, i32, i32
  }
  func.func @transform_2(%arg0: i32) -> (i32, i32) {
    %c0_i32 = arith.constant 0 : i32
    %c0_i32_0 = arith.constant 0 : i32
    %c0_i32_1 = arith.constant 0 : i32
    return %c0_i32, %c0_i32_0 : i32, i32
  }
  func.func @transform_3(%arg0: i32) -> (i32, i32, i32, i32) {
    %c0_i32 = arith.constant 0 : i32
    %c0_i32_0 = arith.constant 0 : i32
    %c0_i32_1 = arith.constant 0 : i32
    %c0_i32_2 = arith.constant 0 : i32
    return %arg0, %c0_i32, %c0_i32_0, %c0_i32_1 : i32, i32, i32, i32
  }
}

</mosaic_0001>

<bundles_post_ra>
// kernel: fc_discriminator.5
= control target key start
LH: loop header
LB: loop body
LE: loop exit
PB: predicated region body
PF: predicated region fallthrough
CT: control target
= control target key end

     0   :  { %s1378_s12 = smov 0   ;;  %s1577_s0 = inlined_call_operand.vmem [shape: bf16[2,9,9,16], index: 0, kind: input, shape index: {}]   ;;  %s1578_s1 = inlined_call_operand.vmem [shape: bf16[3,12,64], index: 1, kind: input, shape index: {}]   ;;  %s1579_s2 = inlined_call_operand.vmem [shape: f32[1,64], index: 2, kind: input, shape index: {}]   ;;  %s1580_s3 = inlined_call_operand.vmem [shape: bf16[2,8,8,64], index: 3, kind: output, shape index: {}]  }
   0x1 LB: > { %s1155_s13 = sadd.s32 4294967295, %s1355_s12   ;;  %p1159_p0 = scmp.ge.s32.totalorder %s1355_s12, 1  ;;  %s1355_s12 = sphi %s1378_s12, %s13_s12  }
   0x2   : > { %p137_p1 = scmp.lt.s32.totalorder %s1355_s12, 3 }
   0x4   : > { %p138_p2 = pnand %p1159_p0, %p137_p1 }
   0x5   : > { %p161_p3 = scmp.lt.s32.totalorder (!%p138_p2), %s1155_s13, 1  ;;  %s1357_s26 = smov (!%p138_p2), 120  }
   0x6   : > { %141 = sbr.rel (%p138_p2) target bundleno = 382 (0x17e), region = 32 }
   0xb   : > { %v304_v0 = vld [vmem:[%s1578_s1 + $0x4] sm:$0x3]  ;;  %vm330_vm0 = vcmask 1041408   ;;  %v180_v1 = vld [vmem:[%s1578_s1] sm:$0xf]  ;;  %vm432_vm1 = vcmask 1043456  }
   0xc   : > { %s1584_s13 = smov (!%p161_p3, %s1155_s13), 1  ;;  %1325 = vmatprep.subr.msk.bf16.mxu0 %vm330_vm0, %v304_v0  ;;  %v332_v2 = vsel %vm330_vm0, %v304_v0, 0  ;;  %1326 = vmatprep.subr.msk.bf16.mxu1 %vm432_vm1, %v180_v1  ;;  %v434_v3 = vsel %vm432_vm1, %v180_v1, 0  ;;  %v1179_v4 = vld [vmem:[%s1578_s1 + $0x8] sm:$0xf]  ;;  %vm419_vm4 = vcmask 64512  }
   0xd   : > { %1266 = vmatpush3.bf16.msra.mxu0 %v332_v2  ;;  %1276 = vmatpush3.bf16.msra.mxu1 %v434_v3  ;;  %v1184_v5 = vld [vmem:[%s1578_s1 + $0xc] sm:$0x3]  ;;  %s1331_s22 = smul.u32 72, %s1584_s13  ;;  %vm189_vm2 = vsmask.f32 3328  ;;  %v1413_v6 = vsel %vm432_vm1, %v1179_v4, 0 }
   0xe   : > { %1327 = vmatprep.subr.msk.bf16.mxu0 %vm432_vm1, %v1179_v4  ;;  %1328 = vmatprep.subr.msk.bf16.mxu1 %vm330_vm0, %v1184_v5  ;;  %vm190_vm3 = vsmask.f32 7440  ;;  %v621_v7 = vsel %vm330_vm0, %v1184_v5, 0  ;;  %vm317_vm5 = vcmask 31744   ;;  %v1222_v3 = vld [vmem:[%s1578_s1 + $0x14] sm:$0x3] }
   0xf   : > { %s1410_s25 = scalar_lea.vmem %s1577_s0, %s1331_s22  ;;  %vm1430_vm6 = vmor %vm189_vm2, %vm190_vm3  ;;  %vm1091_vm7 = vcmask 519168   ;;  %s1234_s6 = sshll.u32 %s1584_s13, 5 }
  0x10   : > { %v172_v8 = vld [vmem:[%s1410_s25] sm:$0xf]  ;;  %v173_v9 = vld [vmem:[%s1410_s25 + $0x8] sm:$0xf]  ;;  %v174_v10 = vld [vmem:[%s1410_s25 + $0x10] sm:$0xf]  ;;  %s1550_s9 = scalar_lea.vmem %s1580_s3, %s1234_s6 }
  0x11   : > { %v207_v11 = vshrl.u32 %v173_v9, 16  ;;  %v210_v12 = vshll.u32 %v173_v9, 16  ;;  %v1171_v13 = vcombine.low %v172_v8, %v173_v9  ;;  %v193_v14 = vshrl.u32 %v172_v8, 16  ;;  %v175_v15 = vld [vmem:[%s1410_s25 + $0x18] sm:$0xf] }
  0x12   : > { %v196_v16 = vshll.u32 %v172_v8, 16  ;;  %v221_v17 = vshrl.u32 %v174_v10, 16  ;;  %v224_v18 = vshll.u32 %v174_v10, 16  ;;  %v235_v19 = vshrl.u32 %v175_v15, 16  ;;  %v181_v20 = vld [vmem:[%s1410_s25 + $0x4] sm:$0x1] }
  0x13   : > { %v209_v21 = vrot.slane %v207_v11, 4  ;;  %v212_v22 = vrot.slane %v210_v12, 5  ;;  %503 = vrot.lane.b32.xlu0 %v1171_v13, %s1357_s26  ;;  %v195_v23 = vrot.slane %v193_v14, 4  ;;  %v238_v24 = vshll.u32 %v175_v15, 16  ;;  %v182_v25 = vld [vmem:[%s1410_s25 + $0xc] sm:$0x1]  ;;  %1277 = vmatprep.mubr.msk.bf16.mxu1 %vm419_vm4, %v1171_v13 }
  0x14   : > { %v198_v26 = vrot.slane %v196_v16, 5  ;;  %v223_v27 = vrot.slane %v221_v17, 4  ;;  %v226_v28 = vrot.slane %v224_v18, 5  ;;  %v237_v29 = vrot.slane %v235_v19, 4  ;;  %v183_v30 = vld [vmem:[%s1410_s25 + $0x14] sm:$0x1] }
  0x15   : > { %v240_v31 = vrot.slane %v238_v24, 5  ;;  %v1172_v32 = vcombine.low %v174_v10, %v175_v15  ;;  %v202_v33 = vshll.u32 %v181_v20, 16  ;;  %v213_v34 = vor.u32 %v212_v22, %v209_v21  ;;  %v184_v35 = vld [vmem:[%s1410_s25 + $0x1c] sm:$0x1]  ;;  %v176_v40 = vld [vmem:[%s1410_s25 + $0x20] sm:$0xf] }
  0x16   : > { %v199_v36 = vor.u32 %v198_v26, %v195_v23  ;;  %v216_v37 = vshll.u32 %v182_v25, 16  ;;  %v227_v38 = vor.u32 %v226_v28, %v223_v27  ;;  %v230_v39 = vshll.u32 %v183_v30, 16  ;;  %v177_v46 = vld [vmem:[%s1410_s25 + $0x28] sm:$0xf]  ;;  %v178_v55 = vld [vmem:[%s1410_s25 + $0x30] sm:$0xf] }
  0x17   : > { %505 = vrot.lane.b32.xlu0 %v1172_v32, %s1357_s26  ;;  %v204_v42 = vrot.slane %v202_v33, 5  ;;  %v214_v43 = vrot.slane %v213_v34, 4  ;;  %v241_v44 = vor.u32 %v240_v31, %v237_v29  ;;  %v244_v45 = vshll.u32 %v184_v35, 16  ;;  %1278 = vmatmul.mubr.msk.bf16.vlgmr.msra.gmra.mxu1 %vm419_vm4, %v1172_v32  ;;  %v179_v60 = vld [vmem:[%s1410_s25 + $0x38] sm:$0xf] }
  0x18   : > { %v200_v47 = vrot.slane %v199_v36, 4  ;;  %v218_v48 = vrot.slane %v216_v37, 5  ;;  %v228_v49 = vrot.slane %v227_v38, 4  ;;  %v232_v50 = vrot.slane %v230_v39, 5  ;;  %1296 = vmatpush3.bf16.msra.mxu1 %v621_v7  ;;  %v185_v61 = vld [vmem:[%s1410_s25 + $0x24] sm:$0x1] }
  0x19   : > { %v242_v51 = vrot.slane %v241_v44, 4  ;;  %v246_v52 = vrot.slane %v244_v45, 5  ;;  %v249_v53 = vshrl.u32 %v176_v40, 16  ;;  %v252_v54 = vshll.u32 %v176_v40, 16  ;;  %v186_v2 = vld [vmem:[%s1410_s25 + $0x2c] sm:$0x1]  ;;  %1330 = vmatprep.subr.msk.bf16.mxu1 %vm330_vm0, %v1222_v3 }
  0x1a   : > { %v205_v56 = vsel %vm1430_vm6, %v200_v47, %v204_v42  ;;  %v219_v57 = vsel %vm1430_vm6, %v214_v43, %v218_v48  ;;  %v233_v58 = vsel %vm1430_vm6, %v228_v49, %v232_v50  ;;  %v263_v59 = vshrl.u32 %v177_v46, 16  ;;  %v187_v9 = vld [vmem:[%s1410_s25 + $0x34] sm:$0x1]  ;;  %v188_v10 = vld [vmem:[%s1410_s25 + $0x3c] sm:$0x1] }
  0x1b   : > { %v1163_v62 = vcombine.low %v205_v56, %v219_v57  ;;  %v247_v63 = vsel %vm1430_vm6, %v242_v51, %v246_v52  ;;  %v251_v0 = vrot.slane %v249_v53, 4  ;;  %v254_v1 = vrot.slane %v252_v54, 5  ;;  %v1197_v15 = vld [vmem:[%s1578_s1 + $0x10] sm:$0xf]  ;;  %v1206_v32 = vld [vmem:[%s1410_s25 + $0x8] sm:$0xf] }
  0x1c   : > { %v1164_v4 = vcombine.low %v233_v58, %v247_v63  ;;  %v265_v5 = vrot.slane %v263_v59, 4  ;;  %v266_v7 = vshll.u32 %v177_v46, 16  ;;  %v1173_v8 = vcombine.low %v176_v40, %v177_v46  ;;  %v1208_v37 = vld [vmem:[%s1410_s25 + $0x10] sm:$0xf]  ;;  %v1209_v43 = vld [vmem:[%s1410_s25 + $0x14] sm:$0x1] }
  0x1d   : > { %600 = vrot.lane.b32.xlu1 %v1163_v62, %s1357_s26  ;;  %v277_v11 = vshrl.u32 %v178_v55, 16  ;;  %v280_v12 = vshll.u32 %v178_v55, 16  ;;  %v291_v13 = vshrl.u32 %v179_v60, 16  ;;  %v294_v14 = vshll.u32 %v179_v60, 16  ;;  %1267 = vmatprep.mubr.msk.bf16.mxu0 %vm317_vm5, %v1163_v62  ;;  %v1210_v48 = vld [vmem:[%s1410_s25 + $0x18] sm:$0xf] }
  0x1e   : > { %v268_v16 = vrot.slane %v266_v7, 5  ;;  %507 = vrot.lane.b32.xlu0 %v1173_v8, %s1357_s26  ;;  %v1174_v17 = vcombine.low %v178_v55, %v179_v60  ;;  %v255_v18 = vor.u32 %v254_v1, %v251_v0  ;;  %v258_v19 = vshll.u32 %v185_v61, 16  ;;  %1268 = vmatmul.mubr.msk.bf16.vlgmr.msra.gmra.mxu0 %vm317_vm5, %v1164_v4  ;;  %v1211_v53 = vld [vmem:[%s1410_s25 + $0x1c] sm:$0x1]  ;;  %v1212_v54 = vld [vmem:[%s1410_s25 + $0x20] sm:$0xf] }
  0x1f   : > { %v279_v20 = vrot.slane %v277_v11, 4  ;;  %v282_v21 = vrot.slane %v280_v12, 5  ;;  %v293_v22 = vrot.slane %v291_v13, 4  ;;  %v296_v23 = vrot.slane %v294_v14, 5  ;;  %1286 = vmatpush3.bf16.msra.mxu0 %v1413_v6  ;;  %1281 = vmatprep.mubr.msk.bf16.mxu1 %vm419_vm4, %v1173_v8  ;;  %v1207_v6 = vld [vmem:[%s1410_s25 + $0xc] sm:$0x1] }
  0x20   : > { %v256_v24 = vrot.slane %v255_v18, 4  ;;  %v260_v25 = vrot.slane %v258_v19, 5  ;;  %v269_v26 = vor.u32 %v268_v16, %v265_v5  ;;  %v272_v27 = vshll.u32 %v186_v2, 16  ;;  %1282 = vmatmul.mubr.msk.bf16.gmra.mxu1 %vm419_vm4, %v1174_v17  ;;  %1329 = vmatprep.subr.msk.bf16.mxu0 %vm432_vm1, %v1197_v15  ;;  %v1213_v1 = vld [vmem:[%s1410_s25 + $0x24] sm:$0x1] }
  0x21   : > { %602 = vrot.lane.b32.xlu1 %v1164_v4, %s1357_s26  ;;  %v283_v28 = vor.u32 %v282_v21, %v279_v20  ;;  %v286_v29 = vshll.u32 %v187_v9, 16  ;;  %v297_v30 = vor.u32 %v296_v23, %v293_v22  ;;  %v300_v31 = vshll.u32 %v188_v10, 16  ;;  %v1214_v16 = vld [vmem:[%s1410_s25 + $0x28] sm:$0xf]  ;;  %v1215_v20 = vld [vmem:[%s1410_s25 + $0x2c] sm:$0x1] }
  0x22   : > { %v261_v33 = vsel %vm1430_vm6, %v256_v24, %v260_v25  ;;  %v270_v34 = vrot.slane %v269_v26, 4  ;;  %v274_v35 = vrot.slane %v272_v27, 5  ;;  %v1471_v36 = vsel %vm432_vm1, %v1197_v15, 0  ;;  %v1216_v21 = vld [vmem:[%s1410_s25 + $0x30] sm:$0xf] }
  0x23   : > { %v284_v38 = vrot.slane %v283_v28, 4  ;;  %v288_v39 = vrot.slane %v286_v29, 5  ;;  %v298_v40 = vrot.slane %v297_v30, 4  ;;  %v302_v42 = vrot.slane %v300_v31, 5  ;;  %v1217_v25 = vld [vmem:[%s1410_s25 + $0x34] sm:$0x1] }
  0x24   : > { %v275_v44 = vsel %vm1430_vm6, %v270_v34, %v274_v35  ;;  %v1478_v45 = vsel %vm330_vm0, %v1222_v3, 0  ;;  %v832_v46 = vshrl.u32 %v1206_v32, 16  ;;  %v835_v47 = vshll.u32 %v1206_v32, 16  ;;  %v1218_v32 = vld [vmem:[%s1410_s25 + $0x38] sm:$0xf] }
  0x25   : > { %509 = vrot.lane.b32.xlu1 %v1174_v17, %s1357_s26  ;;  %v1165_v49 = vcombine.low %v261_v33, %v275_v44  ;;  %v289_v50 = vsel %vm1430_vm6, %v284_v38, %v288_v39  ;;  %v303_v51 = vsel %vm1430_vm6, %v298_v40, %v302_v42  ;;  %v841_v52 = vshll.u32 %v1207_v6, 16  ;;  %v1345_v41 = vld [vmem:[%s1410_s25 + $0x8] ss:$8 sps:$4 sm:$0xff]  }
  0x26   : > { %v1166_v55 = vcombine.low %v289_v50, %v303_v51  ;;  %v834_v56 = vrot.slane %v832_v46, 4  ;;  %v837_v57 = vrot.slane %v835_v47, 5  ;;  %v846_v58 = vshrl.u32 %v1208_v37, 16  ;;  %v1221_v50 = vld [vmem:[%s1410_s25 + $0x44] sm:$0x1] }
  0x27   : > { %604 = vrot.lane.b32.xlu0 %v1165_v49, %s1357_s26  ;;  %1271 = vmatprep.mubr.msk.bf16.mxu0 %vm317_vm5, %v1165_v49  ;;  %v843_v59 = vrot.slane %v841_v52, 5  ;;  %v849_v60 = vshll.u32 %v1208_v37, 16  ;;  %v855_v61 = vshll.u32 %v1209_v43, 16  ;;  %v860_v62 = vshrl.u32 %v1210_v48, 16  ;;  %v1219_v37 = vld [vmem:[%s1410_s25 + $0x3c] sm:$0x1] }
  0x28   : > { %1272 = vmatmul.mubr.msk.bf16.gmra.mxu0 %vm317_vm5, %v1166_v55  ;;  %v838_v63 = vor.u32 %v837_v57, %v834_v56  ;;  %v848_v0 = vrot.slane %v846_v58, 4  ;;  %v863_v2 = vshll.u32 %v1210_v48, 16  ;;  %v869_v3 = vshll.u32 %v1211_v53, 16  ;;  %v1220_v43 = vld [vmem:[%s1410_s25 + $0x40] sm:$0xf] }
  0x29   : > { %606 = vrot.lane.b32.xlu1 %v1166_v55, %s1357_s26  ;;  %v851_v4 = vrot.slane %v849_v60, 5  ;;  %v862_v5 = vrot.slane %v860_v62, 4  ;;  %v874_v7 = vshrl.u32 %v1212_v54, 16  ;;  %v857_v9 = vrot.slane %v855_v61, 5 }
  0x2a   : > { %v839_v8 = vrot.slane %v838_v63, 4  ;;  %v865_v10 = vrot.slane %v863_v2, 5  ;;  %v877_v11 = vshll.u32 %v1212_v54, 16  ;;  %v871_v13 = vrot.slane %v869_v3, 5 }
  0x2b   : > { %v852_v12 = vor.u32 %v851_v4, %v848_v0  ;;  %v876_v14 = vrot.slane %v874_v7, 4  ;;  %v883_v15 = vshll.u32 %v1213_v1, 16  ;;  %v888_v22 = vshrl.u32 %v1214_v16, 16 }
  0x2c   : > { %v844_v17 = vsel %vm1430_vm6, %v839_v8, %v843_v59  ;;  %v866_v18 = vor.u32 %v865_v10, %v862_v5  ;;  %v879_v19 = vrot.slane %v877_v11, 5  ;;  %v891_v26 = vshll.u32 %v1214_v16, 16 }
  0x2d   : > { %v853_v23 = vrot.slane %v852_v12, 4  ;;  %v885_v24 = vrot.slane %v883_v15, 5  ;;  %v897_v27 = vshll.u32 %v1215_v20, 16  ;;  %v890_v30 = vrot.slane %v888_v22, 4  ;;  %v1347_v22 = vld [vmem:[%s1410_s25 + $0x28] ss:$8 sps:$4 sm:$0xff]  }
  0x2e   : > { %v867_v28 = vrot.slane %v866_v18, 4  ;;  %v880_v29 = vor.u32 %v879_v19, %v876_v14  ;;  %v902_v31 = vshrl.u32 %v1216_v21, 16  ;;  %v893_v33 = vrot.slane %v891_v26, 5 }
  0x2f   : > { %v858_v6 = vsel %vm1430_vm6, %v853_v23, %v857_v9  ;;  %v899_v34 = vrot.slane %v897_v27, 5  ;;  %v905_v35 = vshll.u32 %v1216_v21, 16  ;;  %v911_v47 = vshll.u32 %v1217_v25, 16  ;;  %v1346_v21 = vld [vmem:[%s1410_s25 + $0x18] ss:$8 sps:$4 sm:$0xff]  }
  0x30   : > { %v1223_v38 = vcombine.low %v844_v17, %v858_v6  ;;  %v872_v39 = vsel %vm1430_vm6, %v867_v28, %v871_v13  ;;  %v881_v40 = vrot.slane %v880_v29, 4  ;;  %v904_v42 = vrot.slane %v902_v31, 4 }
  0x31   : > { %v894_v44 = vor.u32 %v893_v33, %v890_v30  ;;  %v907_v46 = vrot.slane %v905_v35, 5  ;;  %v916_v48 = vshrl.u32 %v1218_v32, 16  ;;  %v919_v51 = vshll.u32 %v1218_v32, 16 }
  0x32   : > { %v886_v49 = vsel %vm1430_vm6, %v881_v40, %v885_v24  ;;  %v925_v52 = vshll.u32 %v1219_v37, 16  ;;  %v930_v53 = vshrl.u32 %v1220_v43, 16  ;;  %v913_v57 = vrot.slane %v911_v47, 5 }
  0x33   : > { %v1224_v54 = vcombine.low %v872_v39, %v886_v49  ;;  %v895_v55 = vrot.slane %v894_v44, 4  ;;  %v908_v56 = vor.u32 %v907_v46, %v904_v42  ;;  %v918_v58 = vrot.slane %v916_v48, 4 }
  0x34   : > { %v921_v59 = vrot.slane %v919_v51, 5  ;;  %v932_v60 = vrot.slane %v930_v53, 4  ;;  %v933_v63 = vshll.u32 %v1220_v43, 16  ;;  %v939_v0 = vshll.u32 %v1221_v50, 16 }
  0x35   : > { %v900_v61 = vsel %vm1430_vm6, %v895_v55, %v899_v34  ;;  %v909_v62 = vrot.slane %v908_v56, 4  ;;  %v927_v2 = vrot.slane %v925_v52, 5 }
  0x36   : > { %v922_v1 = vor.u32 %v921_v59, %v918_v58  ;;  %v935_v4 = vrot.slane %v933_v63, 5  ;;  %v941_v9 = vrot.slane %v939_v0, 5 }
  0x37   : > { %v914_v3 = vsel %vm1430_vm6, %v909_v62, %v913_v57 }
  0x38   : > { %v1225_v5 = vcombine.low %v900_v61, %v914_v3  ;;  %v923_v7 = vrot.slane %v922_v1, 4  ;;  %v936_v8 = vor.u32 %v935_v4, %v932_v60 }
  0x3a   : > { %v928_v10 = vsel %vm1430_vm6, %v923_v7, %v927_v2  ;;  %v937_v11 = vrot.slane %v936_v8, 4  ;;  %v1542_v8 = vld [vmem:[%s1579_s2] ss:$0 sm:$0xff] }
  0x3c   : > { %v942_v12 = vsel %vm1430_vm6, %v937_v11, %v941_v9 }
  0x3d   : > { %v1226_v13 = vcombine.low %v928_v10, %v942_v12 }
  0x85   : > { %v504_v14 = vpop.permute.xlu0 %503 }
  0x86   : > { %1287 = vmatprep.mubr.msk.bf16.mxu0 %vm419_vm4, %v504_v14 }
  0x89   : > { %v506_v15 = vpop.permute.xlu0 %505 }
  0x8a   : > { %1288 = vmatmul.mubr.msk.bf16.vlgmr.msra.gmra.mxu0 %vm419_vm4, %v506_v15 }
  0x8b   : > { %1306 = vmatpush3.bf16.msra.mxu0 %v1471_v36 }
  0x8f   : > { %v601_v16 = vpop.permute.xlu1 %600 }
  0x90   : > { %1297 = vmatprep.mubr.msk.bf16.mxu1 %vm317_vm5, %v601_v16  ;;  %v508_v17 = vpop.permute.xlu0 %507 }
  0x91   : > { %1291 = vmatprep.mubr.msk.bf16.mxu0 %vm419_vm4, %v508_v17 }
  0x93   : > { %v603_v18 = vpop.permute.xlu1 %602 }
  0x94   : > { %1298 = vmatmul.mubr.msk.bf16.vlgmr.msra.gmra.mxu1 %vm317_vm5, %v603_v18 }
  0x95   : > { %1316 = vmatpush3.bf16.msra.mxu1 %v1478_v45  ;;  %v1348_v45 = vld [vmem:[%s1410_s25 + $0x38] ss:$8 sps:$4 sm:$0xff]  }
  0x97   : > { %v510_v19 = vpop.permute.xlu1 %509 }
  0x98   : > { %1292 = vmatmul.mubr.msk.bf16.gmra.mxu0 %vm419_vm4, %v510_v19 }
  0x99   : > { %v605_v20 = vpop.permute.xlu0 %604  ;;  %1307 = vmatprep.mubr.msk.bf16.mxu0 %vm419_vm4, %v1345_v41 }
  0x9a   : > { %1301 = vmatprep.mubr.msk.bf16.mxu1 %vm317_vm5, %v605_v20 }
  0x9b   : > { %v607_v36 = vpop.permute.xlu1 %606 }
  0x9c   : > { %1302 = vmatmul.mubr.msk.bf16.gmra.mxu1 %vm317_vm5, %v607_v36 }
  0x9d   : > { %1317 = vmatprep.mubr.msk.bf16.mxu1 %vm317_vm5, %v1223_v38 }
  0xa0   : > { %1308 = vmatmul.mubr.msk.bf16.vlgmr.msra.gmra.mxu0 %vm419_vm4, %v1346_v21 }
  0xa1   : > { %1311 = vmatprep.mubr.msk.bf16.mxu0 %vm419_vm4, %v1347_v22 }
  0xa4   : > { %1318 = vmatmul.mubr.msk.bf16.vlgmr.msra.gmra.mxu1 %vm317_vm5, %v1224_v54 }
  0xa5   : > { %1321 = vmatprep.mubr.msk.bf16.mxu1 %vm317_vm5, %v1225_v5 }
  0xa8   : > { %1312 = vmatmul.mubr.msk.bf16.gmra.mxu0 %vm419_vm4, %v1348_v45 }
  0xac   : > { %1322 = vmatmul.mubr.msk.bf16.gmra.mxu1 %vm317_vm5, %v1226_v13 }
  0xd7   : > { %v1279_v26 = vpop.f32.mrf.mxu1 }
  0xd9   : > { %v470_v28 = vpop.f32.mrf.mxu1 }
  0xdb   : > { %v1280_v30 = vpop.f32.mrf.mxu1 }
  0xdd   : > { %v473_v32 = vpop.f32.mrf.mxu1 }
  0xde   : > { %v1269_v23 = vpop.f32.mrf.mxu0 }
  0xdf   : > { %v479_v53 = vadd.f32 %v1279_v26, %v1269_v23 }
  0xe0   : > { %v368_v24 = vpop.f32.mrf.mxu0  ;;  %v1283_v33 = vpop.f32.mrf.mxu1 }
  0xe1   : > { %v471_v56 = vadd.f32 %v470_v28, %v368_v24 }
  0xe2   : > { %v1270_v25 = vpop.f32.mrf.mxu0  ;;  %v486_v35 = vpop.f32.mrf.mxu1 }
  0xe3   : > { %v482_v62 = vadd.f32 %v1280_v30, %v1270_v25 }
  0xe4   : > { %v371_v27 = vpop.f32.mrf.mxu0  ;;  %v1284_v38 = vpop.f32.mrf.mxu1 }
  0xe5   : > { %v474_v3 = vadd.f32 %v473_v32, %v371_v27 }
  0xe6   : > { %v489_v40 = vpop.f32.mrf.mxu1 }
  0xe8   : > { %v1273_v29 = vpop.f32.mrf.mxu0 }
  0xe9   : > { %v495_v9 = vadd.f32 %v1283_v33, %v1273_v29 }
  0xea   : > { %v384_v31 = vpop.f32.mrf.mxu0 }
  0xeb   : > { %v487_v12 = vadd.f32 %v486_v35, %v384_v31 }
  0xec   : > { %v1274_v6 = vpop.f32.mrf.mxu0 }
  0xed   : > { %v498_v17 = vadd.f32 %v1284_v38, %v1274_v6 }
  0xee   : > { %v387_v34 = vpop.f32.mrf.mxu0 }
  0xef   : > { %v490_v20 = vadd.f32 %v489_v40, %v387_v34 }
 0x14a   : > { %v1289_v37 = vpop.f32.mrf.mxu0 }
 0x14b   : > { %v593_v57 = vadd.f32 %v1289_v37, %v479_v53 }
 0x14c   : > { %v560_v39 = vpop.f32.mrf.mxu0 }
 0x14d   : > { %v591_v60 = vadd.f32 %v560_v39, %v471_v56 }
 0x14e   : > { %v1290_v42 = vpop.f32.mrf.mxu0 }
 0x14f   : > { %v594_v4 = vadd.f32 %v1290_v42, %v482_v62 }
 0x150   : > { %v563_v44 = vpop.f32.mrf.mxu0 }
 0x151   : > { %v592_v13 = vadd.f32 %v563_v44, %v474_v3 }
 0x154   : > { %v1299_v43 = vpop.f32.mrf.mxu1 }
 0x155   : > { %v690_v61 = vadd.f32 %v1299_v43, %v593_v57 }
 0x156   : > { %v657_v46 = vpop.f32.mrf.mxu1 }
 0x157   : > { %v688_v1 = vadd.f32 %v657_v46, %v591_v60 }
 0x158   : > { %v1293_v47 = vpop.f32.mrf.mxu0  ;;  %v1300_v48 = vpop.f32.mrf.mxu1 }
 0x159   : > { %v691_v14 = vadd.f32 %v1300_v48, %v594_v4  ;;  %v597_v18 = vadd.f32 %v1293_v47, %v495_v9 }
 0x15a   : > { %v576_v49 = vpop.f32.mrf.mxu0  ;;  %v660_v50 = vpop.f32.mrf.mxu1 }
 0x15b   : > { %v595_v36 = vadd.f32 %v576_v49, %v487_v12  ;;  %v689_v21 = vadd.f32 %v660_v50, %v592_v13 }
 0x15c   : > { %v1294_v51 = vpop.f32.mrf.mxu0  ;;  %v1303_v52 = vpop.f32.mrf.mxu1 }
 0x15d   : > { %v694_v24 = vadd.f32 %v1303_v52, %v597_v18  ;;  %v598_v27 = vadd.f32 %v1294_v51, %v498_v17 }
 0x15e   : > { %v579_v54 = vpop.f32.mrf.mxu0  ;;  %v673_v55 = vpop.f32.mrf.mxu1 }
 0x15f   : > { %v692_v28 = vadd.f32 %v673_v55, %v595_v36  ;;  %v596_v35 = vadd.f32 %v579_v54, %v490_v20 }
 0x160   : > { %v1304_v58 = vpop.f32.mrf.mxu1  ;;  %v1309_v59 = vpop.f32.mrf.mxu0 }
 0x161   : > { %v809_v2 = vadd.f32 %v1309_v59, %v690_v61  ;;  %v695_v43 = vadd.f32 %v1304_v58, %v598_v27 }
 0x162   : > { %v676_v63 = vpop.f32.mrf.mxu1  ;;  %v776_v0 = vpop.f32.mrf.mxu0 }
 0x163   : > { %v807_v10 = vadd.f32 %v776_v0, %v688_v1  ;;  %v693_v52 = vadd.f32 %v676_v63, %v596_v35 }
 0x164   : > { %v1310_v5 = vpop.f32.mrf.mxu0  ;;  %v1319_v7 = vpop.f32.mrf.mxu1 }
 0x165   : > { %v1038_v11 = vadd.f32 %v1319_v7, %v809_v2  ;;  %v810_v22 = vadd.f32 %v1310_v5, %v691_v14 }
 0x166   : > { %v779_v15 = vpop.f32.mrf.mxu0  ;;  %v1005_v16 = vpop.f32.mrf.mxu1 }
 0x167   : > { %v1053_v41 = vadd.f32 %v1542_v8, %v1038_v11  ;;  %v1036_v19 = vadd.f32 %v1005_v16, %v807_v10  ;;  %v808_v29 = vadd.f32 %v779_v15, %v689_v21 }
 0x168   : > { %v1313_v45 = vpop.f32.mrf.mxu0  ;;  %v1320_v23 = vpop.f32.mrf.mxu1 }
 0x169   : > { %vm1061_vm8 = vcmp.gt.f32.partialorder %v1053_v41, 0.0  ;;  %v1069_v25 = vmul.f32 0.2, %v1053_v41  ;;  %v1051_v26 = vadd.f32 %v1542_v8, %v1036_v19  ;;  %v1039_v30 = vadd.f32 %v1320_v23, %v810_v22 }
 0x16a   : > { %v792_v31 = vpop.f32.mrf.mxu0  ;;  %v1008_v32 = vpop.f32.mrf.mxu1  ;;  %v813_v34 = vadd.f32 %v1313_v45, %v694_v24 }
 0x16b   : > { %v1077_v6 = vsel %vm1061_vm8, %v1053_v41, %v1069_v25  ;;  %vm1059_vm9 = vcmp.gt.f32.partialorder %v1051_v26, 0.0  ;;  %v1067_v33 = vmul.f32 0.2, %v1051_v26  ;;  %v1054_v38 = vadd.f32 %v1542_v8, %v1039_v30 }
 0x16c   : > { %v1085_v37 = vpack.c.bf16 %v1077_v6, %v1077_v6  ;;  %v1037_v39 = vadd.f32 %v1008_v32, %v808_v29  ;;  %v1314_v40 = vpop.f32.mrf.mxu0  ;;  %v1323_v42 = vpop.f32.mrf.mxu1  ;;  %v811_v46 = vadd.f32 %v792_v31, %v692_v28 }
 0x16d   : > { %v1075_v44 = vsel %vm1059_vm9, %v1051_v26, %v1067_v33  ;;  %v1042_v47 = vadd.f32 %v1323_v42, %v813_v34  ;;  %vm1062_vm10 = vcmp.gt.f32.partialorder %v1054_v38, 0.0  ;;  %v1070_v49 = vmul.f32 0.2, %v1054_v38 }
 0x16e   : > { %1094 = vst.msk [vmem:[%s1550_s9 + $0x8] sm:$0xf] %vm1091_vm7, %v1085_v37  ;;  %v1083_v48 = vpack.c.bf16 %v1075_v44, %v1075_v44  ;;  %v1052_v50 = vadd.f32 %v1542_v8, %v1037_v39  ;;  %v1021_v51 = vpop.f32.mrf.mxu1  ;;  %v795_v54 = vpop.f32.mrf.mxu0  ;;  %v814_v58 = vadd.f32 %v1314_v40, %v695_v43 }
 0x16f   : > { %v1057_v53 = vadd.f32 %v1542_v8, %v1042_v47  ;;  %v1040_v55 = vadd.f32 %v1021_v51, %v811_v46  ;;  %v1078_v56 = vsel %vm1062_vm10, %v1054_v38, %v1070_v49  ;;  %v812_v0 = vadd.f32 %v795_v54, %v693_v52 }
 0x170   : > { %1092 = vst.msk [vmem:[%s1550_s9] sm:$0xf] %vm1091_vm7, %v1083_v48  ;;  %vm1060_vm11 = vcmp.gt.f32.partialorder %v1052_v50, 0.0  ;;  %v1068_v57 = vmul.f32 0.2, %v1052_v50  ;;  %v1324_v59 = vpop.f32.mrf.mxu1  ;;  %v1086_v60 = vpack.c.bf16 %v1078_v56, %v1078_v56 }
 0x171   : > { %vm1065_vm12 = vcmp.gt.f32.partialorder %v1057_v53, 0.0  ;;  %v1073_v61 = vmul.f32 0.2, %v1057_v53  ;;  %v1055_v62 = vadd.f32 %v1542_v8, %v1040_v55  ;;  %v1043_v1 = vadd.f32 %v1324_v59, %v814_v58 }
 0x172   : > { %v1076_v63 = vsel %vm1060_vm11, %v1052_v50, %v1068_v57  ;;  %v1024_v2 = vpop.f32.mrf.mxu1  ;;  %1095 = vst.msk [vmem:[%s1550_s9 + $0xc] sm:$0xf] %vm1091_vm7, %v1086_v60 }
 0x173   : > { %v1084_v3 = vpack.c.bf16 %v1076_v63, %v1076_v63  ;;  %v1081_v4 = vsel %vm1065_vm12, %v1057_v53, %v1073_v61  ;;  %vm1063_vm13 = vcmp.gt.f32.partialorder %v1055_v62, 0.0  ;;  %v1071_v5 = vmul.f32 0.2, %v1055_v62 }
 0x174   : > { %v1089_v7 = vpack.c.bf16 %v1081_v4, %v1081_v4  ;;  %v1058_v9 = vadd.f32 %v1542_v8, %v1043_v1  ;;  %v1041_v10 = vadd.f32 %v1024_v2, %v812_v0 }
 0x175   : > { %1093 = vst.msk [vmem:[%s1550_s9 + $0x4] sm:$0xf] %vm1091_vm7, %v1084_v3  ;;  %v1079_v11 = vsel %vm1063_vm13, %v1055_v62, %v1071_v5 }
 0x176   : > { %1098 = vst.msk [vmem:[%s1550_s9 + $0x18] sm:$0xf] %vm1091_vm7, %v1089_v7  ;;  %v1087_v12 = vpack.c.bf16 %v1079_v11, %v1079_v11  ;;  %vm1066_vm14 = vcmp.gt.f32.partialorder %v1058_v9, 0.0  ;;  %v1074_v13 = vmul.f32 0.2, %v1058_v9  ;;  %v1056_v14 = vadd.f32 %v1542_v8, %v1041_v10 }
 0x178   : > { %1096 = vst.msk [vmem:[%s1550_s9 + $0x10] sm:$0xf] %vm1091_vm7, %v1087_v12  ;;  %v1082_v15 = vsel %vm1066_vm14, %v1058_v9, %v1074_v13  ;;  %vm1064_vm15 = vcmp.gt.f32.partialorder %v1056_v14, 0.0  ;;  %v1072_v16 = vmul.f32 0.2, %v1056_v14 }
 0x179   : > { %v1090_v17 = vpack.c.bf16 %v1082_v15, %v1082_v15 }
 0x17a   : > { %v1080_v18 = vsel %vm1064_vm15, %v1056_v14, %v1072_v16 }
 0x17b   : > { %1099 = vst.msk [vmem:[%s1550_s9 + $0x1c] sm:$0xf] %vm1091_vm7, %v1090_v17  ;;  %v1088_v41 = vpack.c.bf16 %v1080_v18, %v1080_v18 }
 0x17d   : > { %1097 = vst.msk [vmem:[%s1550_s9 + $0x14] sm:$0xf] %vm1091_vm7, %v1088_v41 }
 0x17e PF: > { %s13_s12 = sadd.s32 1, %s1355_s12  }
 0x17f   : > { %p10_p4 = scmp.ge.s32.totalorder %s13_s12, 4  }
 0x181   :  { %12 = sbr.rel (!%p10_p4) target bundleno = 1 (0x1), region = 65 }

// kernel: fc_discriminator.7
= control target key start
LH: loop header
LB: loop body
LE: loop exit
PB: predicated region body
PF: predicated region fallthrough
CT: control target
= control target key end

     0   :  { %s1578_s12 = smov 0   ;;  %s1840_s0 = inlined_call_operand.vmem [shape: bf16[2,5,5,256], index: 0, kind: input, shape index: {}]   ;;  %s1841_s1 = inlined_call_operand.vmem [shape: bf16[3,192,64], index: 1, kind: input, shape index: {}]   ;;  %s1842_s2 = inlined_call_operand.vmem [shape: f32[1,64], index: 2, kind: input, shape index: {}]   ;;  %s1843_s3 = inlined_call_operand.vmem [shape: bf16[2,4,4,64], index: 3, kind: output, shape index: {}]  }
   0x1 LB: > { %s1236_s13 = sadd.s32 4294967295, %s1553_s12   ;;  %p1240_p0 = scmp.ge.s32.totalorder %s1553_s12, 1  ;;  %s1553_s12 = sphi %s1578_s12, %s13_s12  }
   0x2   : > { %p137_p1 = scmp.lt.s32.totalorder %s1553_s12, 3 }
   0x4   : > { %p138_p2 = pnand %p1240_p0, %p137_p1 }
   0x5   : > { %p161_p3 = scmp.lt.s32.totalorder (!%p138_p2), %s1236_s13, 1 }
   0x6   : > { %141 = sbr.rel (%p138_p2) target bundleno = 312 (0x138), region = 32 }
   0xb   : > { %v1505_v0 = vld [vmem:[%s1841_s1 + $0x38] sm:$0xff]   ;;  %v1555_v1 = vmov 0.0   ;;  %v1507_v3 = vld [vmem:[%s1841_s1 + $0x30] sm:$0xff]   ;;  %vm1556_vm0 = vmmov 0   ;;  %s1851_s13 = smov (!%p161_p3, %s1236_s13), 1  ;;  %v1509_v5 = vld [vmem:[%s1841_s1 + $0x28] sm:$0xff]   ;;  %v308_v17 = vlaneseq }
   0xc   : > { %1409 = vmatprep.subr.bf16.mxu1 %v1555_v1  ;;  %1397 = vmatprep.subr.bf16.mxu0 %v1555_v1  ;;  %v1506_v2 = vld [vmem:[%s1841_s1 + $0x58] sm:$0xff]   ;;  %v1508_v4 = vld [vmem:[%s1841_s1 + $0x50] sm:$0xff]   ;;  %s1493_s24 = smul.u32 40, %s1851_s13  ;;  %v1510_v6 = vld [vmem:[%s1841_s1 + $0x48] sm:$0xff]   ;;  %vm232_vm1 = vsmask.f32 1280 }
   0xd   : > { %1410 = vmatpush3.bf16.msra.mxu1 %v1505_v0  ;;  %1405 = vmatprep.mubr.msk.bf16.mxu0 %vm1556_vm0, %v1555_v1  ;;  %v1511_v7 = vld [vmem:[%s1841_s1 + $0x20] sm:$0xff]   ;;  %vm233_vm2 = vsmask.f32 3336  ;;  %vm235_vm3 = vsmask.f32 5392  ;;  %v1513_v18 = vld [vmem:[%s1841_s1 + $0x18] sm:$0xff]  }
   0xe   : > { %1411 = vmatprep.subr.bf16.mxu1 %v1555_v1  ;;  %1398 = vmatpush3.bf16.msra.mxu0 %v1506_v2  ;;  %s1623_s4 = scalar_lea.vmem %s1840_s0, %s1493_s24  ;;  %v1512_v8 = vld [vmem:[%s1841_s1 + $0x40] sm:$0xff]   ;;  %vm1634_vm4 = vmor %vm232_vm1, %vm233_vm2  ;;  %vm237_vm5 = vsmask.f32 7448  ;;  %v1514_v40 = vld [vmem:[%s1841_s1 + $0x10] sm:$0xff]   ;;  %v309_v48 = vshrl.u32 %v308_v17, 7  ;;  %vm344_vm8 = vcmask 523264  }
   0xf   : > { %1399 = vmatprep.subr.bf16.mxu0 %v1555_v1  ;;  %1425 = vmatprep.mubr.msk.bf16.mxu1 %vm1556_vm0, %v1555_v1  ;;  %v1244_v9 = vld.sshfl [vmem:[%s1623_s4] sm:$0x13 pattern:$0x76325410]  ;;  %vm1645_vm6 = vmor %vm1634_vm4, %vm235_vm3  ;;  %v1557_v52 = vmov 1983009808  }
  0x10   : > { %v1245_v10 = vld.sshfl [vmem:[%s1623_s4 + $0x8] sm:$0x13 pattern:$0x76325410]  ;;  %v207_v11 = vcombine.high %v1244_v9, %v1244_v9  ;;  %v240_v20 = vshrl.u32 %v1244_v9, 16  ;;  %v243_v21 = vshll.u32 %v1244_v9, 16  ;;  %vm1656_vm7 = vmor %vm1645_vm6, %vm237_vm5  ;;  %v306_v53 = vunpack.c.l.s4 %v1557_v52 }
  0x11   : > { %1412 = vmatpush3.bf16.msra.mxu1 %v1507_v3  ;;  %v1246_v12 = vld.sshfl [vmem:[%s1623_s4 + $0x10] sm:$0x13 pattern:$0x76325410]  ;;  %v215_v13 = vcombine.high %v1245_v10, %v1245_v10  ;;  %v254_v23 = vshrl.u32 %v1245_v10, 16  ;;  %v257_v24 = vshll.u32 %v1245_v10, 16 }
  0x12   : > { %1413 = vmatprep.subr.bf16.mxu1 %v1555_v1  ;;  %1400 = vmatpush3.bf16.msra.mxu0 %v1508_v4  ;;  %v1247_v14 = vld.sshfl [vmem:[%s1623_s4 + $0x18] sm:$0x13 pattern:$0x76325410]  ;;  %v223_v15 = vcombine.high %v1246_v12, %v1246_v12  ;;  %v249_v22 = vshll.u32 %v207_v11, 16  ;;  %v268_v26 = vshrl.u32 %v1246_v12, 16  ;;  %v307_v59 = vunpack.c.0.s8 %v306_v53 }
  0x13   : > { %1401 = vmatprep.subr.bf16.mxu0 %v1555_v1  ;;  %v231_v19 = vcombine.high %v1247_v14, %v1247_v14  ;;  %v263_v25 = vshll.u32 %v215_v13, 16  ;;  %v242_v28 = vrot.slane %v240_v20, 6  ;;  %v245_v29 = vrot.slane %v243_v21, 7  ;;  %v1516_v60 = vld [vmem:[%s1841_s1 + $0x8] sm:$0xff]   ;;  %v1518_v3 = vld [vmem:[%s1841_s1] sm:$0xff]   ;;  %v1515_v11 = vld [vmem:[%s1841_s1 + $0x98] sm:$0xff]  }
  0x14   : > { %v251_v30 = vrot.slane %v249_v22, 7  ;;  %v271_v31 = vshll.u32 %v1246_v12, 16  ;;  %v256_v32 = vrot.slane %v254_v23, 6  ;;  %v259_v33 = vrot.slane %v257_v24, 7  ;;  %v1524_v13 = vld [vmem:[%s1841_s1 + $0xb8] sm:$0xff]   ;;  %v1526_v16 = vld [vmem:[%s1841_s1 + $0xb0] sm:$0xff]  }
  0x15   : > { %1414 = vmatpush3.bf16.msra.mxu1 %v1509_v5  ;;  %v265_v34 = vrot.slane %v263_v25, 7  ;;  %v270_v35 = vrot.slane %v268_v26, 6  ;;  %v246_v36 = vor.u32 %v245_v29, %v242_v28  ;;  %v277_v38 = vshll.u32 %v223_v15, 16  ;;  %v1520_v2 = vld [vmem:[%s1623_s4] ss:$8 sps:$4 sm:$0x33]  }
  0x16   : > { %1415 = vmatprep.subr.bf16.mxu1 %v1555_v1  ;;  %1402 = vmatpush3.bf16.msra.mxu0 %v1510_v6  ;;  %v273_v37 = vrot.slane %v271_v31, 7  ;;  %v282_v39 = vshrl.u32 %v1247_v14, 16  ;;  %v260_v42 = vor.u32 %v259_v33, %v256_v32  ;;  %v285_v43 = vshll.u32 %v1247_v14, 16  ;;  %v1521_v4 = vld [vmem:[%s1623_s4 + $0x10] ss:$8 sps:$4 sm:$0x33]  }
  0x17   : > { %1403 = vmatprep.subr.bf16.mxu0 %v1555_v1  ;;  %v291_v44 = vshll.u32 %v231_v19, 16  ;;  %v247_v45 = vrot.slane %v246_v36, 2  ;;  %v279_v50 = vrot.slane %v277_v38, 7  ;;  %v1676_v0 = vsub.s32 %v307_v59, %v309_v48  ;;  %v1517_v15 = vld [vmem:[%s1841_s1 + $0x90] sm:$0xff]   ;;  %v1519_v17 = vld [vmem:[%s1841_s1 + $0x88] sm:$0xff]   ;;  %v1522_v24 = vld [vmem:[%s1841_s1 + $0x80] sm:$0xff]  }
  0x18   : > { %v274_v46 = vor.u32 %v273_v37, %v270_v35  ;;  %v284_v47 = vrot.slane %v282_v39, 6  ;;  %v261_v49 = vrot.slane %v260_v42, 2  ;;  %v287_v51 = vrot.slane %v285_v43, 7  ;;  %v1530_v33 = vld [vmem:[%s1841_s1 + $0xa0] sm:$0xff]   ;;  %v1541_v41 = vld [vmem:[%s1841_s1 + $0x108] sm:$0xff]   ;;  %s1354_s18 = sshll.u32 %s1851_s13, 3 }
  0x19   : > { %1416 = vmatpush3.bf16.msra.mxu1 %v1511_v7  ;;  %v252_v54 = vsel %vm1656_vm7, %v247_v45, %v251_v30  ;;  %v293_v58 = vrot.slane %v291_v44, 7  ;;  %v401_v6 = vrot.slane %v1520_v2, %v1676_v0  ;;  %v408_v9 = vrot.slane %v1521_v4, %v1676_v0  ;;  %v1285_v19 = vld.sshfl [vmem:[%s1623_s4 + $0x4] sm:$0x13 pattern:$0x76325410] }
  0x1a   : > { %1417 = vmatprep.subr.bf16.mxu1 %v1555_v1  ;;  %1404 = vmatpush3.bf16.msra.mxu0 %v1512_v8  ;;  %v275_v55 = vrot.slane %v274_v46, 2  ;;  %v1665_v56 = vsel %vm1656_vm7, %v261_v49, %v265_v34  ;;  %v288_v57 = vor.u32 %v287_v51, %v284_v47  ;;  %v1286_v20 = vld.sshfl [vmem:[%s1623_s4 + $0xc] sm:$0x13 pattern:$0x76325410]  ;;  %v649_v21 = vcombine.high %v1285_v19, %v1285_v19  ;;  %v1523_v51 = vld [vmem:[%s1841_s1 + $0x78] sm:$0xff]  }
  0x1b   : > { %1429 = vmatprep.subr.bf16.mxu0 %v1555_v1  ;;  %v303_v61 = vcombine.low %v252_v54, %v1665_v56  ;;  %v409_v12 = vcombine.low %v401_v6, %v408_v9  ;;  %v675_v22 = vshrl.u32 %v1285_v19, 16  ;;  %v678_v23 = vshll.u32 %v1285_v19, 16  ;;  %v1287_v25 = vld.sshfl [vmem:[%s1623_s4 + $0x14] sm:$0x13 pattern:$0x76325410] }
  0x1c   : > { %v1674_v62 = vsel %vm1656_vm7, %v275_v55, %v279_v50  ;;  %v289_v63 = vrot.slane %v288_v57, 2  ;;  %v657_v26 = vcombine.high %v1286_v20, %v1286_v20  ;;  %v689_v27 = vshrl.u32 %v1286_v20, 16  ;;  %v1288_v29 = vld.sshfl [vmem:[%s1623_s4 + $0x1c] sm:$0x13 pattern:$0x76325410] }
  0x1d   : > { %1418 = vmatpush3.bf16.msra.mxu1 %v1513_v18  ;;  %v311_v8 = vrot.slane %v303_v61, %v1676_v0  ;;  %v1528_v18 = vld [vmem:[%s1841_s1 + $0xa8] sm:$0xff]   ;;  %v692_v28 = vshll.u32 %v1286_v20, 16  ;;  %v665_v30 = vcombine.high %v1287_v25, %v1287_v25  ;;  %v677_v31 = vrot.slane %v675_v22, 6  ;;  %v1532_v6 = vld [vmem:[%s1623_s4 + $0x14] ss:$8 sps:$4 sm:$0x33]  }
  0x1e   : > { %1419 = vmatprep.subr.bf16.mxu1 %v1555_v1  ;;  %v1685_v5 = vsel %vm1656_vm7, %v289_v63, %v293_v58  ;;  %v680_v32 = vrot.slane %v678_v23, 7  ;;  %v673_v34 = vcombine.high %v1288_v29, %v1288_v29  ;;  %v684_v35 = vshll.u32 %v649_v21, 16  ;;  %v1525_v63 = vld [vmem:[%s1841_s1 + $0x70] sm:$0xff]   ;;  %v1531_v4 = vld [vmem:[%s1623_s4 + $0x4] ss:$8 sps:$4 sm:$0x33]  }
  0x1f   : > { %v304_v7 = vcombine.low %v1674_v62, %v1685_v5  ;;  %v691_v36 = vrot.slane %v689_v27, 6  ;;  %v694_v37 = vrot.slane %v692_v28, 7  ;;  %v698_v39 = vshll.u32 %v657_v26, 16  ;;  %v1529_v26 = vld [vmem:[%s1841_s1 + $0x60] sm:$0xff]   ;;  %v1537_v27 = vld [vmem:[%s1841_s1 + $0x118] sm:$0xff]  }
  0x20   : > { %v681_v38 = vor.u32 %v680_v32, %v677_v31  ;;  %v706_v42 = vshll.u32 %v1287_v25, 16  ;;  %v686_v43 = vrot.slane %v684_v35, 7  ;;  %v712_v45 = vshll.u32 %v665_v30, 16  ;;  %v1546_v28 = vld [vmem:[%s1623_s4 + $0x18] ss:$8 sps:$4 sm:$0x33]  }
  0x21   : > { %1420 = vmatpush3.bf16.msra.mxu1 %v1514_v40  ;;  %v318_v10 = vrot.slane %v304_v7, %v1676_v0  ;;  %v703_v40 = vshrl.u32 %v1287_v25, 16  ;;  %v695_v44 = vor.u32 %v694_v37, %v691_v36  ;;  %v717_v46 = vshrl.u32 %v1288_v29, 16  ;;  %v1545_v25 = vld [vmem:[%s1623_s4 + $0x8] ss:$8 sps:$4 sm:$0x33]   ;;  %v1533_v36 = vld [vmem:[%s1841_s1 + $0xf8] sm:$0xff]  }
  0x22   : > { %1421 = vmatprep.subr.bf16.mxu1 %v1555_v1  ;;  %v682_v47 = vrot.slane %v681_v38, 2  ;;  %v700_v48 = vrot.slane %v698_v39, 7  ;;  %v708_v50 = vrot.slane %v706_v42, 7  ;;  %v720_v54 = vshll.u32 %v1288_v29, 16  ;;  %v1539_v37 = vld [vmem:[%s1841_s1 + $0x110] sm:$0xff]  }
  0x23   : > { %v319_v14 = vcombine.low %v311_v8, %v318_v10  ;;  %v705_v49 = vrot.slane %v703_v40, 6  ;;  %v696_v52 = vrot.slane %v695_v44, 2  ;;  %v719_v53 = vrot.slane %v717_v46, 6  ;;  %v1543_v44 = vld [vmem:[%s1841_s1 + $0x100] sm:$0xff]   ;;  %v1538_v46 = vld [vmem:[%s1841_s1 + $0xd8] sm:$0xff]  }
  0x24   : > { %v687_v55 = vsel %vm1656_vm7, %v682_v47, %v686_v43  ;;  %v726_v58 = vshll.u32 %v673_v34, 16  ;;  %v722_v61 = vrot.slane %v720_v54, 7  ;;  %v533_v19 = vrot.slane %v1531_v4, %v1676_v0  ;;  %v1534_v43 = vld [vmem:[%s1841_s1 + $0xf0] sm:$0xff]  }
  0x25   : > { %1422 = vmatpush3.bf16.msra.mxu1 %v1516_v60  ;;  %1406 = vmatmul.mubr.msk.bf16.vlgmr.msra.gmra.mxu0 %vm344_vm8, %v319_v14  ;;  %v709_v57 = vor.u32 %v708_v50, %v705_v49  ;;  %v701_v59 = vsel %vm1656_vm7, %v696_v52, %v700_v48  ;;  %v714_v60 = vrot.slane %v712_v45, 7  ;;  %v1337_v14 = vld.sshfl [vmem:[%s1623_s4 + $0x20] sm:$0x13 pattern:$0x76325410]  ;;  %v540_v20 = vrot.slane %v1532_v6, %v1676_v0  ;;  %v1540_v47 = vld [vmem:[%s1841_s1 + $0xd0] sm:$0xff]   ;;  %s170_s4 = scalar_lea.vmem %s1843_s3, %s1354_s18 }
  0x26   : > { %1423 = vmatprep.subr.bf16.mxu1 %v1555_v1  ;;  %1430 = vmatpush3.bf16.msra.mxu0 %v1515_v11  ;;  %v723_v7 = vor.u32 %v722_v61, %v719_v53  ;;  %v738_v8 = vcombine.low %v687_v55, %v701_v59  ;;  %v1527_v11 = vld [vmem:[%s1841_s1 + $0x68] sm:$0xff]   ;;  %v859_v32 = vrot.slane %v1545_v25, %v1676_v0  ;;  %v1544_v49 = vld [vmem:[%s1841_s1 + $0xc0] sm:$0xff]   ;;  %vm1176_vm10 = vcmask 517120  }
  0x27   : > { %1431 = vmatprep.subr.bf16.mxu0 %v1555_v1  ;;  %1445 = vmatprep.mubr.msk.bf16.mxu0 %vm1556_vm0, %v1555_v1  ;;  %v710_v2 = vrot.slane %v709_v57, 2  ;;  %v541_v34 = vcombine.low %v533_v19, %v540_v20  ;;  %v1064_v40 = vcombine.low %v1665_v56, %v1674_v62  ;;  %v1542_v48 = vld [vmem:[%s1841_s1 + $0xc8] sm:$0xff]  }
  0x28   : > { %v724_v10 = vrot.slane %v723_v7, 2 }
  0x29   : > { %1424 = vmatpush3.bf16.msra.mxu1 %v1518_v3  ;;  %v728_v3 = vrot.slane %v726_v58, 7  ;;  %v715_v9 = vsel %vm1656_vm7, %v710_v2, %v714_v60  ;;  %v1072_v56 = vrot.slane %v1064_v40, %v1676_v0 }
  0x2a   : > { %1449 = vmatprep.subr.bf16.mxu1 %v1555_v1  ;;  %1432 = vmatpush3.bf16.msra.mxu0 %v1517_v15 }
  0x2b   : > { %1433 = vmatprep.subr.bf16.mxu0 %v1555_v1 }
  0x2c   : > { %1426 = vmatmul.mubr.bf16.vlgmr.msra.gmra.mxu1 %v409_v12  ;;  %v729_v12 = vsel %vm1656_vm7, %v724_v10, %v728_v3 }
  0x2d   : > { %1450 = vmatpush3.bf16.msra.mxu1 %v1524_v13  ;;  %1457 = vmatprep.mubr.msk.bf16.mxu1 %vm1556_vm0, %v1555_v1  ;;  %v746_v13 = vrot.slane %v738_v8, %v1676_v0  ;;  %v739_v15 = vcombine.low %v715_v9, %v729_v12 }
  0x2e   : > { %1451 = vmatprep.subr.bf16.mxu1 %v1555_v1  ;;  %1434 = vmatpush3.bf16.msra.mxu0 %v1519_v17  ;;  %v1043_v17 = vshrl.u32 %v1337_v14, 16 }
  0x2f   : > { %1435 = vmatprep.subr.bf16.mxu0 %v1555_v1  ;;  %v753_v21 = vrot.slane %v739_v15, %v1676_v0 }
  0x30   : > { %v1045_v22 = vrot.slane %v1043_v17, 6  ;;  %v1351_v17 = vld [vmem:[%s1842_s2] ss:$0 sm:$0xff] }
  0x31   : > { %1452 = vmatpush3.bf16.msra.mxu1 %v1526_v16  ;;  %v999_v16 = vcombine.high %v1337_v14, %v1337_v14  ;;  %v754_v29 = vcombine.low %v746_v13, %v753_v21 }
  0x32   : > { %1453 = vmatprep.subr.bf16.mxu1 %v1555_v1  ;;  %1436 = vmatpush3.bf16.msra.mxu0 %v1522_v24 }
  0x33   : > { %1437 = vmatprep.subr.bf16.mxu0 %v1555_v1  ;;  %v1052_v24 = vshll.u32 %v999_v16, 16 }
  0x35   : > { %1454 = vmatpush3.bf16.msra.mxu1 %v1528_v18  ;;  %v1046_v18 = vshll.u32 %v1337_v14, 16  ;;  %v1054_v31 = vrot.slane %v1052_v24, 7 }
  0x36   : > { %1455 = vmatprep.subr.bf16.mxu1 %v1555_v1  ;;  %1438 = vmatpush3.bf16.msra.mxu0 %v1523_v51 }
  0x37   : > { %1439 = vmatprep.subr.bf16.mxu0 %v1555_v1  ;;  %v1048_v23 = vrot.slane %v1046_v18, 7 }
  0x39   : > { %1456 = vmatpush3.bf16.msra.mxu1 %v1530_v33  ;;  %v1049_v30 = vor.u32 %v1048_v23, %v1045_v22  ;;  %v866_v33 = vrot.slane %v1546_v28, %v1676_v0 }
  0x3a   : > { %1481 = vmatprep.subr.bf16.mxu1 %v1555_v1  ;;  %1440 = vmatpush3.bf16.msra.mxu0 %v1525_v63 }
  0x3b   : > { %1441 = vmatprep.subr.bf16.mxu0 %v1555_v1  ;;  %v1050_v35 = vrot.slane %v1049_v30, 2  ;;  %v867_v38 = vcombine.low %v859_v32, %v866_v33 }
  0x3c   : > { %1458 = vmatmul.mubr.msk.bf16.vlgmr.msra.gmra.mxu1 %vm344_vm8, %v754_v29 }
  0x3d   : > { %1482 = vmatpush3.bf16.msra.mxu1 %v1537_v27  ;;  %v1055_v39 = vsel %vm1656_vm7, %v1050_v35, %v1054_v31  ;;  %1489 = vmatprep.mubr.msk.bf16.mxu1 %vm1556_vm0, %v1555_v1 }
  0x3e   : > { %1442 = vmatpush3.bf16.msra.mxu0 %v1527_v11  ;;  %1483 = vmatprep.subr.bf16.mxu1 %v1555_v1  ;;  %v1065_v42 = vcombine.low %v1685_v5, %v1055_v39  ;;  %v1535_v5 = vld [vmem:[%s1841_s1 + $0xe8] sm:$0xff]  }
  0x3f   : > { %1443 = vmatprep.subr.bf16.mxu0 %v1555_v1 }
  0x40   : > { %v1079_v62 = vrot.slane %v1065_v42, %v1676_v0  ;;  %v1536_v0 = vld [vmem:[%s1841_s1 + $0xe0] sm:$0xff]  }
  0x41   : > { %1484 = vmatpush3.bf16.msra.mxu1 %v1539_v37 }
  0x42   : > { %1444 = vmatpush3.bf16.msra.mxu0 %v1529_v26  ;;  %1485 = vmatprep.subr.bf16.mxu1 %v1555_v1  ;;  %v1080_v45 = vcombine.low %v1072_v56, %v1079_v62 }
  0x43   : > { %1461 = vmatprep.subr.bf16.mxu0 %v1555_v1 }
  0x45   : > { %1446 = vmatmul.mubr.bf16.vlgmr.msra.gmra.mxu0 %v541_v34  ;;  %1486 = vmatpush3.bf16.msra.mxu1 %v1541_v41 }
  0x46   : > { %1462 = vmatpush3.bf16.msra.mxu0 %v1533_v36  ;;  %1477 = vmatprep.mubr.msk.bf16.mxu0 %vm1556_vm0, %v1555_v1 }
  0x47   : > { %1463 = vmatprep.subr.bf16.mxu0 %v1555_v1  ;;  %1487 = vmatprep.subr.bf16.mxu1 %v1555_v1 }
  0x49   : > { %1488 = vmatpush3.bf16.msra.mxu1 %v1543_v44 }
  0x4a   : > { %1464 = vmatpush3.bf16.msra.mxu0 %v1534_v43 }
  0x4b   : > { %1465 = vmatprep.subr.bf16.mxu0 %v1555_v1 }
  0x4c   : > { %1490 = vmatmul.mubr.msk.bf16.vlgmr.msra.gmra.mxu1 %vm344_vm8, %v1080_v45 }
  0x4e   : > { %1466 = vmatpush3.bf16.msra.mxu0 %v1535_v5 }
  0x4f   : > { %1467 = vmatprep.subr.bf16.mxu0 %v1555_v1 }
  0x52   : > { %1468 = vmatpush3.bf16.msra.mxu0 %v1536_v0 }
  0x53   : > { %1469 = vmatprep.subr.bf16.mxu0 %v1555_v1 }
  0x56   : > { %1470 = vmatpush3.bf16.msra.mxu0 %v1538_v46 }
  0x57   : > { %1471 = vmatprep.subr.bf16.mxu0 %v1555_v1 }
  0x5a   : > { %1472 = vmatpush3.bf16.msra.mxu0 %v1540_v47 }
  0x5b   : > { %1473 = vmatprep.subr.bf16.mxu0 %v1555_v1 }
  0x5e   : > { %1474 = vmatpush3.bf16.msra.mxu0 %v1542_v48 }
  0x5f   : > { %1475 = vmatprep.subr.bf16.mxu0 %v1555_v1 }
  0x62   : > { %1476 = vmatpush3.bf16.msra.mxu0 %v1544_v49 }
  0x65   : > { %1478 = vmatmul.mubr.bf16.vlgmr.msra.gmra.mxu0 %v867_v38 }
  0xe5   : > { %v382_v50 = vpop.f32.mrf.mxu0 }
  0xe7   : > { %v1407_v52 = vpop.f32.mrf.mxu0 }
  0xe9   : > { %v385_v54 = vpop.f32.mrf.mxu0 }
  0xeb   : > { %v1408_v57 = vpop.f32.mrf.mxu0 }
  0xec   : > { %v493_v51 = vpop.f32.mrf.mxu1 }
  0xed   : > { %v494_v10 = vadd.f32 %v493_v51, %v382_v50 }
  0xee   : > { %v1427_v53 = vpop.f32.mrf.mxu1 }
  0xf0   : > { %v496_v55 = vpop.f32.mrf.mxu1 }
  0xf1   : > { %v497_v12 = vadd.f32 %v496_v55, %v385_v54 }
  0xf2   : > { %v1428_v58 = vpop.f32.mrf.mxu1 }
  0xfc   : > { %v816_v59 = vpop.f32.mrf.mxu1 }
  0xfe   : > { %v1459_v60 = vpop.f32.mrf.mxu1 }
 0x100   : > { %v819_v63 = vpop.f32.mrf.mxu1 }
 0x102   : > { %v1460_v3 = vpop.f32.mrf.mxu1 }
 0x105   : > { %v625_v61 = vpop.f32.mrf.mxu0 }
 0x106   : > { %v632_v11 = vadd.f32 %v625_v61, %v494_v10 }
 0x107   : > { %v1447_v2 = vpop.f32.mrf.mxu0 }
 0x108   : > { %v823_v13 = vadd.f32 %v816_v59, %v632_v11 }
 0x109   : > { %v628_v4 = vpop.f32.mrf.mxu0 }
 0x10a   : > { %v633_v14 = vadd.f32 %v628_v4, %v497_v12 }
 0x10b   : > { %v1448_v6 = vpop.f32.mrf.mxu0 }
 0x10c   : > { %v1142_v7 = vpop.f32.mrf.mxu1  ;;  %v824_v19 = vadd.f32 %v819_v63, %v633_v14 }
 0x10e   : > { %v1491_v1 = vpop.f32.mrf.mxu1 }
 0x110   : > { %v1145_v8 = vpop.f32.mrf.mxu1 }
 0x112   : > { %v1492_v9 = vpop.f32.mrf.mxu1 }
 0x125   : > { %v951_v15 = vpop.f32.mrf.mxu0 }
 0x126   : > { %v958_v16 = vadd.f32 %v951_v15, %v823_v13 }
 0x127   : > { %v1479_v18 = vpop.f32.mrf.mxu0 }
 0x128   : > { %v1149_v20 = vadd.f32 %v1142_v7, %v958_v16 }
 0x129   : > { %v954_v21 = vpop.f32.mrf.mxu0 }
 0x12a   : > { %v1158_v22 = vadd.f32 %v1351_v17, %v1149_v20  ;;  %v959_v23 = vadd.f32 %v954_v21, %v824_v19 }
 0x12b   : > { %v1480_v24 = vpop.f32.mrf.mxu0 }
 0x12c   : > { %vm1160_vm9 = vcmp.gt.f32.partialorder %v1158_v22, 0.0  ;;  %v1162_v25 = vmul.f32 0.2, %v1158_v22  ;;  %v1150_v26 = vadd.f32 %v1145_v8, %v959_v23 }
 0x12e   : > { %v1164_v27 = vsel %vm1160_vm9, %v1158_v22, %v1162_v25  ;;  %v1159_v28 = vadd.f32 %v1351_v17, %v1150_v26 }
 0x12f   : > { %v1168_v29 = vcombine.high %v1164_v27, %v1164_v27  ;;  %v1172_v30 = vpack.c.bf16 %v1164_v27, %v1164_v27 }
 0x130   : > { %vm1161_vm11 = vcmp.gt.f32.partialorder %v1159_v28, 0.0  ;;  %v1163_v31 = vmul.f32 0.2, %v1159_v28 }
 0x131   : > { %v1173_v32 = vpack.c.bf16 %v1168_v29, %v1168_v29  ;;  %1177 = vst.msk [vmem:[%s170_s4] sm:$0x3] %vm1176_vm10, %v1172_v30 }
 0x132   : > { %v1165_v33 = vsel %vm1161_vm11, %v1159_v28, %v1163_v31 }
 0x133   : > { %1178 = vst.msk [vmem:[%s170_s4 + $0x2] sm:$0x3] %vm1176_vm10, %v1173_v32  ;;  %v1169_v34 = vcombine.high %v1165_v33, %v1165_v33  ;;  %v1174_v35 = vpack.c.bf16 %v1165_v33, %v1165_v33 }
 0x135   : > { %v1175_v36 = vpack.c.bf16 %v1169_v34, %v1169_v34  ;;  %1179 = vst.msk [vmem:[%s170_s4 + $0x4] sm:$0x3] %vm1176_vm10, %v1174_v35 }
 0x137   : > { %1180 = vst.msk [vmem:[%s170_s4 + $0x6] sm:$0x3] %vm1176_vm10, %v1175_v36 }
 0x138 PF: > { %s13_s12 = sadd.s32 1, %s1553_s12  }
 0x139   : > { %p10_p4 = scmp.ge.s32.totalorder %s13_s12, 4  }
 0x13b   :  { %12 = sbr.rel (!%p10_p4) target bundleno = 1 (0x1), region = 65 }

// kernel: fc_discriminator.6
= control target key start
LH: loop header
LB: loop body
LE: loop exit
PB: predicated region body
PF: predicated region fallthrough
CT: control target
= control target key end

     0   :  { %s2744_s12 = smov 0   ;;  %s3341_s0 = inlined_call_operand.vmem [shape: bf16[2,8,8,64], index: 0, kind: input, shape index: {}]   ;;  %s3342_s1 = inlined_call_operand.vmem [shape: bf16[3,192,64], index: 1, kind: input, shape index: {}]   ;;  %s3343_s2 = inlined_call_operand.vmem [shape: f32[1,64], index: 2, kind: input, shape index: {}]   ;;  %s3344_s3 = inlined_call_operand.vmem [shape: bf16[2,8,8,64], index: 3, kind: output, shape index: {}]  }
   0x1 LB: > { %s2240_s13 = sadd.s32 4294967295, %s2721_s12   ;;  %p2244_p0 = scmp.ge.s32.totalorder %s2721_s12, 1  ;;  %s2721_s12 = sphi %s2744_s12, %s13_s12  }
   0x2   : > { %p137_p1 = scmp.lt.s32.totalorder %s2721_s12, 3 }
   0x4   : > { %p138_p2 = pnand %p2244_p0, %p137_p1 }
   0x6   : > { %141 = sbr.rel (%p138_p2) target bundleno = 351 (0x15f), region = 32 }
   0xb   : > { %v2667_v0 = vld [vmem:[%s3342_s1 + $0x18] sm:$0xff]   ;;  %p161_p3 = scmp.lt.s32.totalorder %s2240_s13, 1  ;;  %v2668_v1 = vld [vmem:[%s3342_s1 + $0x10] sm:$0xff]   ;;  %vm172_vm0 = vcmask 519168   ;;  %v2670_v3 = vld [vmem:[%s3342_s1 + $0x8] sm:$0xff]   ;;  %v2723_v5 = vmov 0  }
   0xc   : > { %2522 = vmatprep.subr.bf16.mxu1 %v2667_v0  ;;  %v2669_v2 = vld [vmem:[%s3342_s1 + $0x38] sm:$0xff]   ;;  %v2671_v4 = vld [vmem:[%s3342_s1 + $0x30] sm:$0xff]   ;;  %173 = vst.msk [vmem:[#allocation2] sm:$0xf] %vm172_vm0, %v2723_v5  ;;  %177 = vst.msk [vmem:[#allocation2 + $0x48] sm:$0xf] %vm172_vm0, %v2723_v5 }
   0xd   : > { %s3364_s13 = smov (!%p161_p3, %s2240_s13), 1  ;;  %2523 = vmatpush3.bf16.msra.mxu1 %v2667_v0  ;;  %2506 = vmatprep.subr.bf16.mxu0 %v2669_v2  ;;  %vm174_vm1 = vcmask 516096   ;;  %v2673_v6 = vld [vmem:[%s3342_s1 + $0x28] sm:$0xff]   ;;  %v2672_v7 = vld [vmem:[%s3342_s1] sm:$0xff]   ;;  %vm180_vm2 = vsmask.f32 256 }
   0xe   : > { %2524 = vmatprep.subr.bf16.mxu1 %v2668_v1  ;;  %s2432_s24 = sshll.u32 %s3364_s13, 5  ;;  %2507 = vmatpush3.bf16.msra.mxu0 %v2669_v2  ;;  %178 = vst.msk [vmem:[#allocation2 + $0x4c] sm:$0x1] %vm174_vm1, %v2723_v5  ;;  %175 = vst.msk [vmem:[#allocation2 + $0x4] sm:$0x1] %vm174_vm1, %v2723_v5  ;;  %v2818_v31 = vld [vmem:[%s3342_s1 + $0x78] sm:$0xff]  }
   0xf   : > { %s2777_s27 = scalar_lea.vmem %s3341_s0, %s2432_s24  ;;  %2508 = vmatprep.subr.bf16.mxu0 %v2671_v4  ;;  %v185_v8 = vld [vmem:[#allocation2 + $0x8] sm:$0x1]  ;;  %vm2788_vm3 = vmand %vm174_vm1, %vm180_vm2  ;;  %vm212_vm4 = vsmask.f32 7938  ;;  %v188_v11 = vld [vmem:[#allocation2 + $0x10] sm:$0x1]  ;;  %s3320_s21 = scalar_lea.vmem %s3344_s3, %s2432_s24 }
  0x10   : > { %v244_v10 = vld [vmem:[%s2777_s27] sm:$0xf]  ;;  %v186_v12 = vsel %vm2788_vm3, 0, %v185_v8  ;;  %v189_v14 = vsel %vm2788_vm3, 0, %v188_v11  ;;  %v191_v15 = vld [vmem:[#allocation2 + $0x18] sm:$0x1]  ;;  %vm2807_vm5 = vmand %vm174_vm1, %vm212_vm4 }
  0x11   : > { %2525 = vmatpush3.bf16.msra.mxu1 %v2668_v1  ;;  %v253_v13 = vshrl.u32 %v244_v10, 16  ;;  %187 = vst [vmem:[#allocation2 + $0x8] sm:$0x1] %v186_v12  ;;  %v256_v16 = vshll.u32 %v244_v10, 16  ;;  %190 = vst [vmem:[#allocation2 + $0x10] sm:$0x1] %v189_v14 }
  0x12   : > { %2526 = vmatprep.subr.bf16.mxu1 %v2670_v3  ;;  %2509 = vmatpush3.bf16.msra.mxu0 %v2671_v4  ;;  %v192_v17 = vsel %vm2788_vm3, 0, %v191_v15  ;;  %v245_v18 = vld [vmem:[%s2777_s27 + $0x4] sm:$0xf]  ;;  %v246_v19 = vld [vmem:[%s2777_s27 + $0x8] sm:$0xf]  ;;  %vm2828_vm6 = vmand %vm172_vm0, %vm212_vm4  ;;  %vm566_vm7 = vcmask 523264  }
  0x13   : > { %2510 = vmatprep.subr.bf16.mxu0 %v2673_v6  ;;  %v182_v20 = vld [vmem:[#allocation2] sm:$0x1]  ;;  %v2801_v21 = vrot.slane %v253_v13, 7  ;;  %193 = vst [vmem:[#allocation2 + $0x18] sm:$0x1] %v192_v17  ;;  %v261_v22 = vshrl.u32 %v245_v18, 16 }
  0x14   : > { %v264_v23 = vshll.u32 %v245_v18, 16  ;;  %v269_v24 = vshrl.u32 %v246_v19, 16  ;;  %v183_v25 = vsel %vm2788_vm3, 0, %v182_v20  ;;  %v272_v26 = vshll.u32 %v246_v19, 16  ;;  %v2677_v34 = vld [vmem:[%s3342_s1 + $0x20] sm:$0xff]   ;;  %v2848_v48 = vld [vmem:[%s3342_s1 + $0x58] sm:$0xff]  }
  0x15   : > { %2527 = vmatpush3.bf16.msra.mxu1 %v2670_v3  ;;  %184 = vst [vmem:[#allocation2] sm:$0x1] %v183_v25  ;;  %v241_v28 = vld [vmem:[#allocation2 + $0x4c] sm:$0x1]  ;;  %v2811_v29 = vrot.slane %v261_v22, 7  ;;  %v258_v33 = vor.u32 %v256_v16, %v2801_v21  ;;  %v259_v57 = vrot.slane %v2801_v21, 4 }
  0x16   : > { %2528 = vmatprep.subr.bf16.mxu1 %v2672_v7  ;;  %2511 = vmatpush3.bf16.msra.mxu0 %v2673_v6  ;;  %v2813_v30 = vrot.slane %v269_v24, 7  ;;  %v242_v32 = vsel %vm2807_vm5, 0, %v241_v28  ;;  %v214_v38 = vld [vmem:[#allocation2 + $0x4] sm:$0x1]  ;;  %v217_v39 = vld [vmem:[#allocation2 + $0xc] sm:$0x1] }
  0x17   : > { %243 = vst [vmem:[#allocation2 + $0x4c] sm:$0x1] %v242_v32  ;;  %v266_v36 = vor.u32 %v264_v23, %v2811_v29  ;;  %2512 = vmatprep.subr.bf16.mxu0 %v2677_v34  ;;  %v215_v42 = vsel %vm2807_vm5, 0, %v214_v38  ;;  %v218_v43 = vsel %vm2807_vm5, 0, %v217_v39  ;;  %v220_v50 = vld [vmem:[#allocation2 + $0x14] sm:$0x1] }
  0x18   : > { %v274_v37 = vor.u32 %v272_v26, %v2813_v30  ;;  %v335_v40 = vld [vmem:[#allocation2 + $0x8] sm:$0xf]  ;;  %v341_v41 = vld [vmem:[#allocation2 + $0x10] sm:$0xf]  ;;  %216 = vst [vmem:[#allocation2 + $0x4] sm:$0x1] %v215_v42 }
  0x19   : > { %2529 = vmatpush3.bf16.msra.mxu1 %v2672_v7  ;;  %v336_v44 = vsel %vm2828_vm6, %v258_v33, %v335_v40  ;;  %v342_v45 = vsel %vm2828_vm6, %v266_v36, %v341_v41  ;;  %219 = vst [vmem:[#allocation2 + $0xc] sm:$0x1] %v218_v43  ;;  %v223_v51 = vld [vmem:[#allocation2 + $0x1c] sm:$0x1]  ;;  %v221_v54 = vsel %vm2807_vm5, 0, %v220_v50  ;;  %v267_v2 = vrot.slane %v2811_v29, 4 }
  0x1a   : > { %2554 = vmatprep.subr.bf16.mxu1 %v2818_v31  ;;  %2513 = vmatpush3.bf16.msra.mxu0 %v2677_v34  ;;  %v347_v46 = vld [vmem:[#allocation2 + $0x18] sm:$0xf]  ;;  %337 = vst [vmem:[#allocation2 + $0x8] sm:$0xf] %v336_v44  ;;  %343 = vst [vmem:[#allocation2 + $0x10] sm:$0xf] %v342_v45 }
  0x1b   : > { %v348_v47 = vsel %vm2828_vm6, %v274_v37, %v347_v46  ;;  %2538 = vmatprep.subr.bf16.mxu0 %v2848_v48  ;;  %v224_v55 = vsel %vm2807_vm5, 0, %v223_v51  ;;  %v194_v56 = vld [vmem:[#allocation2 + $0x20] sm:$0x1]  ;;  %222 = vst [vmem:[#allocation2 + $0x14] sm:$0x1] %v221_v54  ;;  %v275_v3 = vrot.slane %v2813_v30, 4 }
  0x1c   : > { %v383_v49 = vld [vmem:[#allocation2] sm:$0xf]  ;;  %349 = vst [vmem:[#allocation2 + $0x18] sm:$0xf] %v348_v47  ;;  %225 = vst [vmem:[#allocation2 + $0x1c] sm:$0x1] %v224_v55 }
  0x1d   : > { %v411_v52 = vshrl.u32 %v383_v49, 16  ;;  %v414_v53 = vshll.u32 %v383_v49, 16  ;;  %v195_v58 = vsel %vm2788_vm3, 0, %v194_v56  ;;  %v197_v59 = vld [vmem:[#allocation2 + $0x28] sm:$0x1]  ;;  %v2678_v25 = vld [vmem:[%s3342_s1 + $0x70] sm:$0xff]  }
  0x1e   : > { %v247_v60 = vld [vmem:[%s2777_s27 + $0xc] sm:$0xf]  ;;  %vm407_vm8 = vsmask.f32 3328  ;;  %196 = vst [vmem:[#allocation2 + $0x20] sm:$0x1] %v195_v58 }
  0x1f   : > { %v413_v61 = vrot.slane %v411_v52, 4  ;;  %v416_v62 = vrot.slane %v414_v53, 5  ;;  %v198_v63 = vsel %vm2788_vm3, 0, %v197_v59  ;;  %v2862_v0 = vld [vmem:[%s2777_s27 + $0x10] sm:$0xf]  ;;  %v277_v1 = vshrl.u32 %v247_v60, 16 }
  0x20   : > { %vm408_vm9 = vsmask.f32 7440  ;;  %199 = vst [vmem:[#allocation2 + $0x28] sm:$0x1] %v198_v63  ;;  %v200_v4 = vld [vmem:[#allocation2 + $0x30] sm:$0x1] }
  0x21   : > { %v338_v5 = vld [vmem:[#allocation2 + $0xc] sm:$0x1]  ;;  %v2866_v6 = vld [vmem:[#allocation2 + $0x4] sm:$0x1]  ;;  %v280_v7 = vshll.u32 %v247_v60, 16  ;;  %v201_v8 = vsel %vm2788_vm3, 0, %v200_v4  ;;  %v417_v13 = vor.u32 %v416_v62, %v413_v61  ;;  %vm2903_vm10 = vmor %vm407_vm8, %vm408_vm9 }
  0x22   : > { %v384_v10 = vld [vmem:[#allocation2 + $0x8] sm:$0xf]  ;;  %v385_v11 = vld [vmem:[#allocation2 + $0x10] sm:$0xf]  ;;  %v339_v12 = vsel %vm2788_vm3, %v259_v57, %v338_v5  ;;  %v2872_v14 = vrot.slane %v277_v1, 7  ;;  %v285_v15 = vshrl.u32 %v2862_v0, 16 }
  0x23   : > { %202 = vst [vmem:[#allocation2 + $0x30] sm:$0x1] %v201_v8  ;;  %v425_v16 = vshrl.u32 %v384_v10, 16  ;;  %v428_v17 = vshll.u32 %v384_v10, 16  ;;  %v2261_v18 = vcombine.low %v383_v49, %v384_v10  ;;  %v386_v19 = vld [vmem:[#allocation2 + $0x18] sm:$0xf] }
  0x24   : > { %v439_v20 = vshrl.u32 %v385_v11, 16  ;;  %340 = vst [vmem:[#allocation2 + $0xc] sm:$0x1] %v339_v12  ;;  %v442_v21 = vshll.u32 %v385_v11, 16  ;;  %v453_v22 = vshrl.u32 %v386_v19, 16  ;;  %v456_v23 = vshll.u32 %v386_v19, 16 }
  0x25   : > { %v2262_v24 = vcombine.low %v385_v11, %v386_v19  ;;  %v427_v26 = vrot.slane %v425_v16, 4  ;;  %v430_v28 = vrot.slane %v428_v17, 5  ;;  %2530 = vmatprep.mubr.msk.bf16.mxu1 %vm566_vm7, %v2261_v18  ;;  %v420_v29 = vshll.u32 %v2866_v6, 16  ;;  %v344_v30 = vld [vmem:[#allocation2 + $0x14] sm:$0x1]  ;;  %v2684_v62 = vld [vmem:[%s3342_s1 + $0x60] sm:$0xff]  }
  0x26   : > { %v288_v32 = vshll.u32 %v2862_v0, 16  ;;  %v441_v33 = vrot.slane %v439_v20, 4  ;;  %v444_v34 = vrot.slane %v442_v21, 5  ;;  %v350_v36 = vld [vmem:[#allocation2 + $0x1c] sm:$0x1]  ;;  %v345_v39 = vsel %vm2788_vm3, %v267_v2, %v344_v30 }
  0x27   : > { %2531 = vmatmul.mubr.msk.bf16.vlgmr.msra.gmra.mxu1 %vm566_vm7, %v2262_v24  ;;  %v203_v37 = vld [vmem:[#allocation2 + $0x38] sm:$0x1]  ;;  %v431_v38 = vor.u32 %v430_v28, %v427_v26  ;;  %v351_v40 = vsel %vm2788_vm3, %v275_v3, %v350_v36  ;;  %v282_v41 = vor.u32 %v280_v7, %v2872_v14  ;;  %v353_v42 = vld [vmem:[#allocation2 + $0x20] sm:$0xf]  ;;  %v249_v43 = vld [vmem:[%s2777_s27 + $0x14] sm:$0xf] }
  0x28   : > { %2555 = vmatpush3.bf16.msra.mxu1 %v2818_v31  ;;  %v455_v44 = vrot.slane %v453_v22, 4  ;;  %v458_v45 = vrot.slane %v456_v23, 5  ;;  %v418_v46 = vrot.slane %v417_v13, 4  ;;  %346 = vst [vmem:[#allocation2 + $0x14] sm:$0x1] %v345_v39  ;;  %v2682_v31 = vld [vmem:[%s3342_s1 + $0x68] sm:$0xff]   ;;  %v445_v60 = vor.u32 %v444_v34, %v441_v33 }
  0x29   : > { %2556 = vmatprep.subr.bf16.mxu1 %v2678_v25  ;;  %352 = vst [vmem:[#allocation2 + $0x1c] sm:$0x1] %v351_v40  ;;  %v422_v47 = vrot.slane %v420_v29, 5  ;;  %v2892_v49 = vrot.slane %v285_v15, 7  ;;  %v354_v50 = vsel %vm2828_vm6, %v282_v41, %v353_v42  ;;  %v204_v51 = vsel %vm2788_vm3, 0, %v203_v37  ;;  %v2934_v23 = vld [vmem:[%s3342_s1 + $0xb8] sm:$0xff]  }
  0x2a   : > { %v250_v52 = vld [vmem:[%s2777_s27 + $0x18] sm:$0xf]  ;;  %355 = vst [vmem:[#allocation2 + $0x20] sm:$0xf] %v354_v50  ;;  %v359_v55 = vld [vmem:[#allocation2 + $0x28] sm:$0xf]  ;;  %v459_v63 = vor.u32 %v458_v45, %v455_v44 }
  0x2b   : > { %v2899_v53 = vld [vmem:[#allocation2 + $0xc] sm:$0x1]  ;;  %205 = vst [vmem:[#allocation2 + $0x38] sm:$0x1] %v204_v51  ;;  %v293_v56 = vshrl.u32 %v249_v43, 16  ;;  %v296_v57 = vshll.u32 %v249_v43, 16  ;;  %v290_v61 = vor.u32 %v288_v32, %v2892_v49  ;;  %v423_v3 = vsel %vm2903_vm10, %v418_v46, %v422_v47 }
  0x2c   : > { %v432_v58 = vrot.slane %v431_v38, 4  ;;  %v434_v59 = vshll.u32 %v2899_v53, 16  ;;  %2557 = vmatpush3.bf16.msra.mxu1 %v2678_v25  ;;  %v301_v1 = vshrl.u32 %v250_v52, 16  ;;  %v365_v2 = vld [vmem:[#allocation2 + $0x30] sm:$0xf]  ;;  %v304_v7 = vshll.u32 %v250_v52, 16 }
  0x2d   : > { %v2912_v0 = vrot.slane %v293_v56, 7  ;;  %2558 = vmatprep.subr.bf16.mxu1 %v2682_v31  ;;  %v360_v5 = vsel %vm2828_vm6, %v290_v61, %v359_v55  ;;  %v226_v11 = vld [vmem:[#allocation2 + $0x24] sm:$0x1]  ;;  %v446_v16 = vrot.slane %v445_v60, 4  ;;  %v460_v20 = vrot.slane %v459_v63, 4  ;;  %v2683_v38 = vld [vmem:[%s3342_s1 + $0x50] sm:$0xff]  }
  0x2e   : > { %v436_v4 = vrot.slane %v434_v59, 5  ;;  %361 = vst [vmem:[#allocation2 + $0x28] sm:$0xf] %v360_v5  ;;  %v2919_v10 = vrot.slane %v301_v1, 7  ;;  %v227_v17 = vsel %vm2807_vm5, 0, %v226_v11  ;;  %v794_v24 = vrot.slane %v2866_v6, 5 }
  0x2f   : > { %v298_v8 = vor.u32 %v296_v57, %v2912_v0  ;;  %v2923_v13 = vld [vmem:[#allocation2 + $0x14] sm:$0x1]  ;;  %228 = vst [vmem:[#allocation2 + $0x24] sm:$0x1] %v227_v17  ;;  %v229_v22 = vld [vmem:[#allocation2 + $0x2c] sm:$0x1] }
  0x30   : > { %v437_v12 = vsel %vm2903_vm10, %v432_v58, %v436_v4  ;;  %v2925_v15 = vld [vmem:[#allocation2 + $0x1c] sm:$0x1]  ;;  %2559 = vmatpush3.bf16.msra.mxu1 %v2682_v31  ;;  %v448_v19 = vshll.u32 %v2923_v13, 16  ;;  %v306_v26 = vor.u32 %v304_v7, %v2919_v10  ;;  %v283_v33 = vrot.slane %v2872_v14, 4  ;;  %v232_v40 = vld [vmem:[#allocation2 + $0x34] sm:$0x1] }
  0x31   : > { %v2249_v18 = vcombine.low %v423_v3, %v437_v12  ;;  %v462_v21 = vshll.u32 %v2925_v15, 16  ;;  %2560 = vmatprep.subr.bf16.mxu1 %v2684_v62  ;;  %v387_v25 = vld [vmem:[#allocation2 + $0x20] sm:$0xf]  ;;  %v366_v28 = vsel %vm2828_vm6, %v298_v8, %v365_v2  ;;  %v230_v39 = vsel %vm2807_vm5, 0, %v229_v22  ;;  %v235_v44 = vld [vmem:[#allocation2 + $0x3c] sm:$0x1] }
  0x32   : > { %v371_v29 = vld [vmem:[#allocation2 + $0x38] sm:$0xf]  ;;  %v450_v30 = vrot.slane %v448_v19, 5  ;;  %v467_v34 = vshrl.u32 %v387_v25, 16  ;;  %367 = vst [vmem:[#allocation2 + $0x30] sm:$0xf] %v366_v28 }
  0x33   : > { %2514 = vmatprep.mubr.msk.bf16.mxu0 %vm566_vm7, %v2249_v18  ;;  %v464_v32 = vrot.slane %v462_v21, 5  ;;  %v470_v36 = vshll.u32 %v387_v25, 16  ;;  %v372_v37 = vsel %vm2828_vm6, %v306_v26, %v371_v29  ;;  %v798_v41 = vrot.slane %v2899_v53, 5  ;;  %231 = vst [vmem:[#allocation2 + $0x2c] sm:$0x1] %v230_v39  ;;  %v2689_v4 = vld [vmem:[%s3342_s1 + $0x40] sm:$0xff]  }
  0x34   : > { %2561 = vmatpush3.bf16.msra.mxu1 %v2684_v62  ;;  %v451_v14 = vsel %vm2903_vm10, %v446_v16, %v450_v30  ;;  %v291_v43 = vrot.slane %v2892_v49, 4  ;;  %373 = vst [vmem:[#allocation2 + $0x38] sm:$0xf] %v372_v37  ;;  %v233_v31 = vsel %vm2807_vm5, 0, %v232_v40  ;;  %v236_v47 = vsel %vm2807_vm5, 0, %v235_v44  ;;  %v2685_v62 = vld [vmem:[%s3342_s1 + $0x48] sm:$0xff]  }
  0x35   : > { %v465_v42 = vsel %vm2903_vm10, %v460_v20, %v464_v32  ;;  %2586 = vmatprep.subr.bf16.mxu1 %v2934_v23  ;;  %v388_v46 = vld [vmem:[#allocation2 + $0x28] sm:$0xf]  ;;  %v299_v55 = vrot.slane %v2912_v0, 4  ;;  %234 = vst [vmem:[#allocation2 + $0x34] sm:$0x1] %v233_v31  ;;  %v469_v49 = vrot.slane %v467_v34, 4 }
  0x36   : > { %v2250_v45 = vcombine.low %v451_v14, %v465_v42  ;;  %v481_v50 = vshrl.u32 %v388_v46, 16  ;;  %v484_v51 = vshll.u32 %v388_v46, 16  ;;  %v2263_v52 = vcombine.low %v387_v25, %v388_v46  ;;  %237 = vst [vmem:[#allocation2 + $0x3c] sm:$0x1] %v236_v47  ;;  %v356_v57 = vld [vmem:[#allocation2 + $0x24] sm:$0x1] }
  0x37   : > { %v472_v56 = vrot.slane %v470_v36, 5  ;;  %v307_v60 = vrot.slane %v2919_v10, 4  ;;  %v357_v61 = vsel %vm2788_vm3, %v283_v33, %v356_v57  ;;  %vm789_vm11 = vcmask 1042432   ;;  %v2686_v11 = vld [vmem:[#allocation2 + $0x8] ss:$8 sps:$4 sm:$0xff]   ;;  %v2984_v32 = vld [vmem:[%s3342_s1 + $0x98] sm:$0xff]  }
  0x38   : > { %2515 = vmatmul.mubr.msk.bf16.vlgmr.msra.gmra.mxu0 %vm566_vm7, %v2250_v45  ;;  %v483_v58 = vrot.slane %v481_v50, 4  ;;  %v486_v59 = vrot.slane %v484_v51, 5  ;;  %2534 = vmatprep.mubr.msk.bf16.mxu1 %vm566_vm7, %v2263_v52  ;;  %358 = vst [vmem:[#allocation2 + $0x24] sm:$0x1] %v357_v61  ;;  %vm790_vm12 = vcmask 1046532   ;;  %v802_v29 = vrot.slane %v2923_v13, 5 }
  0x39   : > { %2539 = vmatpush3.bf16.msra.mxu0 %v2848_v48  ;;  %v389_v63 = vld [vmem:[#allocation2 + $0x30] sm:$0xf]  ;;  %v473_v3 = vor.u32 %v472_v56, %v469_v49  ;;  %v765_v20 = vld [vmem:[#allocation2] sm:$0xe]  ;;  %v766_v28 = vld [vmem:[#allocation2 + $0x8] sm:$0xe] }
  0x3a   : > { %2540 = vmatprep.subr.bf16.mxu0 %v2683_v38  ;;  %v495_v0 = vshrl.u32 %v389_v63, 16  ;;  %v498_v48 = vshll.u32 %v389_v63, 16  ;;  %v362_v2 = vld [vmem:[#allocation2 + $0x2c] sm:$0x1]  ;;  %v487_v17 = vor.u32 %v486_v59, %v483_v58  ;;  %v2986_v33 = vld [vmem:[#allocation2 + $0x10] sm:$0xe]  ;;  %vm3003_vm13 = vmor %vm789_vm11, %vm790_vm12 }
  0x3b   : > { %v390_v1 = vld [vmem:[#allocation2 + $0x38] sm:$0xf]  ;;  %v363_v16 = vsel %vm2788_vm3, %v291_v43, %v362_v2  ;;  %v806_v34 = vrot.slane %v2925_v15, 5  ;;  %v474_v37 = vrot.slane %v473_v3, 4  ;;  %v2273_v43 = vrot.slane %v765_v20, 9  ;;  %v2690_v50 = vld [vmem:[%s3342_s1 + $0xb0] sm:$0xff]  }
  0x3c   : > { %v497_v5 = vrot.slane %v495_v0, 4  ;;  %v500_v7 = vrot.slane %v498_v48, 5  ;;  %v509_v8 = vshrl.u32 %v390_v1, 16  ;;  %v512_v10 = vshll.u32 %v390_v1, 16  ;;  %v368_v18 = vld [vmem:[#allocation2 + $0x34] sm:$0x1] }
  0x3d   : > { %2541 = vmatpush3.bf16.msra.mxu0 %v2683_v38  ;;  %v2264_v12 = vcombine.low %v389_v63, %v390_v1  ;;  %v374_v19 = vld [vmem:[#allocation2 + $0x3c] sm:$0x1]  ;;  %364 = vst [vmem:[#allocation2 + $0x2c] sm:$0x1] %v363_v16  ;;  %v369_v25 = vsel %vm2788_vm3, %v299_v55, %v368_v18  ;;  %v2992_v39 = vld [vmem:[#allocation2 + $0x18] sm:$0xe]  ;;  %v795_v2 = vsel %vm3003_vm13, %v2273_v43, %v794_v24 }
  0x3e   : > { %2542 = vmatprep.subr.bf16.mxu0 %v2685_v62  ;;  %v511_v21 = vrot.slane %v509_v8, 4  ;;  %v514_v22 = vrot.slane %v512_v10, 5  ;;  %v375_v26 = vsel %vm2788_vm3, %v307_v60, %v374_v19  ;;  %370 = vst [vmem:[#allocation2 + $0x34] sm:$0x1] %v369_v25  ;;  %v501_v30 = vor.u32 %v500_v7, %v497_v5  ;;  %v2687_v42 = vld [vmem:[#allocation2 + $0x18] ss:$8 sps:$4 sm:$0xff]  }
  0x3f   : > { %2535 = vmatmul.mubr.msk.bf16.gmra.mxu1 %vm566_vm7, %v2264_v12  ;;  %376 = vst [vmem:[#allocation2 + $0x3c] sm:$0x1] %v375_v26  ;;  %v2989_v36 = vld [vmem:[#allocation2 + $0x24] sm:$0x1]  ;;  %v488_v14 = vrot.slane %v487_v17, 4  ;;  %v2274_v44 = vrot.slane %v766_v28, 9 }
  0x40   : > { %v515_v38 = vor.u32 %v514_v22, %v511_v21  ;;  %2562 = vmatprep.mubr.msk.bf16.mxu1 %vm566_vm7, %v2686_v11  ;;  %v476_v40 = vshll.u32 %v2989_v36, 16  ;;  %v502_v45 = vrot.slane %v501_v30, 4  ;;  %v2275_v31 = vrot.slane %v2986_v33, 9  ;;  %v2692_v51 = vld [vmem:[#allocation2 + $0x28] ss:$8 sps:$4 sm:$0xff]   ;;  %v2696_v21 = vld [vmem:[%s3342_s1 + $0xa0] sm:$0xff]  }
  0x41   : > { %2543 = vmatpush3.bf16.msra.mxu0 %v2685_v62  ;;  %v2276_v47 = vrot.slane %v2992_v39, 9  ;;  %v206_v52 = vld [vmem:[#allocation2 + $0x40] sm:$0x1]  ;;  %v251_v55 = vld [vmem:[%s2777_s27 + $0x1c] sm:$0xf]  ;;  %v2694_v3 = vld [vmem:[%s3342_s1 + $0xa8] sm:$0xff]   ;;  %v799_v7 = vsel %vm3003_vm13, %v2274_v44, %v798_v41 }
  0x42   : > { %2544 = vmatprep.subr.bf16.mxu0 %v2689_v4  ;;  %v516_v46 = vrot.slane %v515_v38, 4  ;;  %v478_v49 = vrot.slane %v476_v40, 5  ;;  %v207_v57 = vsel %vm2788_vm3, 0, %v206_v52  ;;  %v309_v58 = vshrl.u32 %v251_v55, 16  ;;  %v769_v11 = vld [vmem:[#allocation2 + $0x20] sm:$0xe] }
  0x43   : > { %v312_v59 = vshll.u32 %v251_v55, 16  ;;  %208 = vst [vmem:[#allocation2 + $0x40] sm:$0x1] %v207_v57  ;;  %v810_v6 = vrot.slane %v2989_v36, 5  ;;  %v770_v12 = vld [vmem:[#allocation2 + $0x28] sm:$0xe]  ;;  %v2281_v20 = vcombine.low %v795_v2, %v799_v7  ;;  %v803_v35 = vsel %vm3003_vm13, %v2275_v31, %v802_v29 }
  0x44   : > { %v3009_v60 = vld [vmem:[#allocation2 + $0x2c] sm:$0x1]  ;;  %v3017_v0 = vrot.slane %v309_v58, 7  ;;  %v2277_v53 = vrot.slane %v769_v11, 9  ;;  %v2278_v17 = vrot.slane %v770_v12, 9  ;;  %v807_v52 = vsel %vm3003_vm13, %v2276_v47, %v806_v34  ;;  %v3077_v13 = vld [vmem:[%s3342_s1 + $0xf8] sm:$0xff]  }
  0x45   : > { %2545 = vmatpush3.bf16.msra.mxu0 %v2689_v4  ;;  %v490_v61 = vshll.u32 %v3009_v60, 16  ;;  %v3013_v62 = vld [vmem:[#allocation2 + $0x34] sm:$0x1]  ;;  %v479_v4 = vsel %vm2903_vm10, %v474_v37, %v478_v49  ;;  %v771_v22 = vld [vmem:[#allocation2 + $0x30] sm:$0xe]  ;;  %v814_v30 = vrot.slane %v3009_v60, 5  ;;  %v2282_v60 = vcombine.low %v803_v35, %v807_v52 }
  0x46   : > { %2570 = vmatprep.subr.bf16.mxu0 %v2984_v32  ;;  %v3015_v63 = vld [vmem:[#allocation2 + $0x3c] sm:$0x1]  ;;  %v504_v48 = vshll.u32 %v3013_v62, 16  ;;  %v314_v10 = vor.u32 %v312_v59, %v3017_v0  ;;  %v772_v25 = vld [vmem:[#allocation2 + $0x38] sm:$0xe]  ;;  %v2279_v36 = vrot.slane %v771_v22, 9  ;;  %v811_v29 = vsel %vm3003_vm13, %v2277_v53, %v810_v6 }
  0x47   : > { %v518_v1 = vshll.u32 %v3015_v63, 16  ;;  %2563 = vmatmul.mubr.msk.bf16.vlgmr.msra.gmra.mxu1 %vm566_vm7, %v2687_v42  ;;  %v492_v5 = vrot.slane %v490_v61, 5  ;;  %v1100_v37 = vld [vmem:[#allocation2 + $0xc] sm:$0x1]  ;;  %v818_v40 = vrot.slane %v3013_v62, 5  ;;  %v822_v44 = vrot.slane %v3015_v63, 5 }
  0x48   : > { %2587 = vmatpush3.bf16.msra.mxu1 %v2934_v23  ;;  %2566 = vmatprep.mubr.msk.bf16.mxu1 %vm566_vm7, %v2692_v51  ;;  %v506_v24 = vrot.slane %v504_v48, 5  ;;  %v315_v23 = vrot.slane %v3017_v0, 4  ;;  %v3054_v42 = vld [vmem:[#allocation2 + $0x14] sm:$0x1]  ;;  %v1356_v43 = vld [vmem:[#allocation2 + $0x8] sm:$0xe]  ;;  %v815_v15 = vsel %vm3003_vm13, %v2278_v17, %v814_v30 }
  0x49   : > { %v520_v8 = vrot.slane %v518_v1, 5  ;;  %2588 = vmatprep.subr.bf16.mxu1 %v2690_v50  ;;  %v493_v16 = vsel %vm2903_vm10, %v488_v14, %v492_v5  ;;  %v2280_v14 = vrot.slane %v772_v25, 9  ;;  %v1386_v51 = vrot.slane %v3054_v42, 5  ;;  %v1104_v49 = vld [vmem:[#allocation2 + $0x1c] sm:$0x1]  ;;  %v2695_v5 = vld [vmem:[%s3342_s1 + $0x90] sm:$0xff]  }
  0x4a   : > { %v2251_v18 = vcombine.low %v479_v4, %v493_v16  ;;  %v507_v41 = vsel %vm2903_vm10, %v502_v45, %v506_v24  ;;  %v377_v28 = vld [vmem:[#allocation2 + $0x40] sm:$0xf]  ;;  %v1357_v45 = vld [vmem:[#allocation2 + $0x10] sm:$0xe]  ;;  %v3072_v57 = vld [vmem:[#allocation2 + $0x24] sm:$0x1]  ;;  %v2283_v63 = vcombine.low %v811_v29, %v815_v15  ;;  %v3090_v48 = vsel %vm3003_vm13, %v2279_v36, %v818_v40 }
  0x4b   : > { %v521_v19 = vsel %vm2903_vm10, %v516_v46, %v520_v8  ;;  %v378_v38 = vsel %vm2828_vm6, %v314_v10, %v377_v28  ;;  %v2333_v46 = vrot.slane %v1356_v43, 9  ;;  %v2334_v55 = vrot.slane %v1357_v45, 9  ;;  %v1358_v39 = vld [vmem:[#allocation2 + $0x18] sm:$0xe]  ;;  %v1359_v31 = vld [vmem:[#allocation2 + $0x20] sm:$0xe] }
  0x4c   : > { %v2252_v26 = vcombine.low %v507_v41, %v521_v19  ;;  %2589 = vmatpush3.bf16.msra.mxu1 %v2690_v50  ;;  %2518 = vmatprep.mubr.msk.bf16.mxu0 %vm566_vm7, %v2251_v18  ;;  %379 = vst [vmem:[#allocation2 + $0x40] sm:$0xf] %v378_v38  ;;  %v1382_v50 = vrot.slane %v1100_v37, 5  ;;  %v1125_v33 = vshll.u32 %v1100_v37, 16  ;;  %v1390_v34 = vrot.slane %v1104_v49, 5  ;;  %v2697_v28 = vld [vmem:[%s3342_s1 + $0x88] sm:$0xff]  }
  0x4d   : > { %2590 = vmatprep.subr.bf16.mxu1 %v2694_v3  ;;  %v1394_v47 = vrot.slane %v3072_v57, 5  ;;  %v2335_v58 = vrot.slane %v1358_v39, 9  ;;  %v2336_v59 = vrot.slane %v1359_v31, 9  ;;  %v1387_v62 = vsel %vm3003_vm13, %v2334_v55, %v1386_v51  ;;  %v1101_v4 = vld [vmem:[#allocation2 + $0x10] sm:$0xf]  ;;  %v2699_v45 = vld [vmem:[%s3342_s1 + $0x80] sm:$0xff]  }
  0x4e   : > { %2519 = vmatmul.mubr.msk.bf16.gmra.mxu0 %vm566_vm7, %v2252_v26  ;;  %v1383_v61 = vsel %vm3003_vm13, %v2333_v46, %v1382_v50  ;;  %v3094_v1 = vsel %vm3003_vm13, %v2280_v14, %v822_v44  ;;  %v1127_v8 = vrot.slane %v1125_v33, 5  ;;  %v1130_v12 = vshrl.u32 %v1101_v4, 16  ;;  %v1103_v25 = vld [vmem:[#allocation2 + $0x18] sm:$0xf]  ;;  %v1105_v26 = vld [vmem:[#allocation2 + $0x20] sm:$0xf] }
  0x4f   : > { %2546 = vmatprep.mubr.msk.bf16.mxu0 %vm566_vm7, %v2281_v20  ;;  %v3098_v2 = vsel %vm3003_vm13, %v2335_v58, %v1390_v34  ;;  %v3105_v7 = vsel %vm3003_vm13, %v2336_v59, %v1394_v47  ;;  %v2349_v11 = vcombine.low %v1383_v61, %v1387_v62  ;;  %v1133_v16 = vshll.u32 %v1101_v4, 16  ;;  %v3120_v38 = vld [vmem:[#allocation2 + $0x2c] sm:$0x1]  ;;  %v3123_v44 = vld [vmem:[#allocation2 + $0x34] sm:$0x1] }
  0x50   : > { %2591 = vmatpush3.bf16.msra.mxu1 %v2694_v3  ;;  %v1099_v3 = vld [vmem:[#allocation2 + $0x8] sm:$0xf]  ;;  %v1139_v18 = vshll.u32 %v3054_v42, 16  ;;  %v1153_v41 = vshll.u32 %v1104_v49, 16  ;;  %v2284_v19 = vcombine.low %v3090_v48, %v3094_v1  ;;  %v2350_v20 = vcombine.low %v3098_v2, %v3105_v7  ;;  %v2700_v55 = vld [vmem:[%s3342_s1 + $0xf0] sm:$0xff]  }
  0x51   : > { %2592 = vmatprep.subr.bf16.mxu1 %v2696_v21  ;;  %v1116_v6 = vshrl.u32 %v1099_v3, 16  ;;  %v1119_v24 = vshll.u32 %v1099_v3, 16  ;;  %v1135_v22 = vrot.slane %v1133_v16, 5  ;;  %v1144_v36 = vshrl.u32 %v1103_v25, 16  ;;  %v1360_v52 = vld [vmem:[#allocation2 + $0x28] sm:$0xe] }
  0x52   : > { %v1141_v30 = vrot.slane %v1139_v18, 5  ;;  %v1147_v37 = vshll.u32 %v1103_v25, 16  ;;  %v1155_v14 = vrot.slane %v1153_v41, 5  ;;  %v1158_v42 = vshrl.u32 %v1105_v26, 16  ;;  %v1361_v15 = vld [vmem:[#allocation2 + $0x30] sm:$0xe] }
  0x53   : > { %v2693_v10 = vld [vmem:[#allocation2 + $0x38] ss:$8 sps:$4 sm:$0xff]   ;;  %v1118_v53 = vrot.slane %v1116_v6, 4  ;;  %v1121_v17 = vrot.slane %v1119_v24, 5  ;;  %v1161_v43 = vshll.u32 %v1105_v26, 16  ;;  %v1146_v50 = vrot.slane %v1144_v36, 4 }
  0x54   : > { %2593 = vmatpush3.bf16.msra.mxu1 %v2696_v21  ;;  %v1132_v21 = vrot.slane %v1130_v12, 4  ;;  %v1149_v51 = vrot.slane %v1147_v37, 5  ;;  %v1167_v35 = vshll.u32 %v3072_v57, 16  ;;  %v1160_v33 = vrot.slane %v1158_v42, 4  ;;  %v238_v57 = vld [vmem:[#allocation2 + $0x44] sm:$0x1] }
  0x55   : > { %2618 = vmatprep.subr.bf16.mxu1 %v3077_v13  ;;  %2567 = vmatmul.mubr.msk.bf16.gmra.mxu1 %vm566_vm7, %v2693_v10  ;;  %v1163_v29 = vrot.slane %v1161_v43, 5  ;;  %v2337_v39 = vrot.slane %v1360_v52, 9  ;;  %v1398_v58 = vrot.slane %v3120_v38, 5  ;;  %v1112_v59 = vld [vmem:[#allocation2 + $0x3c] sm:$0x1]  ;;  %v2338_v62 = vrot.slane %v1361_v15, 9 }
  0x56   : > { %2547 = vmatmul.mubr.msk.bf16.vlgmr.msra.gmra.mxu0 %vm566_vm7, %v2282_v60  ;;  %2594 = vmatprep.mubr.msk.bf16.mxu1 %vm566_vm7, %v2349_v11  ;;  %v1136_v40 = vor.u32 %v1135_v22, %v1132_v21  ;;  %v1150_v34 = vor.u32 %v1149_v51, %v1146_v50  ;;  %v1169_v47 = vrot.slane %v1167_v35, 5  ;;  %v1362_v48 = vld [vmem:[#allocation2 + $0x38] sm:$0xe]  ;;  %v3138_v1 = vld [vmem:[#allocation2 + $0x40] sm:$0xe]  ;;  %v239_v7 = vsel %vm2807_vm5, 0, %v238_v57 }
  0x57   : > { %2571 = vmatpush3.bf16.msra.mxu0 %v2984_v32  ;;  %2550 = vmatprep.mubr.msk.bf16.mxu0 %vm566_vm7, %v2283_v63  ;;  %v1122_v32 = vor.u32 %v1121_v17, %v1118_v53  ;;  %v1164_v61 = vor.u32 %v1163_v29, %v1160_v33  ;;  %v1402_v63 = vrot.slane %v3123_v44, 5  ;;  %v2701_v3 = vld [vmem:[%s3342_s1 + $0xd8] sm:$0xff]   ;;  %240 = vst [vmem:[#allocation2 + $0x44] sm:$0x1] %v239_v7  ;;  %v1406_v10 = vrot.slane %v1112_v59, 5  ;;  %v2702_v11 = vld [vmem:[%s3342_s1 + $0xe8] sm:$0xff]  }
  0x58   : > { %2572 = vmatprep.subr.bf16.mxu0 %v2695_v5  ;;  %v1137_v49 = vrot.slane %v1136_v40, 4  ;;  %v1151_v4 = vrot.slane %v1150_v34, 4  ;;  %v2340_v16 = vrot.slane %v3138_v1, 9  ;;  %v1181_v53 = vshll.u32 %v3120_v38, 16  ;;  %v1107_v18 = vld [vmem:[#allocation2 + $0x28] sm:$0xf] }
  0x59   : > { %v1123_v46 = vrot.slane %v1122_v32, 4  ;;  %v1165_v6 = vrot.slane %v1164_v61, 4  ;;  %v1403_v24 = vsel %vm3003_vm13, %v2338_v62, %v1402_v63  ;;  %v1109_v41 = vld [vmem:[#allocation2 + $0x30] sm:$0xf]  ;;  %v1175_v21 = vshll.u32 %v1107_v18, 16  ;;  %v2704_v25 = vld [vmem:[%s3342_s1 + $0xe0] sm:$0xff]  }
  0x5a   : > { %v1142_v60 = vsel %vm2903_vm10, %v1137_v49, %v1141_v30  ;;  %v1156_v27 = vsel %vm2903_vm10, %v1151_v4, %v1155_v14  ;;  %v1183_v22 = vrot.slane %v1181_v53, 5  ;;  %v1186_v26 = vshrl.u32 %v1109_v41, 16  ;;  %v1111_v40 = vld [vmem:[#allocation2 + $0x38] sm:$0xf]  ;;  %v1113_v14 = vld [vmem:[#allocation2 + $0x40] sm:$0xf] }
  0x5b   : > { %2573 = vmatpush3.bf16.msra.mxu0 %v2695_v5  ;;  %v1128_v31 = vsel %vm2903_vm10, %v1123_v46, %v1127_v8  ;;  %v1399_v5 = vsel %vm3003_vm13, %v2337_v39, %v1398_v58  ;;  %v2339_v8 = vrot.slane %v1362_v48, 9  ;;  %v1170_v17 = vsel %vm2903_vm10, %v1165_v6, %v1169_v47  ;;  %v1688_v50 = vld [vmem:[#allocation2 + $0x10] sm:$0xf]  ;;  %v3181_v39 = vld [vmem:[#allocation2 + $0x14] sm:$0x1]  ;;  %v2705_v47 = vld [vmem:[%s3342_s1 + $0xc8] sm:$0xff]  }
  0x5c   : > { %2574 = vmatprep.subr.bf16.mxu0 %v2697_v28  ;;  %v2321_v2 = vcombine.low %v1128_v31, %v1142_v60  ;;  %v2351_v12 = vcombine.low %v1399_v5, %v1403_v24  ;;  %v1195_v32 = vshll.u32 %v3123_v44, 16  ;;  %v1209_v30 = vshll.u32 %v1112_v59, 16  ;;  %v1690_v31 = vld [vmem:[#allocation2 + $0x18] sm:$0xf]  ;;  %v3191_v61 = vld [vmem:[#allocation2 + $0x1c] sm:$0x1] }
  0x5d   : > { %2595 = vmatmul.mubr.msk.bf16.vlgmr.msra.gmra.mxu1 %vm566_vm7, %v2350_v20  ;;  %v1172_v20 = vshrl.u32 %v1107_v18, 16  ;;  %v3172_v36 = vsel %vm3003_vm13, %v2339_v8, %v1406_v10  ;;  %v1177_v38 = vrot.slane %v1175_v21, 5  ;;  %v1188_v42 = vrot.slane %v1186_v26, 4  ;;  %v1692_v5 = vld [vmem:[#allocation2 + $0x20] sm:$0xf] }
  0x5e   : > { %2551 = vmatmul.mubr.msk.bf16.gmra.mxu0 %vm566_vm7, %v2284_v19  ;;  %2619 = vmatpush3.bf16.msra.mxu1 %v3077_v13  ;;  %v2322_v19 = vcombine.low %v1156_v27, %v1170_v17  ;;  %v2703_v13 = vld [vmem:[%s3342_s1 + $0xd0] sm:$0xff]   ;;  %v1200_v46 = vshrl.u32 %v1111_v40, 16  ;;  %v380_v44 = vld [vmem:[#allocation2 + $0x44] sm:$0x1]  ;;  %v1203_v35 = vshll.u32 %v1111_v40, 16  ;;  %v3175_v52 = vrot.slane %v1209_v30, 5 }
  0x5f   : > { %2575 = vmatpush3.bf16.msra.mxu0 %v2697_v28  ;;  %2620 = vmatprep.subr.bf16.mxu1 %v2700_v55  ;;  %v1189_v28 = vshll.u32 %v1109_v41, 16  ;;  %v1174_v37 = vrot.slane %v1172_v20, 4  ;;  %v381_v49 = vsel %vm2788_vm3, %v315_v23, %v380_v44  ;;  %v1217_v15 = vshll.u32 %v1113_v14, 16  ;;  %v3189_v23 = vld [vmem:[%s3342_s1 + $0x118] sm:$0xff]   ;;  %v3196_v7 = vld [vmem:[#allocation2 + $0x24] sm:$0x1] }
  0x60   : > { %2576 = vmatprep.subr.bf16.mxu0 %v2699_v45  ;;  %2578 = vmatprep.mubr.msk.bf16.mxu0 %vm566_vm7, %v2321_v2  ;;  %v1202_v29 = vrot.slane %v1200_v46, 4  ;;  %382 = vst [vmem:[#allocation2 + $0x44] sm:$0x1] %v381_v49  ;;  %v1205_v58 = vrot.slane %v1203_v35, 5  ;;  %v1705_v0 = vshrl.u32 %v1688_v50, 16  ;;  %v1708_v62 = vshll.u32 %v1688_v50, 16 }
  0x61   : > { %2598 = vmatprep.mubr.msk.bf16.mxu1 %vm566_vm7, %v2351_v12  ;;  %v1191_v43 = vrot.slane %v1189_v28, 5  ;;  %v1178_v51 = vor.u32 %v1177_v38, %v1174_v37  ;;  %v1219_v60 = vrot.slane %v1217_v15, 5  ;;  %v1714_v63 = vshll.u32 %v3181_v39, 16  ;;  %v2707_v18 = vld [vmem:[%s3342_s1 + $0xc0] sm:$0xff]   ;;  %v2709_v1 = vld [vmem:[#allocation2 + $0x10] ss:$8 sps:$4 sm:$0xff]  }
  0x62   : > { %2621 = vmatpush3.bf16.msra.mxu1 %v2700_v55  ;;  %v1214_v55 = vshrl.u32 %v1113_v14, 16  ;;  %v1206_v2 = vor.u32 %v1205_v58, %v1202_v29  ;;  %v1719_v4 = vshrl.u32 %v1690_v31, 16  ;;  %v1710_v8 = vrot.slane %v1708_v62, 5  ;;  %v1698_v62 = vld [vmem:[#allocation2 + $0x38] sm:$0xf] }
  0x63   : > { %2577 = vmatpush3.bf16.msra.mxu0 %v2699_v45  ;;  %2622 = vmatprep.subr.bf16.mxu1 %v2702_v11  ;;  %v1197_v45 = vrot.slane %v1195_v32, 5  ;;  %v1192_v33 = vor.u32 %v1191_v43, %v1188_v42  ;;  %v1179_v34 = vrot.slane %v1178_v51, 4  ;;  %v1716_v10 = vrot.slane %v1714_v63, 5  ;;  %v3230_v63 = vld [vmem:[#allocation2 + $0x3c] sm:$0x1] }
  0x64   : > { %2602 = vmatprep.subr.bf16.mxu0 %v2701_v3  ;;  %v1216_v57 = vrot.slane %v1214_v55, 4  ;;  %v1207_v12 = vrot.slane %v1206_v2, 4  ;;  %v1721_v53 = vrot.slane %v1719_v4, 4  ;;  %v1722_v17 = vshll.u32 %v1690_v31, 16 }
  0x65   : > { %v1193_v59 = vrot.slane %v1192_v33, 4  ;;  %v1184_v48 = vsel %vm2903_vm10, %v1179_v34, %v1183_v22  ;;  %v1733_v20 = vshrl.u32 %v1692_v5, 16  ;;  %v1736_v26 = vshll.u32 %v1692_v5, 16 }
  0x66   : > { %2579 = vmatmul.mubr.msk.bf16.vlgmr.msra.gmra.mxu0 %vm566_vm7, %v2322_v19  ;;  %2623 = vmatpush3.bf16.msra.mxu1 %v2702_v11  ;;  %v1220_v24 = vor.u32 %v1219_v60, %v1216_v57  ;;  %v1694_v11 = vld [vmem:[#allocation2 + $0x28] sm:$0xf]  ;;  %v1212_v21 = vsel %vm2903_vm10, %v1207_v12, %v3175_v52  ;;  %v1724_v22 = vrot.slane %v1722_v17, 5  ;;  %v1742_v28 = vshll.u32 %v3196_v7, 16  ;;  %v1700_v12 = vld [vmem:[#allocation2 + $0x40] sm:$0xf] }
  0x67   : > { %2603 = vmatpush3.bf16.msra.mxu0 %v2701_v3  ;;  %2624 = vmatprep.subr.bf16.mxu1 %v2704_v25  ;;  %v1707_v3 = vrot.slane %v1705_v0, 4  ;;  %v1198_v6 = vsel %vm2903_vm10, %v1193_v59, %v1197_v45  ;;  %v1114_v32 = vld [vmem:[#allocation2 + $0x44] sm:$0x1]  ;;  %v1735_v38 = vrot.slane %v1733_v20, 4  ;;  %v1747_v40 = vshrl.u32 %v1694_v11, 16  ;;  %v2708_v17 = vld [vmem:[%s3342_s1 + $0x110] sm:$0xff]  }
  0x68   : > { %2604 = vmatprep.subr.bf16.mxu0 %v2703_v13  ;;  %v2323_v27 = vcombine.low %v1184_v48, %v1198_v6  ;;  %v1221_v41 = vrot.slane %v1220_v24, 4  ;;  %v1410_v14 = vrot.slane %v1114_v32, 5  ;;  %v1223_v42 = vshll.u32 %v1114_v32, 16  ;;  %v1696_v0 = vld [vmem:[#allocation2 + $0x30] sm:$0xf] }
  0x69   : > { %v1711_v19 = vor.u32 %v1710_v8, %v1707_v3  ;;  %v1725_v43 = vor.u32 %v1724_v22, %v1721_v53  ;;  %v1738_v45 = vrot.slane %v1736_v26, 5  ;;  %v1744_v50 = vrot.slane %v1742_v28, 5  ;;  %v3226_v59 = vld [vmem:[#allocation2 + $0x34] sm:$0x1]  ;;  %v209_v24 = vld [vmem:[#allocation2 + $0x48] sm:$0x1] }
  0x6a   : > { %2625 = vmatpush3.bf16.msra.mxu1 %v2704_v25  ;;  %2582 = vmatprep.mubr.msk.bf16.mxu0 %vm566_vm7, %v2323_v27  ;;  %v3209_v25 = vld [vmem:[#allocation2 + $0x2c] sm:$0x1]  ;;  %v1749_v44 = vrot.slane %v1747_v40, 4  ;;  %v1750_v51 = vshll.u32 %v1694_v11, 16  ;;  %v1411_v35 = vsel %vm3003_vm13, %v2340_v16, %v1410_v14  ;;  %v1225_v52 = vrot.slane %v1223_v42, 5 }
  0x6b   : > { %2605 = vmatpush3.bf16.msra.mxu0 %v2703_v13  ;;  %v1728_v13 = vshll.u32 %v3191_v61, 16  ;;  %2650 = vmatprep.subr.bf16.mxu1 %v3189_v23  ;;  %v1712_v30 = vrot.slane %v1711_v19, 4  ;;  %v1726_v55 = vrot.slane %v1725_v43, 4  ;;  %v1739_v49 = vor.u32 %v1738_v45, %v1735_v38  ;;  %v3244_v19 = vld [vmem:[#allocation2 + $0x44] sm:$0x1] }
  0x6c   : > { %2606 = vmatprep.subr.bf16.mxu0 %v2705_v47  ;;  %v2352_v33 = vcombine.low %v3172_v36, %v1411_v35  ;;  %v1752_v29 = vrot.slane %v1750_v51, 5  ;;  %v1756_v15 = vshll.u32 %v3209_v25, 16  ;;  %v1226_v31 = vsel %vm2903_vm10, %v1221_v41, %v1225_v52  ;;  %v3246_v22 = vld [vmem:[#allocation2 + $0x4c] sm:$0x1]  ;;  %v2710_v26 = vld [vmem:[#allocation2 + $0x20] ss:$8 sps:$4 sm:$0xff]  }
  0x6d   : > { %v1730_v37 = vrot.slane %v1728_v13, 5  ;;  %v1717_v46 = vsel %vm2903_vm10, %v1712_v30, %v1716_v10  ;;  %v2324_v16 = vcombine.low %v1212_v21, %v1226_v31  ;;  %v1761_v48 = vshrl.u32 %v1696_v0, 16  ;;  %v1949_v35 = vld [vmem:[#allocation2 + $0x30] sm:$0xe]  ;;  %v1950_v52 = vld [vmem:[#allocation2 + $0x38] sm:$0xe] }
  0x6e   : > { %2599 = vmatmul.mubr.msk.bf16.gmra.mxu1 %vm566_vm7, %v2352_v33  ;;  %v1753_v57 = vor.u32 %v1752_v29, %v1749_v44  ;;  %v1758_v36 = vrot.slane %v1756_v15, 5  ;;  %v1764_v2 = vshll.u32 %v1696_v0, 16  ;;  %v1770_v4 = vshll.u32 %v3226_v59, 16  ;;  %v2713_v44 = vld [vmem:[#allocation2 + $0x30] ss:$8 sps:$4 sm:$0xff]  }
  0x6f   : > { %2607 = vmatpush3.bf16.msra.mxu0 %v2705_v47  ;;  %v1731_v34 = vsel %vm2903_vm10, %v1726_v55, %v1730_v37  ;;  %v1740_v47 = vrot.slane %v1739_v49, 4  ;;  %v1775_v5 = vshrl.u32 %v1698_v62, 16  ;;  %v1778_v6 = vshll.u32 %v1698_v62, 16  ;;  %v1951_v62 = vld [vmem:[#allocation2 + $0x40] sm:$0xe] }
  0x70   : > { %2608 = vmatprep.subr.bf16.mxu0 %v2707_v18  ;;  %v2389_v58 = vcombine.low %v1717_v46, %v1731_v34  ;;  %2583 = vmatmul.mubr.msk.bf16.gmra.mxu0 %vm566_vm7, %v2324_v16  ;;  %v1754_v3 = vrot.slane %v1753_v57, 4  ;;  %v1763_v8 = vrot.slane %v1761_v48, 4  ;;  %v1766_v10 = vrot.slane %v1764_v2, 5  ;;  %v2711_v46 = vld [vmem:[%s3342_s1 + $0x108] sm:$0xff]   ;;  %v1945_v48 = vld [vmem:[#allocation2 + $0x10] sm:$0xe] }
  0x71   : > { %v1745_v60 = vsel %vm2903_vm10, %v1740_v47, %v1744_v50  ;;  %2610 = vmatprep.mubr.msk.bf16.mxu0 %vm566_vm7, %v2709_v1  ;;  %v1784_v11 = vshll.u32 %v3230_v63, 16  ;;  %v210_v27 = vsel %vm2788_vm3, 0, %v209_v24  ;;  %v1780_v41 = vrot.slane %v1778_v6, 5  ;;  %v2712_v47 = vld [vmem:[%s3342_s1 + $0x100] sm:$0xff]  }
  0x72   : > { %2626 = vmatprep.mubr.msk.bf16.mxu1 %vm566_vm7, %v2389_v58  ;;  %v1759_v53 = vsel %vm2903_vm10, %v1754_v3, %v1758_v36  ;;  %211 = vst [vmem:[#allocation2 + $0x48] sm:$0x1] %v210_v27  ;;  %v1767_v20 = vor.u32 %v1766_v10, %v1763_v8  ;;  %v1772_v21 = vrot.slane %v1770_v4, 5  ;;  %v1789_v9 = vshrl.u32 %v1700_v12, 16  ;;  %v1946_v3 = vld [vmem:[#allocation2 + $0x18] sm:$0xe] }
  0x73   : > { %2609 = vmatpush3.bf16.msra.mxu0 %v2707_v18  ;;  %v1777_v18 = vrot.slane %v1775_v5, 4  ;;  %v2390_v13 = vcombine.low %v1745_v60, %v1759_v53  ;;  %v1786_v32 = vrot.slane %v1784_v11, 5  ;;  %v1792_v30 = vshll.u32 %v1700_v12, 16  ;;  %v1947_v5 = vld [vmem:[#allocation2 + $0x20] sm:$0xe] }
  0x74   : > { %2634 = vmatprep.subr.bf16.mxu0 %v3189_v23  ;;  %v1768_v37 = vrot.slane %v1767_v20, 4  ;;  %v1791_v38 = vrot.slane %v1789_v9, 4  ;;  %v1971_v40 = vrot.slane %v3181_v39, 5  ;;  %v1798_v43 = vshll.u32 %v3244_v19, 16  ;;  %v1952_v8 = vld [vmem:[#allocation2 + $0x48] sm:$0xe] }
  0x75   : > { %v1781_v28 = vor.u32 %v1780_v41, %v1777_v18  ;;  %v1794_v42 = vrot.slane %v1792_v30, 5  ;;  %v1812_v45 = vshll.u32 %v3246_v22, 16  ;;  %v1995_v33 = vrot.slane %v3244_v19, 5  ;;  %v1948_v10 = vld [vmem:[#allocation2 + $0x28] sm:$0xe] }
  0x76   : > { %2627 = vmatmul.mubr.msk.bf16.vlgmr.msra.gmra.mxu1 %vm566_vm7, %v2390_v13  ;;  %v1773_v50 = vsel %vm2903_vm10, %v1768_v37, %v1772_v21  ;;  %v1999_v29 = vrot.slane %v3246_v22, 5  ;;  %v1800_v15 = vrot.slane %v1798_v43, 5  ;;  %v2405_v1 = vrot.slane %v1949_v35, 9 }
  0x77   : > { %v1782_v14 = vrot.slane %v1781_v28, 4  ;;  %2654 = vmatpush3.bf16.msra.mxu1 %v3189_v23  ;;  %v1795_v51 = vor.u32 %v1794_v42, %v1791_v38  ;;  %v1987_v58 = vrot.slane %v3226_v59, 5  ;;  %v2406_v57 = vrot.slane %v1950_v52, 9 }
  0x78   : > { %2651 = vmatprep.subr.bf16.mxu1 %v2708_v17  ;;  %2611 = vmatmul.mubr.msk.bf16.vlgmr.msra.gmra.mxu0 %vm566_vm7, %v2710_v26  ;;  %v1991_v36 = vrot.slane %v3230_v63, 5  ;;  %v1814_v2 = vrot.slane %v1812_v45, 5  ;;  %v2401_v4 = vrot.slane %v1945_v48, 9  ;;  %v2402_v63 = vrot.slane %v1946_v3, 9 }
  0x79   : > { %v1787_v39 = vsel %vm2903_vm10, %v1782_v14, %v1786_v32  ;;  %2635 = vmatpush3.bf16.msra.mxu0 %v3189_v23  ;;  %v1702_v49 = vld [vmem:[#allocation2 + $0x48] sm:$0xf]  ;;  %2614 = vmatprep.mubr.msk.bf16.mxu0 %vm566_vm7, %v2713_v44  ;;  %v1796_v23 = vrot.slane %v1795_v51, 4  ;;  %v1988_v24 = vsel %vm3003_vm13, %v2405_v1, %v1987_v58  ;;  %v1975_v12 = vrot.slane %v3191_v61, 5 }
  0x7a   : > { %v2391_v55 = vcombine.low %v1773_v50, %v1787_v39  ;;  %v1803_v31 = vshrl.u32 %v1702_v49, 16  ;;  %v1806_v34 = vshll.u32 %v1702_v49, 16  ;;  %2636 = vmatprep.subr.bf16.mxu0 %v2708_v17  ;;  %v2714_v16 = vld [vmem:[#allocation2 + $0x40] ss:$8 sps:$4 sm:$0xff]   ;;  %v1992_v59 = vsel %vm3003_vm13, %v2406_v57, %v1991_v36 }
  0x7b   : > { %2655 = vmatpush3.bf16.msra.mxu1 %v2708_v17  ;;  %v1801_v11 = vsel %vm2903_vm10, %v1796_v23, %v1800_v15  ;;  %v1972_v27 = vsel %vm3003_vm13, %v2401_v4, %v1971_v40  ;;  %v2403_v53 = vrot.slane %v1947_v5, 9  ;;  %v1979_v18 = vrot.slane %v3196_v7, 5 }
  0x7c   : > { %2630 = vmatprep.mubr.msk.bf16.mxu1 %vm566_vm7, %v2391_v55  ;;  %v1805_v0 = vrot.slane %v1803_v31, 4  ;;  %v1808_v60 = vrot.slane %v1806_v34, 5  ;;  %2652 = vmatprep.subr.bf16.mxu1 %v2711_v46  ;;  %v2404_v41 = vrot.slane %v1948_v10, 9  ;;  %v1983_v19 = vrot.slane %v3209_v25, 5 }
  0x7d   : > { %2637 = vmatpush3.bf16.msra.mxu0 %v2708_v17  ;;  %v2419_v13 = vcombine.low %v1988_v24, %v1992_v59  ;;  %v2407_v20 = vrot.slane %v1951_v62, 9  ;;  %v2408_v21 = vrot.slane %v1952_v8, 9  ;;  %v1976_v22 = vsel %vm3003_vm13, %v2402_v63, %v1975_v12 }
  0x7e   : > { %v1809_v6 = vor.u32 %v1808_v60, %v1805_v0  ;;  %2638 = vmatprep.subr.bf16.mxu0 %v2711_v46  ;;  %v2417_v9 = vcombine.low %v1972_v27, %v1976_v22  ;;  %v1980_v26 = vsel %vm3003_vm13, %v2403_v53, %v1979_v18  ;;  %v1984_v7 = vsel %vm3003_vm13, %v2404_v41, %v1983_v19 }
  0x7f   : > { %2656 = vmatpush3.bf16.msra.mxu1 %v2711_v46  ;;  %v2418_v25 = vcombine.low %v1980_v26, %v1984_v7  ;;  %v1996_v54 = vsel %vm3003_vm13, %v2407_v20, %v1995_v33  ;;  %v2000_v32 = vsel %vm3003_vm13, %v2408_v21, %v1999_v29 }
  0x80   : > { %v1810_v17 = vrot.slane %v1809_v6, 4  ;;  %2653 = vmatprep.subr.bf16.mxu1 %v2712_v47  ;;  %2615 = vmatmul.mubr.msk.bf16.gmra.mxu0 %vm566_vm7, %v2714_v16  ;;  %v2420_v30 = vcombine.low %v1996_v54, %v2000_v32 }
  0x81   : > { %2639 = vmatpush3.bf16.msra.mxu0 %v2711_v46  ;;  %2642 = vmatprep.mubr.msk.bf16.mxu0 %vm566_vm7, %v2417_v9 }
  0x82   : > { %v1815_v61 = vsel %vm2903_vm10, %v1810_v17, %v1814_v2  ;;  %2640 = vmatprep.subr.bf16.mxu0 %v2712_v47 }
  0x83   : > { %v2392_v28 = vcombine.low %v1801_v11, %v1815_v61  ;;  %2657 = vmatpush3.bf16.msra.mxu1 %v2712_v47 }
  0x85   : > { %2631 = vmatmul.mubr.msk.bf16.gmra.mxu1 %vm566_vm7, %v2392_v28  ;;  %2641 = vmatpush3.bf16.msra.mxu0 %v2712_v47 }
  0x86   : > { %2646 = vmatprep.mubr.msk.bf16.mxu1 %vm566_vm7, %v2419_v13 }
  0x88   : > { %2643 = vmatmul.mubr.msk.bf16.vlgmr.msra.gmra.mxu0 %vm566_vm7, %v2418_v25 }
  0x8d   : > { %2647 = vmatmul.mubr.msk.bf16.vlgmr.msra.gmra.mxu1 %vm566_vm7, %v2420_v30 }
  0xe7   : > { %v2532_v37 = vpop.f32.mrf.mxu1 }
  0xe9   : > { %v734_v38 = vpop.f32.mrf.mxu1 }
  0xeb   : > { %v2533_v40 = vpop.f32.mrf.mxu1 }
  0xed   : > { %v737_v14 = vpop.f32.mrf.mxu1 }
  0xf8   : > { %v2516_v42 = vpop.f32.mrf.mxu0 }
  0xf9   : > { %v743_v17 = vadd.f32 %v2532_v37, %v2516_v42 }
  0xfa   : > { %v613_v46 = vpop.f32.mrf.mxu0 }
  0xfb   : > { %v735_v19 = vadd.f32 %v734_v38, %v613_v46 }
  0xfc   : > { %v2517_v39 = vpop.f32.mrf.mxu0 }
  0xfd   : > { %v746_v22 = vadd.f32 %v2533_v40, %v2517_v39 }
  0xfe   : > { %v616_v35 = vpop.f32.mrf.mxu0 }
  0xff   : > { %v2536_v43 = vpop.f32.mrf.mxu1  ;;  %v738_v32 = vadd.f32 %v737_v14, %v616_v35 }
 0x101   : > { %v750_v45 = vpop.f32.mrf.mxu1 }
 0x103   : > { %v2537_v50 = vpop.f32.mrf.mxu1 }
 0x105   : > { %v753_v44 = vpop.f32.mrf.mxu1 }
 0x107   : > { %v2564_v51 = vpop.f32.mrf.mxu1 }
 0x109   : > { %v1060_v56 = vpop.f32.mrf.mxu1 }
 0x10b   : > { %v2565_v55 = vpop.f32.mrf.mxu1 }
 0x10d   : > { %v3300_v29 = vpop.f32.mrf.mxu1 }
 0x10e   : > { %v2520_v52 = vpop.f32.mrf.mxu0  ;;  %3355 = vst [vmem:[#allocation3_spill] sm:$0xff] %v3300_v29 }
 0x10f   : > { %v759_v20 = vadd.f32 %v2536_v43, %v2520_v52 }
 0x110   : > { %v629_v49 = vpop.f32.mrf.mxu0 }
 0x111   : > { %v751_v26 = vadd.f32 %v750_v45, %v629_v49 }
 0x112   : > { %v2521_v33 = vpop.f32.mrf.mxu0 }
 0x113   : > { %v762_v30 = vadd.f32 %v2537_v50, %v2521_v33 }
 0x114   : > { %v632_v15 = vpop.f32.mrf.mxu0 }
 0x115   : > { %v2568_v34 = vpop.f32.mrf.mxu1  ;;  %v754_v29 = vadd.f32 %v753_v44, %v632_v15  ;;  %v3359_v50 = vld [vmem:[#allocation3_spill] sm:$0xff] }
 0x116   : > { %v2548_v31 = vpop.f32.mrf.mxu0 }
 0x117   : > { %v1076_v1 = vpop.f32.mrf.mxu1  ;;  %v947_v13 = vadd.f32 %v2548_v31, %v743_v17 }
 0x118   : > { %v914_v47 = vpop.f32.mrf.mxu0 }
 0x119   : > { %v2569_v58 = vpop.f32.mrf.mxu1  ;;  %v945_v61 = vadd.f32 %v914_v47, %v735_v19  ;;  %v1093_v54 = vadd.f32 %v2564_v51, %v947_v13 }
 0x11a   : > { %v2549_v23 = vpop.f32.mrf.mxu0 }
 0x11b   : > { %v1079_v0 = vpop.f32.mrf.mxu1  ;;  %v948_v25 = vadd.f32 %v2549_v23, %v746_v22  ;;  %v1091_v37 = vadd.f32 %v1060_v56, %v945_v61 }
 0x11c   : > { %v917_v16 = vpop.f32.mrf.mxu0 }
 0x11d   : > { %v2596_v48 = vpop.f32.mrf.mxu1  ;;  %v946_v38 = vadd.f32 %v917_v16, %v738_v32  ;;  %v1094_v39 = vadd.f32 %v2565_v55, %v948_v25 }
 0x11e   : > { %v2552_v57 = vpop.f32.mrf.mxu0 }
 0x11f   : > { %v1502_v3 = vpop.f32.mrf.mxu1  ;;  %v951_v7 = vadd.f32 %v2552_v57, %v759_v20  ;;  %v1092_v35 = vadd.f32 %v3359_v50, %v946_v38 }
 0x120   : > { %v930_v36 = vpop.f32.mrf.mxu0 }
 0x121   : > { %v2597_v5 = vpop.f32.mrf.mxu1  ;;  %v1097_v43 = vadd.f32 %v2568_v34, %v951_v7 }
 0x122   : > { %v2553_v60 = vpop.f32.mrf.mxu0 }
 0x123   : > { %v3302_v24 = vpop.f32.mrf.mxu1  ;;  %v952_v46 = vadd.f32 %v2553_v60, %v762_v30 }
 0x124   : > { %v933_v62 = vpop.f32.mrf.mxu0  ;;  %3356 = vst [vmem:[#allocation4_spill] sm:$0xff] %v3302_v24 }
 0x125   : > { %v950_v31 = vadd.f32 %v933_v62, %v754_v29  ;;  %v1098_v57 = vadd.f32 %v2569_v58, %v952_v46 }
 0x126   : > { %v2580_v2 = vpop.f32.mrf.mxu0 }
 0x127   : > { %v1350_v24 = vadd.f32 %v2580_v2, %v1093_v54  ;;  %v1096_v34 = vadd.f32 %v1079_v0, %v950_v31 }
 0x128   : > { %v1317_v4 = vpop.f32.mrf.mxu0 }
 0x129   : > { %v1348_v40 = vadd.f32 %v1317_v4, %v1091_v37  ;;  %v1535_v51 = vadd.f32 %v2596_v48, %v1350_v24 }
 0x12a   : > { %v2581_v6 = vpop.f32.mrf.mxu0 }
 0x12b   : > { %v1351_v23 = vadd.f32 %v2581_v6, %v1094_v39  ;;  %v1533_v44 = vadd.f32 %v1502_v3, %v1348_v40 }
 0x12c   : > { %v1320_v59 = vpop.f32.mrf.mxu0 }
 0x12d   : > { %v1349_v15 = vadd.f32 %v1320_v59, %v1092_v35  ;;  %v1536_v62 = vadd.f32 %v2597_v5, %v1351_v23  ;;  %v2429_v5 = vld [vmem:[%s3343_s2] ss:$0 sm:$0xff] }
 0x12e   : > { %v2600_v8 = vpop.f32.mrf.mxu1 }
 0x130   : > { %v1518_v63 = vpop.f32.mrf.mxu1  ;;  %v2584_v10 = vpop.f32.mrf.mxu0 }
 0x131   : > { %v1354_v45 = vadd.f32 %v2584_v10, %v1097_v43 }
 0x132   : > { %v3304_v11 = vpop.f32.mrf.mxu1  ;;  %v1333_v27 = vpop.f32.mrf.mxu0 }
 0x133   : > { %3357 = vst [vmem:[#allocation5_spill] sm:$0xff] %v3304_v11  ;;  %v949_v11 = vadd.f32 %v930_v36, %v751_v26  ;;  %v1539_v60 = vadd.f32 %v2600_v8, %v1354_v45 }
 0x134   : > { %v3306_v12 = vpop.f32.mrf.mxu1  ;;  %v2585_v53 = vpop.f32.mrf.mxu0 }
 0x135   : > { %3358 = vst [vmem:[#allocation6_spill] sm:$0xff] %v3306_v12  ;;  %v1095_v49 = vadd.f32 %v1076_v1, %v949_v11  ;;  %v1355_v16 = vadd.f32 %v2585_v53, %v1098_v57 }
 0x136   : > { %v2628_v18 = vpop.f32.mrf.mxu1  ;;  %v1336_v41 = vpop.f32.mrf.mxu0 }
 0x137   : > { %v1352_v33 = vadd.f32 %v1333_v27, %v1095_v49  ;;  %v1353_v1 = vadd.f32 %v1336_v41, %v1096_v34  ;;  %v3360_v27 = vld [vmem:[#allocation4_spill] sm:$0xff] }
 0x138   : > { %v2612_v21 = vpop.f32.mrf.mxu0  ;;  %v1906_v9 = vpop.f32.mrf.mxu1  ;;  %v1534_v58 = vadd.f32 %v3360_v27, %v1349_v15 }
 0x139   : > { %v1682_v36 = vadd.f32 %v2612_v21, %v1535_v51  ;;  %v1537_v6 = vadd.f32 %v1518_v63, %v1352_v33 }
 0x13a   : > { %v1649_v28 = vpop.f32.mrf.mxu0  ;;  %v2629_v42 = vpop.f32.mrf.mxu1  ;;  %v3361_v19 = vld [vmem:[#allocation5_spill] sm:$0xff] }
 0x13b   : > { %v1680_v55 = vadd.f32 %v1649_v28, %v1533_v44  ;;  %v1939_v11 = vadd.f32 %v2628_v18, %v1682_v36  ;;  %v1540_v3 = vadd.f32 %v3361_v19, %v1355_v16 }
 0x13c   : > { %v2613_v12 = vpop.f32.mrf.mxu0  ;;  %v1909_v14 = vpop.f32.mrf.mxu1  ;;  %v3362_v41 = vld [vmem:[#allocation6_spill] sm:$0xff] }
 0x13d   : > { %v1683_v24 = vadd.f32 %v2613_v12, %v1536_v62  ;;  %v1937_v8 = vadd.f32 %v1906_v9, %v1680_v55  ;;  %v1538_v12 = vadd.f32 %v3362_v41, %v1353_v1 }
 0x13e   : > { %v1652_v52 = vpop.f32.mrf.mxu0 }
 0x13f   : > { %v1681_v13 = vadd.f32 %v1652_v52, %v1534_v58  ;;  %v1940_v26 = vadd.f32 %v2629_v42, %v1683_v24 }
 0x140   : > { %v2616_v47 = vpop.f32.mrf.mxu0 }
 0x141   : > { %v1686_v4 = vadd.f32 %v2616_v47, %v1539_v60  ;;  %v1938_v46 = vadd.f32 %v1909_v14, %v1681_v13 }
 0x142   : > { %v1665_v56 = vpop.f32.mrf.mxu0 }
 0x143   : > { %v1684_v17 = vadd.f32 %v1665_v56, %v1537_v6 }
 0x144   : > { %v2617_v2 = vpop.f32.mrf.mxu0 }
 0x145   : > { %v2632_v29 = vpop.f32.mrf.mxu1  ;;  %v1687_v63 = vadd.f32 %v2617_v2, %v1540_v3 }
 0x146   : > { %v1668_v48 = vpop.f32.mrf.mxu0  ;;  %v1943_v20 = vadd.f32 %v2632_v29, %v1686_v4 }
 0x147   : > { %v1922_v10 = vpop.f32.mrf.mxu1  ;;  %v1685_v28 = vadd.f32 %v1668_v48, %v1538_v12 }
 0x148   : > { %v2644_v59 = vpop.f32.mrf.mxu0  ;;  %v1941_v7 = vadd.f32 %v1922_v10, %v1684_v17 }
 0x149   : > { %v2633_v53 = vpop.f32.mrf.mxu1  ;;  %v2124_v0 = vadd.f32 %v2644_v59, %v1939_v11 }
 0x14a   : > { %v2091_v21 = vpop.f32.mrf.mxu0  ;;  %v1944_v38 = vadd.f32 %v2633_v53, %v1687_v63 }
 0x14b   : > { %v1925_v18 = vpop.f32.mrf.mxu1  ;;  %v2139_v22 = vadd.f32 %v2429_v5, %v2124_v0  ;;  %v2122_v61 = vadd.f32 %v2091_v21, %v1937_v8 }
 0x14c   : > { %v2645_v25 = vpop.f32.mrf.mxu0  ;;  %v1942_v51 = vadd.f32 %v1925_v18, %v1685_v28 }
 0x14d   : > { %v2648_v54 = vpop.f32.mrf.mxu1  ;;  %vm2147_vm14 = vcmp.gt.f32.partialorder %v2139_v22, 0.0  ;;  %v2155_v9 = vmul.f32 0.2, %v2139_v22  ;;  %v2137_v32 = vadd.f32 %v2429_v5, %v2122_v61  ;;  %v2125_v30 = vadd.f32 %v2645_v25, %v1940_v26 }
 0x14e   : > { %v2128_v37 = vadd.f32 %v2648_v54, %v1943_v20  ;;  %v2094_v43 = vpop.f32.mrf.mxu0 }
 0x14f   : > { %v2107_v52 = vpop.f32.mrf.mxu1  ;;  %v2163_v40 = vsel %vm2147_vm14, %v2139_v22, %v2155_v9  ;;  %vm2145_vm15 = vcmp.gt.f32.partialorder %v2137_v32, 0.0  ;;  %v2153_v39 = vmul.f32 0.2, %v2137_v32  ;;  %v2140_v31 = vadd.f32 %v2429_v5, %v2125_v30 }
 0x150   : > { %v2143_v45 = vadd.f32 %v2429_v5, %v2128_v37  ;;  %v2126_v42 = vadd.f32 %v2107_v52, %v1941_v7  ;;  %v2171_v49 = vpack.c.bf16 %v2163_v40, %v2163_v40  ;;  %v2123_v47 = vadd.f32 %v2094_v43, %v1938_v46 }
 0x151   : > { %v2649_v23 = vpop.f32.mrf.mxu1  ;;  %v2161_v14 = vsel %vm2145_vm15, %v2137_v32, %v2153_v39  ;;  %vm2148_vm1 = vcmp.gt.f32.partialorder %v2140_v31, 0.0  ;;  %v2156_v50 = vmul.f32 0.2, %v2140_v31 }
 0x152   : > { %vm2151_vm2 = vcmp.gt.f32.partialorder %v2143_v45, 0.0  ;;  %v2159_v35 = vmul.f32 0.2, %v2143_v45  ;;  %v2141_v33 = vadd.f32 %v2429_v5, %v2126_v42  ;;  %v2129_v57 = vadd.f32 %v2649_v23, %v1944_v38  ;;  %2179 = vst.msk [vmem:[%s3320_s21 + $0x8] sm:$0xf] %vm172_vm0, %v2171_v49 }
 0x153   : > { %v2169_v56 = vpack.c.bf16 %v2161_v14, %v2161_v14  ;;  %v2164_v36 = vsel %vm2148_vm1, %v2140_v31, %v2156_v50  ;;  %v2138_v44 = vadd.f32 %v2429_v5, %v2123_v47  ;;  %v2110_v60 = vpop.f32.mrf.mxu1 }
 0x154   : > { %v2167_v15 = vsel %vm2151_vm2, %v2143_v45, %v2159_v35  ;;  %vm2149_vm3 = vcmp.gt.f32.partialorder %v2141_v33, 0.0  ;;  %v2157_v16 = vmul.f32 0.2, %v2141_v33  ;;  %v2144_v34 = vadd.f32 %v2429_v5, %v2129_v57 }
 0x155   : > { %v2175_v2 = vpack.c.bf16 %v2167_v15, %v2167_v15  ;;  %v2127_v55 = vadd.f32 %v2110_v60, %v1942_v51  ;;  %2177 = vst.msk [vmem:[%s3320_s21] sm:$0xf] %vm172_vm0, %v2169_v56  ;;  %v2172_v29 = vpack.c.bf16 %v2164_v36, %v2164_v36  ;;  %vm2146_vm4 = vcmp.gt.f32.partialorder %v2138_v44, 0.0 }
 0x156   : > { %v2165_v62 = vsel %vm2149_vm3, %v2141_v33, %v2157_v16  ;;  %vm2152_vm5 = vcmp.gt.f32.partialorder %v2144_v34, 0.0  ;;  %v2160_v1 = vmul.f32 0.2, %v2144_v34  ;;  %v2154_v4 = vmul.f32 0.2, %v2138_v44 }
 0x157   : > { %2183 = vst.msk [vmem:[%s3320_s21 + $0x18] sm:$0xf] %vm172_vm0, %v2175_v2  ;;  %v2173_v6 = vpack.c.bf16 %v2165_v62, %v2165_v62  ;;  %v2142_v48 = vadd.f32 %v2429_v5, %v2127_v55  ;;  %2180 = vst.msk [vmem:[%s3320_s21 + $0xc] sm:$0xf] %vm172_vm0, %v2172_v29 }
 0x158   : > { %v2168_v24 = vsel %vm2152_vm5, %v2144_v34, %v2160_v1  ;;  %v2162_v10 = vsel %vm2146_vm4, %v2138_v44, %v2154_v4 }
 0x159   : > { %2181 = vst.msk [vmem:[%s3320_s21 + $0x10] sm:$0xf] %vm172_vm0, %v2173_v6  ;;  %v2176_v11 = vpack.c.bf16 %v2168_v24, %v2168_v24  ;;  %vm2150_vm6 = vcmp.gt.f32.partialorder %v2142_v48, 0.0  ;;  %v2158_v27 = vmul.f32 0.2, %v2142_v48  ;;  %v2170_v58 = vpack.c.bf16 %v2162_v10, %v2162_v10 }
 0x15b   : > { %2184 = vst.msk [vmem:[%s3320_s21 + $0x1c] sm:$0xf] %vm172_vm0, %v2176_v11  ;;  %v2166_v17 = vsel %vm2150_vm6, %v2142_v48, %v2158_v27  ;;  %2178 = vst.msk [vmem:[%s3320_s21 + $0x4] sm:$0xf] %vm172_vm0, %v2170_v58 }
 0x15c   : > { %v2174_v19 = vpack.c.bf16 %v2166_v17, %v2166_v17 }
 0x15e   : > { %2182 = vst.msk [vmem:[%s3320_s21 + $0x14] sm:$0xf] %vm172_vm0, %v2174_v19 }
 0x15f PF: > { %s13_s12 = sadd.s32 1, %s2721_s12  }
 0x160   : > { %p10_p4 = scmp.ge.s32.totalorder %s13_s12, 4  }
 0x162   :  { %12 = sbr.rel (!%p10_p4) target bundleno = 1 (0x1), region = 67 }

// kernel: fc_discriminator.8
= control target key start
LH: loop header
LB: loop body
LE: loop exit
PB: predicated region body
PF: predicated region fallthrough
CT: control target
= control target key end

     0   :  { %s2128_s12 = smov 0   ;;  %s2479_s0 = inlined_call_operand.vmem [shape: bf16[2,4,4,64], index: 0, kind: input, shape index: {}]   ;;  %s2480_s1 = inlined_call_operand.vmem [shape: bf16[3,192,64], index: 1, kind: input, shape index: {}]   ;;  %s2481_s2 = inlined_call_operand.vmem [shape: f32[1,64], index: 2, kind: input, shape index: {}]   ;;  %s2482_s3 = inlined_call_operand.vmem [shape: bf16[2,4,4,64], index: 3, kind: output, shape index: {}]  }
   0x1 LB: > { %s1736_s13 = sadd.s32 4294967295, %s2102_s12   ;;  %p1740_p0 = scmp.ge.s32.totalorder %s2102_s12, 1  ;;  %s2102_s12 = sphi %s2128_s12, %s13_s12  }
   0x2   : > { %p137_p1 = scmp.lt.s32.totalorder %s2102_s12, 3 }
   0x4   : > { %p138_p2 = pnand %p1740_p0, %p137_p1 }
   0x5   : > { %p161_p3 = scmp.lt.s32.totalorder (!%p138_p2), %s1736_s13, 1 }
   0x6   : > { %141 = sbr.rel (%p138_p2) target bundleno = 331 (0x14b), region = 32 }
   0xb   : > { %v2048_v0 = vld [vmem:[%s2480_s1 + $0x38] sm:$0xff]   ;;  %v2104_v1 = vmov 0.0   ;;  %v2050_v3 = vld [vmem:[%s2480_s1 + $0x30] sm:$0xff]   ;;  %vm2105_vm0 = vmmov 0   ;;  %vm172_vm1 = vcmask 518144   ;;  %s2498_s13 = smov (!%p161_p3, %s1736_s13), 1  ;;  %v430_v49 = vlaneseq }
   0xc   : > { %1928 = vmatprep.subr.bf16.mxu0 %v2104_v1  ;;  %1940 = vmatprep.subr.bf16.mxu1 %v2104_v1  ;;  %v2049_v2 = vld [vmem:[%s2480_s1 + $0x18] sm:$0xff]   ;;  %v2051_v4 = vld [vmem:[%s2480_s1 + $0x10] sm:$0xff]   ;;  %v2052_v5 = vld [vmem:[%s2480_s1 + $0x28] sm:$0xff]   ;;  %s1881_s24 = sshll.u32 %s2498_s13, 3  ;;  %v2106_v6 = vmov 0   ;;  %vm176_vm2 = vcmask 516096  }
   0xd   : > { %1929 = vmatpush3.bf16.msra.mxu0 %v2048_v0  ;;  %1936 = vmatprep.mubr.msk.bf16.mxu0 %vm2105_vm0, %v2104_v1  ;;  %173 = vst.msk [vmem:[#allocation2] sm:$0x7] %vm172_vm1, %v2106_v6  ;;  %175 = vst.msk [vmem:[#allocation2 + $0x14] sm:$0x7] %vm172_vm1, %v2106_v6  ;;  %v2053_v7 = vld [vmem:[%s2480_s1 + $0x8] sm:$0xff]   ;;  %s2174_s29 = scalar_lea.vmem %s2479_s0, %s1881_s24  ;;  %vm197_vm5 = vcmask 518146   ;;  %s170_s21 = scalar_lea.vmem %s2482_s3, %s1881_s24 }
   0xe   : > { %1941 = vmatpush3.bf16.msra.mxu1 %v2049_v2  ;;  %1930 = vmatprep.subr.bf16.mxu0 %v2104_v1  ;;  %vm177_vm3 = vsmask.f32 256  ;;  %v182_v8 = vld [vmem:[#allocation2 + $0x4] sm:$0x1]  ;;  %v185_v9 = vld [vmem:[#allocation2 + $0x8] sm:$0x1] }
   0xf   : > { %1942 = vmatprep.subr.bf16.mxu1 %v2104_v1  ;;  %1948 = vmatprep.mubr.msk.bf16.mxu1 %vm2105_vm0, %v2104_v1  ;;  %vm2176_vm4 = vmand %vm176_vm2, %vm177_vm3  ;;  %v188_v11 = vld [vmem:[#allocation2 + $0xc] sm:$0x1]  ;;  %vm198_vm6 = vsmask.f32 7946  ;;  %v2054_v12 = vld [vmem:[%s2480_s1 + $0x20] sm:$0xff]   ;;  %v431_v60 = vshrl.u32 %v430_v49, 7 }
  0x10   : > { %v183_v13 = vsel %vm2176_vm4, 0, %v182_v8  ;;  %v186_v14 = vsel %vm2176_vm4, 0, %v185_v9  ;;  %v189_v15 = vsel %vm2176_vm4, 0, %v188_v11  ;;  %vm2189_vm7 = vmand %vm197_vm5, %vm198_vm6  ;;  %v203_v17 = vld [vmem:[#allocation2 + $0x4] sm:$0x4]  ;;  %vm466_vm15 = vcmask 523264  }
  0x11   : > { %1931 = vmatpush3.bf16.msra.mxu0 %v2050_v3  ;;  %v2055_v18 = vld [vmem:[%s2480_s1] sm:$0xff]   ;;  %184 = vst [vmem:[#allocation2 + $0x4] sm:$0x1] %v183_v13  ;;  %187 = vst [vmem:[#allocation2 + $0x8] sm:$0x1] %v186_v14  ;;  %v204_v19 = vsel %vm2189_vm7, 0, %v203_v17 }
  0x12   : > { %1943 = vmatpush3.bf16.msra.mxu1 %v2051_v4  ;;  %1932 = vmatprep.subr.bf16.mxu0 %v2104_v1  ;;  %190 = vst [vmem:[#allocation2 + $0xc] sm:$0x1] %v189_v15  ;;  %v206_v20 = vld [vmem:[#allocation2 + $0x8] sm:$0x4]  ;;  %v209_v21 = vld [vmem:[#allocation2 + $0xc] sm:$0x4] }
  0x13   : > { %1944 = vmatprep.subr.bf16.mxu1 %v2104_v1  ;;  %205 = vst [vmem:[#allocation2 + $0x4] sm:$0x4] %v204_v19  ;;  %v207_v22 = vsel %vm2189_vm7, 0, %v206_v20  ;;  %v210_v23 = vsel %vm2189_vm7, 0, %v209_v21  ;;  %vm288_vm8 = vsmask.f32 2306 }
  0x14   : > { %v1745_v24 = vld.sshfl [vmem:[%s2174_s29] sm:$0x3 pattern:$0x76325410]  ;;  %v200_v26 = vld [vmem:[#allocation2] sm:$0x4]  ;;  %vm2214_vm9 = vmand %vm172_vm1, %vm288_vm8 }
  0x15   : > { %1933 = vmatpush3.bf16.msra.mxu0 %v2052_v5  ;;  %v179_v25 = vld [vmem:[#allocation2] sm:$0x1]  ;;  %208 = vst [vmem:[#allocation2 + $0x8] sm:$0x4] %v207_v22  ;;  %211 = vst [vmem:[#allocation2 + $0xc] sm:$0x4] %v210_v23 }
  0x16   : > { %1945 = vmatpush3.bf16.msra.mxu1 %v2053_v7  ;;  %1934 = vmatprep.subr.bf16.mxu0 %v2104_v1  ;;  %v255_v27 = vshrl.u32 %v1745_v24, 16  ;;  %v258_v28 = vshll.u32 %v1745_v24, 16  ;;  %v180_v29 = vsel %vm2176_vm4, 0, %v179_v25  ;;  %v201_v30 = vsel %vm2189_vm7, 0, %v200_v26  ;;  %v2064_v40 = vld [vmem:[%s2480_s1 + $0x40] sm:$0xff]  }
  0x17   : > { %1946 = vmatprep.subr.bf16.mxu1 %v2104_v1  ;;  %v1746_v31 = vld.sshfl [vmem:[%s2174_s29 + $0x2] sm:$0x3 pattern:$0x76325410]  ;;  %181 = vst [vmem:[#allocation2] sm:$0x1] %v180_v29 }
  0x18   : > { %202 = vst [vmem:[#allocation2] sm:$0x4] %v201_v30  ;;  %v1747_v32 = vld.sshfl [vmem:[%s2174_s29 + $0x4] sm:$0x3 pattern:$0x76325410] }
  0x19   : > { %1935 = vmatpush3.bf16.msra.mxu0 %v2054_v12  ;;  %v257_v33 = vrot.slane %v255_v27, 7  ;;  %v262_v34 = vshrl.u32 %v1746_v31, 16  ;;  %v265_v35 = vshll.u32 %v1746_v31, 16  ;;  %v269_v36 = vshrl.u32 %v1747_v32, 16  ;;  %v2059_v31 = vld [vmem:[%s2480_s1 + $0x78] sm:$0xff]   ;;  %v2082_v21 = vld [vmem:[%s2480_s1 + $0xc0] sm:$0xff]  }
  0x1a   : > { %1947 = vmatpush3.bf16.msra.mxu1 %v2055_v18  ;;  %1952 = vmatprep.subr.bf16.mxu0 %v2104_v1  ;;  %v272_v37 = vshll.u32 %v1747_v32, 16  ;;  %vm354_vm10 = vsmask.f32 1280  ;;  %vm355_vm11 = vsmask.f32 3336  ;;  %vm640_vm3 = vcmask 1040384  }
  0x1b   : > { %1964 = vmatprep.subr.bf16.mxu1 %v2104_v1  ;;  %v260_v38 = vor.u32 %v258_v28, %v257_v33  ;;  %v264_v39 = vrot.slane %v262_v34, 7  ;;  %v271_v41 = vrot.slane %v269_v36, 7  ;;  %v290_v43 = vld [vmem:[#allocation2 + $0x4] sm:$0x7]  ;;  %vm357_vm12 = vsmask.f32 5392  ;;  %vm356_vm14 = vmor %vm354_vm10, %vm355_vm11 }
  0x1c   : > { %v293_v46 = vld [vmem:[#allocation2 + $0x8] sm:$0x7]  ;;  %v296_v47 = vld [vmem:[#allocation2 + $0xc] sm:$0x7]  ;;  %v2107_v52 = vmov 1983009808   ;;  %vm358_vm1 = vmor %vm356_vm14, %vm357_vm12 }
  0x1d   : > { %v267_v42 = vor.u32 %v265_v35, %v264_v39  ;;  %v274_v44 = vor.u32 %v272_v37, %v271_v41  ;;  %v291_v45 = vsel %vm2214_vm9, %v260_v38, %v290_v43  ;;  %v428_v53 = vunpack.c.l.s4 %v2107_v52 }
  0x1e   : > { %292 = vst [vmem:[#allocation2 + $0x4] sm:$0x7] %v291_v45  ;;  %vm359_vm13 = vsmask.f32 7448  ;;  %vm641_vm5 = vcmask 1042434   ;;  %vm643_vm8 = vcmask 1044484  }
  0x1f   : > { %v294_v48 = vsel %vm2214_vm9, %v267_v42, %v293_v46  ;;  %v297_v50 = vsel %vm2214_vm9, %v274_v44, %v296_v47  ;;  %v1749_v51 = vld.sshfl [vmem:[#allocation2] sm:$0x13 pattern:$0x76325410]  ;;  %v429_v61 = vunpack.c.0.s8 %v428_v53  ;;  %vm2230_vm2 = vmor %vm358_vm1, %vm359_vm13  ;;  %vm645_vm10 = vcmask 1046534  }
  0x20   : > { %295 = vst [vmem:[#allocation2 + $0x8] sm:$0x7] %v294_v48  ;;  %298 = vst [vmem:[#allocation2 + $0xc] sm:$0x7] %v297_v50  ;;  %v329_v54 = vcombine.high %v1749_v51, %v1749_v51  ;;  %v362_v55 = vshrl.u32 %v1749_v51, 16  ;;  %v365_v56 = vshll.u32 %v1749_v51, 16 }
  0x21   : > { %v2227_v11 = vsub.s32 %v429_v61, %v431_v60  ;;  %v1763_v36 = vld.sshfl [vmem:[#allocation2] sm:$0x12 pattern:$0x76325410]  ;;  %vm2245_vm6 = vmor %vm640_vm3, %vm641_vm5  ;;  %v2061_v50 = vld [vmem:[%s2480_s1 + $0x70] sm:$0xff]  }
  0x22   : > { %v364_v57 = vrot.slane %v362_v55, 6  ;;  %v367_v58 = vrot.slane %v365_v56, 7  ;;  %v371_v59 = vshll.u32 %v329_v54, 16  ;;  %v615_v42 = vcombine.high %v1763_v36, %v1763_v36  ;;  %v191_v56 = vld [vmem:[#allocation2 + $0x10] sm:$0x1]  ;;  %vm2268_vm11 = vmor %vm2245_vm6, %vm643_vm8 }
  0x23   : > { %v1767_v55 = vrot.slane %v1763_v36, 9  ;;  %v212_v61 = vld [vmem:[#allocation2 + $0x10] sm:$0x4]  ;;  %vm2292_vm12 = vmor %vm2268_vm11, %vm645_vm10  ;;  %v194_v36 = vld [vmem:[#allocation2 + $0x14] sm:$0x1] }
  0x24   : > { %v368_v62 = vor.u32 %v367_v58, %v364_v57  ;;  %v373_v63 = vrot.slane %v371_v59, 7  ;;  %v649_v59 = vrot.slane %v615_v42, 7 }
  0x25   : > { %v1750_v0 = vld.sshfl [vmem:[#allocation2 + $0x4] sm:$0x13 pattern:$0x76325410] }
  0x26   : > { %v337_v3 = vcombine.high %v1750_v0, %v1750_v0  ;;  %v369_v4 = vrot.slane %v368_v62, 2  ;;  %v376_v5 = vshrl.u32 %v1750_v0, 16  ;;  %v379_v8 = vshll.u32 %v1750_v0, 16 }
  0x27   : > { %v1751_v2 = vld.sshfl [vmem:[#allocation2 + $0x8] sm:$0x13 pattern:$0x76325410] }
  0x28   : > { %v1752_v6 = vld.sshfl [vmem:[#allocation2 + $0xc] sm:$0x13 pattern:$0x76325410]  ;;  %v345_v7 = vcombine.high %v1751_v2, %v1751_v2  ;;  %v390_v9 = vshrl.u32 %v1751_v2, 16  ;;  %v378_v13 = vrot.slane %v376_v5, 6  ;;  %v374_v32 = vsel %vm2230_vm2, %v369_v4, %v373_v63 }
  0x29   : > { %v353_v12 = vcombine.high %v1752_v6, %v1752_v6  ;;  %v385_v14 = vshll.u32 %v337_v3, 16  ;;  %v381_v15 = vrot.slane %v379_v8, 7  ;;  %v393_v18 = vshll.u32 %v1751_v2, 16  ;;  %v2058_v4 = vld [vmem:[%s2480_s1 + $0x58] sm:$0xff]  }
  0x2a   : > { %v392_v17 = vrot.slane %v390_v9, 6  ;;  %v399_v19 = vshll.u32 %v345_v7, 16  ;;  %v2090_v20 = vld.sshfl [vmem:[#allocation2] sm:$0xf pattern:$0x76325410] }
  0x2b   : > { %v404_v22 = vshrl.u32 %v1752_v6, 16  ;;  %v407_v23 = vshll.u32 %v1752_v6, 16  ;;  %v413_v24 = vshll.u32 %v353_v12, 16  ;;  %v382_v26 = vor.u32 %v381_v15, %v378_v13  ;;  %v2063_v12 = vld [vmem:[%s2480_s1 + $0x68] sm:$0xff]   ;;  %v2089_v13 = vld [vmem:[%s2480_s1 + $0x100] sm:$0xff]  }
  0x2c   : > { %v2091_v25 = vld.sshfl [vmem:[#allocation2 + $0x8] sm:$0xf pattern:$0x76325410]  ;;  %v387_v27 = vrot.slane %v385_v14, 7  ;;  %v395_v28 = vrot.slane %v393_v18, 7 }
  0x2d   : > { %v406_v29 = vrot.slane %v404_v22, 6  ;;  %v409_v30 = vrot.slane %v407_v23, 7  ;;  %v383_v33 = vrot.slane %v382_v26, 2  ;;  %v401_v35 = vrot.slane %v399_v19, 7 }
  0x2e   : > { %v396_v34 = vor.u32 %v395_v28, %v392_v17  ;;  %v415_v38 = vrot.slane %v413_v24, 7  ;;  %v531_v39 = vcombine.low %v2090_v20, %v2091_v25  ;;  %v1764_v41 = vld.sshfl [vmem:[#allocation2 + $0x4] sm:$0x12 pattern:$0x76325410]  ;;  %v192_v7 = vsel %vm2176_vm4, 0, %v191_v56 }
  0x2f   : > { %v410_v37 = vor.u32 %v409_v30, %v406_v29  ;;  %v2241_v43 = vsel %vm2230_vm2, %v383_v33, %v387_v27  ;;  %v1765_v45 = vld.sshfl [vmem:[#allocation2 + $0x8] sm:$0x12 pattern:$0x76325410]  ;;  %v623_v46 = vcombine.high %v1764_v41, %v1764_v41  ;;  %v1768_v60 = vrot.slane %v1764_v41, 9  ;;  %v2065_v20 = vld [vmem:[%s2480_s1 + $0x60] sm:$0xff]  }
  0x30   : > { %v397_v44 = vrot.slane %v396_v34, 2  ;;  %v425_v49 = vcombine.low %v374_v32, %v2241_v43  ;;  %1949 = vmatmul.mubr.msk.bf16.vlgmr.msra.gmra.mxu1 %vm466_vm15, %v531_v39  ;;  %v1766_v51 = vld.sshfl [vmem:[#allocation2 + $0xc] sm:$0x12 pattern:$0x76325410]  ;;  %v631_v52 = vcombine.high %v1765_v45, %v1765_v45  ;;  %v1769_v2 = vrot.slane %v1765_v45, 9 }
  0x31   : > { %v411_v48 = vrot.slane %v410_v37, 2  ;;  %1965 = vmatpush3.bf16.msra.mxu1 %v2059_v31  ;;  %v639_v54 = vcombine.high %v1766_v51, %v1766_v51  ;;  %1972 = vmatprep.mubr.msk.bf16.mxu1 %vm2105_vm0, %v2104_v1  ;;  %v653_v0 = vrot.slane %v623_v46, 7  ;;  %v1748_v3 = vld.sshfl [vmem:[%s2174_s29 + $0x6] sm:$0x3 pattern:$0x76325410]  ;;  %v650_v22 = vsel %vm2292_vm12, %v1767_v55, %v649_v59 }
  0x32   : > { %v2256_v53 = vsel %vm2230_vm2, %v397_v44, %v401_v35  ;;  %1966 = vmatprep.subr.bf16.mxu1 %v2104_v1  ;;  %v433_v63 = vrot.slane %v425_v49, %v2227_v11  ;;  %v657_v5 = vrot.slane %v631_v52, 7  ;;  %v1770_v6 = vrot.slane %v1766_v51, 9  ;;  %193 = vst [vmem:[#allocation2 + $0x10] sm:$0x1] %v192_v7  ;;  %v2060_v24 = vld [vmem:[%s2480_s1 + $0x50] sm:$0xff]   ;;  %v2062_v32 = vld [vmem:[%s2480_s1 + $0x48] sm:$0xff]  }
  0x33   : > { %v2262_v57 = vsel %vm2230_vm2, %v411_v48, %v415_v38  ;;  %v213_v8 = vsel %vm2189_vm7, 0, %v212_v61  ;;  %v661_v14 = vrot.slane %v639_v54, 7  ;;  %v276_v15 = vshrl.u32 %v1748_v3, 16  ;;  %v2066_v38 = vld [vmem:[%s2480_s1 + $0x98] sm:$0xff]   ;;  %v2070_v55 = vld [vmem:[%s2480_s1 + $0x90] sm:$0xff]   ;;  %v2074_v7 = vld [vmem:[%s2480_s1 + $0x80] sm:$0xff]  }
  0x34   : > { %v426_v62 = vcombine.low %v2256_v53, %v2262_v57  ;;  %214 = vst [vmem:[#allocation2 + $0x10] sm:$0x4] %v213_v8  ;;  %v279_v17 = vshll.u32 %v1748_v3, 16  ;;  %v2310_v25 = vsel %vm2292_vm12, %v1768_v60, %v653_v0  ;;  %v2314_v26 = vsel %vm2292_vm12, %v1769_v2, %v657_v5  ;;  %v2069_v48 = vld [vmem:[%s2480_s1 + $0xb8] sm:$0xff]   ;;  %v215_v60 = vld [vmem:[#allocation2 + $0x14] sm:$0x4] }
  0x35   : > { %1967 = vmatpush3.bf16.msra.mxu1 %v2061_v50  ;;  %v278_v19 = vrot.slane %v276_v15, 7  ;;  %v2318_v27 = vsel %vm2292_vm12, %v1770_v6, %v661_v14  ;;  %v671_v29 = vcombine.low %v650_v22, %v2310_v25  ;;  %v2092_v35 = vld.sshfl [vmem:[#allocation2 + $0x4] sm:$0xf pattern:$0x76325410]  ;;  %v195_v41 = vsel %vm2176_vm4, 0, %v194_v36 }
  0x36   : > { %v2284_v9 = vrot.slane %v426_v62, %v2227_v11  ;;  %1968 = vmatprep.subr.bf16.mxu1 %v2104_v1  ;;  %v672_v30 = vcombine.low %v2314_v26, %v2318_v27  ;;  %196 = vst [vmem:[#allocation2 + $0x14] sm:$0x1] %v195_v41  ;;  %v2071_v61 = vld [vmem:[%s2480_s1 + $0xb0] sm:$0xff]   ;;  %v2072_v0 = vld [vmem:[%s2480_s1 + $0x88] sm:$0xff]   ;;  %v966_v3 = vcombine.low %v2241_v43, %v2256_v53  ;;  %v2076_v22 = vld [vmem:[%s2480_s1 + $0xd8] sm:$0xff]   ;;  %vm1676_vm4 = vcmask 517120  }
  0x37   : > { %v281_v23 = vor.u32 %v279_v17, %v278_v19  ;;  %v679_v33 = vrot.slane %v671_v29, %v2227_v11  ;;  %v1117_v16 = vcombine.low %v2310_v25, %v2314_v26  ;;  %v2073_v6 = vld [vmem:[%s2480_s1 + $0xa8] sm:$0xff]  }
  0x38   : > { %v441_v18 = vcombine.low %v433_v63, %v2284_v9  ;;  %v2335_v34 = vrot.slane %v672_v30, %v2227_v11  ;;  %v216_v63 = vsel %vm2189_vm7, 0, %v215_v60  ;;  %v974_v53 = vrot.slane %v966_v3, %v2227_v11  ;;  %v2078_v30 = vld [vmem:[%s2480_s1 + $0xd0] sm:$0xff]   ;;  %v2080_v36 = vld [vmem:[%s2480_s1 + $0xc8] sm:$0xff]  }
  0x39   : > { %1969 = vmatpush3.bf16.msra.mxu1 %v2063_v12  ;;  %217 = vst [vmem:[#allocation2 + $0x14] sm:$0x4] %v216_v63  ;;  %v1125_v12 = vrot.slane %v1117_v16, %v2227_v11 }
  0x3a   : > { %1937 = vmatmul.mubr.msk.bf16.vlgmr.msra.gmra.mxu0 %vm466_vm15, %v441_v18  ;;  %1970 = vmatprep.subr.bf16.mxu1 %v2104_v1  ;;  %v687_v37 = vcombine.low %v679_v33, %v2335_v34  ;;  %v2094_v33 = vld.sshfl [vmem:[#allocation2 + $0x8] sm:$0xf pattern:$0x76325410] }
  0x3b   : > { %1953 = vmatpush3.bf16.msra.mxu0 %v2058_v4  ;;  %1960 = vmatprep.mubr.msk.bf16.mxu0 %vm2105_vm0, %v2104_v1  ;;  %v299_v28 = vld [vmem:[#allocation2 + $0x10] sm:$0x7] }
  0x3c   : > { %1954 = vmatprep.subr.bf16.mxu0 %v2104_v1  ;;  %v300_v31 = vsel %vm2214_vm9, %v281_v23, %v299_v28 }
  0x3d   : > { %1971 = vmatpush3.bf16.msra.mxu1 %v2065_v20  ;;  %301 = vst [vmem:[#allocation2 + $0x10] sm:$0x7] %v300_v31 }
  0x3e   : > { %1988 = vmatprep.subr.bf16.mxu1 %v2104_v1 }
  0x3f   : > { %1955 = vmatpush3.bf16.msra.mxu0 %v2060_v24 }
  0x40   : > { %1956 = vmatprep.subr.bf16.mxu0 %v2104_v1  ;;  %v1843_v15 = vld.sshfl [vmem:[#allocation2 + $0x14] sm:$0x13 pattern:$0x76325410] }
  0x41   : > { %v1348_v18 = vcombine.high %v1843_v15, %v1843_v15  ;;  %v1392_v19 = vshrl.u32 %v1843_v15, 16  ;;  %v1395_v20 = vshll.u32 %v1843_v15, 16 }
  0x43   : > { %1957 = vmatpush3.bf16.msra.mxu0 %v2062_v32  ;;  %v1394_v24 = vrot.slane %v1392_v19, 6  ;;  %v1397_v25 = vrot.slane %v1395_v20, 7  ;;  %v1401_v26 = vshll.u32 %v1348_v18, 16  ;;  %v2079_v32 = vld [vmem:[%s2480_s1 + $0xf0] sm:$0xff]  }
  0x44   : > { %1958 = vmatprep.subr.bf16.mxu0 %v2104_v1  ;;  %v2093_v39 = vld.sshfl [vmem:[#allocation2 + $0xc] sm:$0xf pattern:$0x76325410] }
  0x45   : > { %v1792_v42 = vld.sshfl [vmem:[#allocation2 + $0x10] sm:$0x13 pattern:$0x76325410]  ;;  %v791_v51 = vcombine.low %v2092_v35, %v2093_v39  ;;  %v1398_v28 = vor.u32 %v1397_v25, %v1394_v24  ;;  %v1403_v29 = vrot.slane %v1401_v26, 7  ;;  %v2081_v39 = vld [vmem:[%s2480_s1 + $0xe8] sm:$0xff]  }
  0x46   : > { %v901_v44 = vcombine.high %v1792_v42, %v1792_v42  ;;  %v945_v45 = vshrl.u32 %v1792_v42, 16  ;;  %v948_v46 = vshll.u32 %v1792_v42, 16  ;;  %v1809_v47 = vld.sshfl [vmem:[#allocation2 + $0x10] sm:$0x12 pattern:$0x76325410] }
  0x47   : > { %1959 = vmatpush3.bf16.msra.mxu0 %v2064_v40  ;;  %v1092_v49 = vcombine.high %v1809_v47, %v1809_v47  ;;  %v1813_v50 = vrot.slane %v1809_v47, 9  ;;  %1973 = vmatmul.mubr.msk.bf16.vlgmr.msra.gmra.mxu1 %vm466_vm15, %v791_v51  ;;  %v1399_v31 = vrot.slane %v1398_v28, 2  ;;  %v2095_v35 = vld.sshfl [vmem:[#allocation2 + $0x10] sm:$0xf pattern:$0x76325410] }
  0x48   : > { %1976 = vmatprep.subr.bf16.mxu0 %v2104_v1  ;;  %v947_v10 = vrot.slane %v945_v45, 6  ;;  %v950_v52 = vrot.slane %v948_v46, 7  ;;  %v954_v54 = vshll.u32 %v901_v44, 16  ;;  %1989 = vmatpush3.bf16.msra.mxu1 %v2069_v48  ;;  %v2083_v44 = vld [vmem:[%s2480_s1 + $0xe0] sm:$0xff]   ;;  %v1238_v45 = vcombine.low %v2094_v33, %v2095_v35  ;;  %v2086_v46 = vld [vmem:[%s2480_s1 + $0x118] sm:$0xff]  }
  0x49   : > { %v1107_v56 = vrot.slane %v1092_v49, 7  ;;  %1996 = vmatprep.mubr.msk.bf16.mxu1 %vm2105_vm0, %v2104_v1  ;;  %1990 = vmatprep.subr.bf16.mxu1 %v2104_v1  ;;  %v1404_v40 = vsel %vm2230_vm2, %v1399_v31, %v1403_v29 }
  0x4a   : > { %1961 = vmatmul.mubr.msk.bf16.vlgmr.msra.gmra.mxu0 %vm466_vm15, %v687_v37  ;;  %v951_v58 = vor.u32 %v950_v52, %v947_v10  ;;  %v956_v59 = vrot.slane %v954_v54, 7  ;;  %v2088_v10 = vld [vmem:[%s2480_s1 + $0x108] sm:$0xff]  }
  0x4b   : > { %1977 = vmatpush3.bf16.msra.mxu0 %v2066_v38  ;;  %1984 = vmatprep.mubr.msk.bf16.mxu0 %vm2105_vm0, %v2104_v1  ;;  %v2366_v62 = vsel %vm2292_vm12, %v1813_v50, %v1107_v56  ;;  %v1860_v38 = vld.sshfl [vmem:[#allocation2 + $0x14] sm:$0x12 pattern:$0x76325410] }
  0x4c   : > { %1978 = vmatprep.subr.bf16.mxu0 %v2104_v1  ;;  %v952_v2 = vrot.slane %v951_v58, 2  ;;  %v1118_v5 = vcombine.low %v2318_v27, %v2366_v62  ;;  %1991 = vmatpush3.bf16.msra.mxu1 %v2071_v61  ;;  %v2077_v27 = vld [vmem:[%s2480_s1 + $0xf8] sm:$0xff]   ;;  %v1539_v41 = vcombine.high %v1860_v38, %v1860_v38  ;;  %v1864_v47 = vrot.slane %v1860_v38, 9  ;;  %v2087_v50 = vld [vmem:[%s2480_s1 + $0x110] sm:$0xff]   ;;  %v1878_v38 = vld [vmem:[%s2481_s2] ss:$0 sm:$0xff] }
  0x4d   : > { %1992 = vmatprep.subr.bf16.mxu1 %v2104_v1 }
  0x4e   : > { %v957_v4 = vsel %vm2230_vm2, %v952_v2, %v956_v59  ;;  %v1132_v14 = vrot.slane %v1118_v5, %v2227_v11  ;;  %v1554_v48 = vrot.slane %v1539_v41, 7 }
  0x4f   : > { %1979 = vmatpush3.bf16.msra.mxu0 %v2070_v55  ;;  %v967_v43 = vcombine.low %v2262_v57, %v957_v4  ;;  %v2075_v57 = vld [vmem:[%s2480_s1 + $0xa0] sm:$0xff]   ;;  %v1414_v37 = vcombine.low %v957_v4, %v1404_v40 }
  0x50   : > { %1980 = vmatprep.subr.bf16.mxu0 %v2104_v1  ;;  %1993 = vmatpush3.bf16.msra.mxu1 %v2073_v6  ;;  %v1133_v23 = vcombine.low %v1125_v12, %v1132_v14  ;;  %v1555_v51 = vsel %vm2292_vm12, %v1864_v47, %v1554_v48 }
  0x51   : > { %v981_v8 = vrot.slane %v967_v43, %v2227_v11  ;;  %1994 = vmatprep.subr.bf16.mxu1 %v2104_v1  ;;  %v1428_v42 = vrot.slane %v1414_v37, %v2227_v11 }
  0x53   : > { %1981 = vmatpush3.bf16.msra.mxu0 %v2072_v0  ;;  %v982_v17 = vcombine.low %v974_v53, %v981_v8  ;;  %v1429_v49 = vcombine.low %v2284_v9, %v1428_v42  ;;  %v1565_v9 = vcombine.low %v2366_v62, %v1555_v51 }
  0x54   : > { %1982 = vmatprep.subr.bf16.mxu0 %v2104_v1  ;;  %1995 = vmatpush3.bf16.msra.mxu1 %v2075_v57 }
  0x55   : > { %2012 = vmatprep.subr.bf16.mxu1 %v2104_v1  ;;  %v1579_v52 = vrot.slane %v1565_v9, %v2227_v11 }
  0x57   : > { %1983 = vmatpush3.bf16.msra.mxu0 %v2074_v7  ;;  %1997 = vmatmul.mubr.msk.bf16.vlgmr.msra.gmra.mxu1 %vm466_vm15, %v1133_v23  ;;  %v1580_v54 = vcombine.low %v2335_v34, %v1579_v52 }
  0x58   : > { %2000 = vmatprep.subr.bf16.mxu0 %v2104_v1  ;;  %2013 = vmatpush3.bf16.msra.mxu1 %v2077_v27 }
  0x59   : > { %2020 = vmatprep.mubr.msk.bf16.mxu1 %vm2105_vm0, %v2104_v1  ;;  %2014 = vmatprep.subr.bf16.mxu1 %v2104_v1 }
  0x5a   : > { %1985 = vmatmul.mubr.msk.bf16.vlgmr.msra.gmra.mxu0 %vm466_vm15, %v982_v17 }
  0x5b   : > { %2001 = vmatpush3.bf16.msra.mxu0 %v2076_v22  ;;  %2008 = vmatprep.mubr.msk.bf16.mxu0 %vm2105_vm0, %v2104_v1 }
  0x5c   : > { %2002 = vmatprep.subr.bf16.mxu0 %v2104_v1  ;;  %2015 = vmatpush3.bf16.msra.mxu1 %v2079_v32 }
  0x5d   : > { %2016 = vmatprep.subr.bf16.mxu1 %v2104_v1 }
  0x5f   : > { %2003 = vmatpush3.bf16.msra.mxu0 %v2078_v30 }
  0x60   : > { %2004 = vmatprep.subr.bf16.mxu0 %v2104_v1  ;;  %2017 = vmatpush3.bf16.msra.mxu1 %v2081_v39 }
  0x61   : > { %2018 = vmatprep.subr.bf16.mxu1 %v2104_v1 }
  0x63   : > { %2005 = vmatpush3.bf16.msra.mxu0 %v2080_v36 }
  0x64   : > { %2006 = vmatprep.subr.bf16.mxu0 %v2104_v1  ;;  %2019 = vmatpush3.bf16.msra.mxu1 %v2083_v44 }
  0x67   : > { %2007 = vmatpush3.bf16.msra.mxu0 %v2082_v21  ;;  %2021 = vmatmul.mubr.msk.bf16.vlgmr.msra.gmra.mxu1 %vm466_vm15, %v1429_v49 }
  0x68   : > { %2024 = vmatprep.subr.bf16.mxu0 %v2104_v1 }
  0x6a   : > { %2009 = vmatmul.mubr.msk.bf16.vlgmr.msra.gmra.mxu0 %vm466_vm15, %v1238_v45 }
  0x6b   : > { %2025 = vmatpush3.bf16.msra.mxu0 %v2086_v46  ;;  %2032 = vmatprep.mubr.msk.bf16.mxu0 %vm2105_vm0, %v2104_v1 }
  0x6c   : > { %2026 = vmatprep.subr.bf16.mxu0 %v2104_v1 }
  0x6f   : > { %2027 = vmatpush3.bf16.msra.mxu0 %v2087_v50 }
  0x70   : > { %2028 = vmatprep.subr.bf16.mxu0 %v2104_v1 }
  0x73   : > { %2029 = vmatpush3.bf16.msra.mxu0 %v2088_v10 }
  0x74   : > { %2030 = vmatprep.subr.bf16.mxu0 %v2104_v1 }
  0x77   : > { %2031 = vmatpush3.bf16.msra.mxu0 %v2089_v13 }
  0x7a   : > { %2033 = vmatmul.mubr.msk.bf16.vlgmr.msra.gmra.mxu0 %vm466_vm15, %v1580_v54 }
  0xf0   : > { %v593_v55 = vpop.f32.mrf.mxu1 }
  0xf2   : > { %v1950_v56 = vpop.f32.mrf.mxu1 }
  0xf4   : > { %v596_v58 = vpop.f32.mrf.mxu1 }
  0xf6   : > { %v1951_v59 = vpop.f32.mrf.mxu1 }
  0xfa   : > { %v504_v60 = vpop.f32.mrf.mxu0 }
  0xfb   : > { %v594_v57 = vadd.f32 %v593_v55, %v504_v60 }
  0xfc   : > { %v1938_v61 = vpop.f32.mrf.mxu0 }
  0xfe   : > { %v507_v62 = vpop.f32.mrf.mxu0 }
  0xff   : > { %v597_v18 = vadd.f32 %v596_v58, %v507_v62 }
 0x100   : > { %v1939_v11 = vpop.f32.mrf.mxu0 }
 0x107   : > { %v853_v2 = vpop.f32.mrf.mxu1 }
 0x109   : > { %v1974_v4 = vpop.f32.mrf.mxu1 }
 0x10a   : > { %v749_v63 = vpop.f32.mrf.mxu0 }
 0x10b   : > { %v856_v1 = vpop.f32.mrf.mxu1  ;;  %v756_v15 = vadd.f32 %v749_v63, %v594_v57 }
 0x10c   : > { %v1962_v0 = vpop.f32.mrf.mxu0 }
 0x10d   : > { %v1975_v5 = vpop.f32.mrf.mxu1  ;;  %v860_v22 = vadd.f32 %v853_v2, %v756_v15 }
 0x10e   : > { %v752_v3 = vpop.f32.mrf.mxu0 }
 0x10f   : > { %v757_v23 = vadd.f32 %v752_v3, %v597_v18 }
 0x110   : > { %v1963_v16 = vpop.f32.mrf.mxu0 }
 0x111   : > { %v861_v29 = vadd.f32 %v856_v1, %v757_v23 }
 0x117   : > { %v1195_v43 = vpop.f32.mrf.mxu1 }
 0x119   : > { %v1998_v7 = vpop.f32.mrf.mxu1 }
 0x11a   : > { %v1044_v34 = vpop.f32.mrf.mxu0 }
 0x11b   : > { %v1198_v12 = vpop.f32.mrf.mxu1  ;;  %v1051_v26 = vadd.f32 %v1044_v34, %v860_v22 }
 0x11c   : > { %v1986_v6 = vpop.f32.mrf.mxu0 }
 0x11d   : > { %v1999_v14 = vpop.f32.mrf.mxu1  ;;  %v1202_v31 = vadd.f32 %v1195_v43, %v1051_v26 }
 0x11e   : > { %v1047_v53 = vpop.f32.mrf.mxu0 }
 0x11f   : > { %v1052_v32 = vadd.f32 %v1047_v53, %v861_v29 }
 0x120   : > { %v1987_v8 = vpop.f32.mrf.mxu0 }
 0x121   : > { %v1203_v35 = vadd.f32 %v1198_v12, %v1052_v32 }
 0x127   : > { %v1491_v20 = vpop.f32.mrf.mxu1 }
 0x129   : > { %v2022_v25 = vpop.f32.mrf.mxu1 }
 0x12a   : > { %v1300_v17 = vpop.f32.mrf.mxu0 }
 0x12b   : > { %v1494_v28 = vpop.f32.mrf.mxu1  ;;  %v1307_v33 = vadd.f32 %v1300_v17, %v1202_v31 }
 0x12c   : > { %v2010_v19 = vpop.f32.mrf.mxu0 }
 0x12d   : > { %v2023_v30 = vpop.f32.mrf.mxu1  ;;  %v1498_v40 = vadd.f32 %v1491_v20, %v1307_v33 }
 0x12e   : > { %v1303_v24 = vpop.f32.mrf.mxu0 }
 0x12f   : > { %v1308_v36 = vadd.f32 %v1303_v24, %v1203_v35 }
 0x130   : > { %v2011_v27 = vpop.f32.mrf.mxu0 }
 0x131   : > { %v1499_v41 = vadd.f32 %v1494_v28, %v1308_v36 }
 0x13a   : > { %v1642_v37 = vpop.f32.mrf.mxu0 }
 0x13b   : > { %v1649_v39 = vadd.f32 %v1642_v37, %v1498_v40 }
 0x13c   : > { %v2034_v21 = vpop.f32.mrf.mxu0 }
 0x13d   : > { %v1658_v42 = vadd.f32 %v1878_v38, %v1649_v39 }
 0x13e   : > { %v1645_v44 = vpop.f32.mrf.mxu0 }
 0x13f   : > { %vm1660_vm0 = vcmp.gt.f32.partialorder %v1658_v42, 0.0  ;;  %v1662_v45 = vmul.f32 0.2, %v1658_v42  ;;  %v1650_v46 = vadd.f32 %v1645_v44, %v1499_v41 }
 0x140   : > { %v2035_v47 = vpop.f32.mrf.mxu0 }
 0x141   : > { %v1664_v48 = vsel %vm1660_vm0, %v1658_v42, %v1662_v45  ;;  %v1659_v49 = vadd.f32 %v1878_v38, %v1650_v46 }
 0x142   : > { %v1668_v50 = vcombine.high %v1664_v48, %v1664_v48  ;;  %v1672_v51 = vpack.c.bf16 %v1664_v48, %v1664_v48 }
 0x143   : > { %vm1661_vm7 = vcmp.gt.f32.partialorder %v1659_v49, 0.0  ;;  %v1663_v9 = vmul.f32 0.2, %v1659_v49 }
 0x144   : > { %v1673_v10 = vpack.c.bf16 %v1668_v50, %v1668_v50  ;;  %1677 = vst.msk [vmem:[%s170_s21] sm:$0x3] %vm1676_vm4, %v1672_v51 }
 0x145   : > { %v1665_v52 = vsel %vm1661_vm7, %v1659_v49, %v1663_v9 }
 0x146   : > { %1678 = vst.msk [vmem:[%s170_s21 + $0x2] sm:$0x3] %vm1676_vm4, %v1673_v10  ;;  %v1669_v13 = vcombine.high %v1665_v52, %v1665_v52  ;;  %v1674_v54 = vpack.c.bf16 %v1665_v52, %v1665_v52 }
 0x148   : > { %v1675_v55 = vpack.c.bf16 %v1669_v13, %v1669_v13  ;;  %1679 = vst.msk [vmem:[%s170_s21 + $0x4] sm:$0x3] %vm1676_vm4, %v1674_v54 }
 0x14a   : > { %1680 = vst.msk [vmem:[%s170_s21 + $0x6] sm:$0x3] %vm1676_vm4, %v1675_v55 }
 0x14b PF: > { %s13_s12 = sadd.s32 1, %s2102_s12  }
 0x14c   : > { %p10_p4 = scmp.ge.s32.totalorder %s13_s12, 4  }
 0x14e   :  { %12 = sbr.rel (!%p10_p4) target bundleno = 1 (0x1), region = 67 }

// kernel: fc_discriminator.9
= control target key start
LH: loop header
LB: loop body
LE: loop exit
PB: predicated region body
PF: predicated region fallthrough
CT: control target
= control target key end

     0   :  { %s1373_s14 = smov 0   ;;  %s1597_s0 = inlined_call_operand.vmem [shape: bf16[2,3,3,256], index: 0, kind: input, shape index: {}]   ;;  %s1598_s1 = inlined_call_operand.vmem [shape: bf16[3,192,1], index: 1, kind: input, shape index: {}]   ;;  %s1599_s2 = inlined_call_operand.<no memory space> [shape: f32[1,1], index: 2, kind: input, shape index: {}]   ;;  %s1600_s3 = inlined_call_operand.vmem [shape: f32[2,2,2,1], index: 3, kind: output, shape index: {}]  }
   0x1   :  { %v8_v0 = vstv %s1599_s2 }
   0x2   :  { %9 = vst [vmem:[#allocation2] sm:$0x1] %v8_v0 }
   0x3 LB: > { %s1030_s15 = sadd.s32 4294967295, %s1344_s14   ;;  %p1034_p0 = scmp.ge.s32.totalorder %s1344_s14, 1  ;;  %s1344_s14 = sphi %s1373_s14, %s15_s14  }
   0x4   : > { %p139_p1 = scmp.lt.s32.totalorder %s1344_s14, 3 }
   0x6   : > { %p140_p2 = pnand %p1034_p0, %p139_p1 }
   0x7   : > { %p163_p3 = scmp.lt.s32.totalorder (!%p140_p2), %s1030_s15, 1 }
   0x8   : > { %143 = sbr.rel (%p140_p2) target bundleno = 301 (0x12d), region = 32 }
   0xd   : > { %v1296_v1 = vld [vmem:[%s1598_s1 + $0x58] sm:$0xff]   ;;  %v1346_v2 = vmov 0.0   ;;  %v1298_v4 = vld [vmem:[%s1598_s1 + $0x50] sm:$0xff]   ;;  %vm1347_vm0 = vmmov 0   ;;  %s1604_s15 = smov (!%p163_p3, %s1030_s15), 1  ;;  %v1300_v6 = vld [vmem:[%s1598_s1 + $0x48] sm:$0xff]   ;;  %v257_v11 = vlaneseq }
   0xe   : > { %1187 = vmatprep.subr.bf16.mxu0 %v1346_v2  ;;  %1199 = vmatprep.subr.bf16.mxu1 %v1346_v2  ;;  %v1297_v3 = vld [vmem:[%s1598_s1 + $0x38] sm:$0xff]   ;;  %v1299_v5 = vld [vmem:[%s1598_s1 + $0x30] sm:$0xff]   ;;  %s1283_s25 = smul.u32 12, %s1604_s15  ;;  %v1301_v7 = vld [vmem:[%s1598_s1 + $0x28] sm:$0xff]   ;;  %vm212_vm1 = vsmask.f32 256 }
   0xf   : > { %1188 = vmatpush3.bf16.msra.mxu0 %v1296_v1  ;;  %1195 = vmatprep.mubr.msk.bf16.mxu0 %vm1347_vm0, %v1346_v2  ;;  %v1302_v8 = vld [vmem:[%s1598_s1 + $0x40] sm:$0xff]   ;;  %vm213_vm2 = vsmask.f32 1284  ;;  %vm215_vm3 = vsmask.f32 2312  ;;  %v1427_v21 = vshrl.u32 %v257_v11, 7 }
  0x10   : > { %1200 = vmatpush3.bf16.msra.mxu1 %v1297_v3  ;;  %1189 = vmatprep.subr.bf16.mxu0 %v1346_v2  ;;  %s1418_s5 = scalar_lea.vmem %s1597_s0, %s1283_s25  ;;  %v1303_v9 = vld [vmem:[%s1598_s1 + $0x20] sm:$0xff]   ;;  %vm214_vm4 = vmor %vm212_vm1, %vm213_vm2  ;;  %vm217_vm5 = vsmask.f32 3340  ;;  %vm219_vm7 = vsmask.f32 4368  ;;  %v1304_v24 = vld [vmem:[%s1598_s1 + $0x18] sm:$0xff]  }
  0x11   : > { %1201 = vmatprep.subr.bf16.mxu1 %v1346_v2  ;;  %1215 = vmatprep.mubr.msk.bf16.mxu1 %vm1347_vm0, %v1346_v2  ;;  %v1038_v10 = vld.sshfl [vmem:[%s1418_s5] sm:$0x11 pattern:$0x75316420]  ;;  %vm216_vm6 = vmor %vm214_vm4, %vm215_vm3  ;;  %vm221_vm9 = vsmask.f32 5396 }
  0x12   : > { %v1039_v12 = vld.sshfl [vmem:[%s1418_s5 + $0x4] sm:$0x11 pattern:$0x75316420]  ;;  %v203_v13 = vcombine.high %v1038_v10, %v1038_v10  ;;  %vm218_vm8 = vmor %vm216_vm6, %vm217_vm5  ;;  %vm223_vm10 = vsmask.f32 6424 }
  0x13   : > { %1190 = vmatpush3.bf16.msra.mxu0 %v1298_v4  ;;  %v211_v14 = vcombine.high %v1039_v12, %v1039_v12  ;;  %vm225_vm11 = vsmask.f32 7452  ;;  %vm220_vm12 = vmor %vm218_vm8, %vm219_vm7  ;;  %v228_v15 = vshrl.u32 %v1038_v10, 16  ;;  %v237_v17 = vshrl.u32 %v1039_v12, 16  ;;  %v1306_v30 = vld [vmem:[%s1598_s1 + $0x10] sm:$0xff]   ;;  %v1305_v31 = vld [vmem:[%s1598_s1 + $0x98] sm:$0xff]  }
  0x14   : > { %1202 = vmatpush3.bf16.msra.mxu1 %v1299_v5  ;;  %1191 = vmatprep.subr.bf16.mxu0 %v1346_v2  ;;  %v233_v16 = vshll.u32 %v203_v13, 16  ;;  %vm222_vm13 = vmor %vm220_vm12, %vm221_vm9  ;;  %v1348_v19 = vmov 1966171168   ;;  %vm292_vm1 = vcmask 523264   ;;  %v1308_v34 = vld [vmem:[%s1598_s1 + $0x8] sm:$0xff]   ;;  %v1307_v35 = vld [vmem:[%s1598_s1 + $0x90] sm:$0xff]  }
  0x15   : > { %1203 = vmatprep.subr.bf16.mxu1 %v1346_v2  ;;  %v242_v18 = vshll.u32 %v211_v14, 16  ;;  %v255_v20 = vunpack.c.l.s4 %v1348_v19  ;;  %vm224_vm14 = vmor %vm222_vm13, %vm223_vm10  ;;  %v1335_v33 = vld.sshfl [vmem:[%s1418_s5] sm:$0x5 pattern:$0x75316420]  ;;  %v1309_v37 = vld [vmem:[%s1598_s1 + $0x88] sm:$0xff]  }
  0x16   : > { %vm1431_vm15 = vmor %vm224_vm14, %vm225_vm11  ;;  %v1310_v36 = vld [vmem:[%s1598_s1] sm:$0xff]   ;;  %v1314_v39 = vld [vmem:[%s1598_s1 + $0xb8] sm:$0xff]   ;;  %s1144_s13 = sshll.u32 %s1604_s15, 2 }
  0x17   : > { %1192 = vmatpush3.bf16.msra.mxu0 %v1300_v6  ;;  %v256_v23 = vunpack.c.0.s8 %v255_v20  ;;  %v235_v25 = vsel %vm1431_vm15, %v228_v15, %v233_v16  ;;  %v1443_v26 = vsel %vm1431_vm15, %v237_v17, %v242_v18  ;;  %v1311_v40 = vld [vmem:[%s1598_s1 + $0x80] sm:$0xff]   ;;  %v1316_v45 = vld [vmem:[%s1598_s1 + $0xb0] sm:$0xff]   ;;  %v1313_v48 = vld [vmem:[%s1598_s1 + $0x78] sm:$0xff]   ;;  %s172_s2 = scalar_lea.vmem %s1600_s3, %s1144_s13 }
  0x18   : > { %1204 = vmatpush3.bf16.msra.mxu1 %v1301_v7  ;;  %1193 = vmatprep.subr.bf16.mxu0 %v1346_v2  ;;  %v253_v27 = vcombine.low %v235_v25, %v1443_v26  ;;  %v1079_v41 = vld.sshfl [vmem:[%s1418_s5 + $0x2] sm:$0x11 pattern:$0x75316420]  ;;  %v1318_v52 = vld [vmem:[%s1598_s1 + $0xa8] sm:$0xff]   ;;  %v1315_v54 = vld [vmem:[%s1598_s1 + $0x70] sm:$0xff]  }
  0x19   : > { %1205 = vmatprep.subr.bf16.mxu1 %v1346_v2  ;;  %v1447_v28 = vsub.s32 %v256_v23, %v1427_v21  ;;  %v1080_v42 = vld.sshfl [vmem:[%s1418_s5 + $0x6] sm:$0x11 pattern:$0x75316420]  ;;  %v579_v43 = vcombine.high %v1079_v41, %v1079_v41  ;;  %v589_v44 = vshrl.u32 %v1079_v41, 16  ;;  %v1317_v56 = vld [vmem:[%s1598_s1 + $0x68] sm:$0xff]  }
  0x1a   : > { %v587_v46 = vcombine.high %v1080_v42, %v1080_v42  ;;  %v598_v47 = vshrl.u32 %v1080_v42, 16  ;;  %v1320_v57 = vld [vmem:[%s1598_s1 + $0xa0] sm:$0xff]   ;;  %v1125_v60 = vld.sshfl [vmem:[%s1418_s5 + $0x8] sm:$0x11 pattern:$0x75316420] }
  0x1b   : > { %1194 = vmatpush3.bf16.msra.mxu0 %v1302_v8  ;;  %v260_v29 = vrot.slane %v253_v27, %v1447_v28  ;;  %v352_v38 = vrot.slane %v1335_v33, %v1447_v28  ;;  %v594_v49 = vshll.u32 %v579_v43, 16  ;;  %v1336_v59 = vld.sshfl [vmem:[%s1418_s5 + $0x2] sm:$0x5 pattern:$0x75316420]  ;;  %v843_v61 = vcombine.high %v1125_v60, %v1125_v60  ;;  %v1326_v0 = vld [vmem:[%s1598_s1 + $0x118] sm:$0xff]  }
  0x1c   : > { %1206 = vmatpush3.bf16.msra.mxu1 %v1303_v9  ;;  %1219 = vmatprep.subr.bf16.mxu0 %v1346_v2  ;;  %v603_v50 = vshll.u32 %v587_v46, 16  ;;  %v1337_v63 = vld.sshfl [vmem:[%s1418_s5 + $0x4] sm:$0x5 pattern:$0x75316420]  ;;  %v854_v1 = vshrl.u32 %v1125_v60, 16  ;;  %v477_v6 = vrot.slane %v1336_v59, %v1447_v28 }
  0x1d   : > { %1207 = vmatprep.subr.bf16.mxu1 %v1346_v2  ;;  %v267_v32 = vrot.slane %v260_v29, %v1447_v28  ;;  %v596_v51 = vsel %vm1431_vm15, %v589_v44, %v594_v49  ;;  %v859_v3 = vshll.u32 %v843_v61, 16  ;;  %v1319_v4 = vld [vmem:[%s1598_s1 + $0x60] sm:$0xff]   ;;  %v733_v5 = vrot.slane %v1337_v63, %v1447_v28  ;;  %v1328_v7 = vld [vmem:[%s1598_s1 + $0x110] sm:$0xff]   ;;  %v1322_v9 = vld [vmem:[%s1598_s1 + $0xf8] sm:$0xff]  }
  0x1e   : > { %v605_v53 = vsel %vm1431_vm15, %v598_v47, %v603_v50  ;;  %v1330_v11 = vld [vmem:[%s1598_s1 + $0x108] sm:$0xff]   ;;  %v1323_v12 = vld [vmem:[%s1598_s1 + $0xf0] sm:$0xff]   ;;  %v1332_v14 = vld [vmem:[%s1598_s1 + $0x100] sm:$0xff]   ;;  %v1349_v44 = vmov 1983009808  }
  0x1f   : > { %1196 = vmatmul.mubr.msk.bf16.vlgmr.msra.gmra.mxu0 %vm292_vm1, %v267_v32  ;;  %v614_v55 = vcombine.low %v596_v51, %v605_v53  ;;  %v861_v8 = vsel %vm1431_vm15, %v854_v1, %v859_v3  ;;  %v1324_v15 = vld [vmem:[%s1598_s1 + $0xe8] sm:$0xff]   ;;  %v1325_v17 = vld [vmem:[%s1598_s1 + $0xe0] sm:$0xff]   ;;  %v1327_v18 = vld [vmem:[%s1598_s1 + $0xd8] sm:$0xff]  }
  0x20   : > { %1208 = vmatpush3.bf16.msra.mxu1 %v1304_v24  ;;  %1220 = vmatpush3.bf16.msra.mxu0 %v1305_v31  ;;  %v870_v10 = vcombine.low %v1443_v26, %v861_v8  ;;  %v1329_v19 = vld [vmem:[%s1598_s1 + $0xd0] sm:$0xff]   ;;  %v1331_v20 = vld [vmem:[%s1598_s1 + $0xc8] sm:$0xff]   ;;  %v1333_v22 = vld [vmem:[%s1598_s1 + $0xc0] sm:$0xff]  }
  0x21   : > { %1209 = vmatprep.subr.bf16.mxu1 %v1346_v2  ;;  %1221 = vmatprep.subr.bf16.mxu0 %v1346_v2  ;;  %v621_v58 = vrot.slane %v614_v55, %v1447_v28  ;;  %v1141_v50 = vld [vmem:[#allocation2] ss:$0 sm:$0xff] }
  0x22   : > { %1235 = vmatprep.mubr.msk.bf16.mxu0 %vm1347_vm0, %v1346_v2  ;;  %v877_v13 = vrot.slane %v870_v10, %v1447_v28 }
  0x23   : > { %v628_v62 = vrot.slane %v621_v58, %v1447_v28 }
  0x24   : > { %1210 = vmatpush3.bf16.msra.mxu1 %v1306_v30  ;;  %1222 = vmatpush3.bf16.msra.mxu0 %v1307_v35  ;;  %v884_v16 = vrot.slane %v877_v13, %v1447_v28 }
  0x25   : > { %1211 = vmatprep.subr.bf16.mxu1 %v1346_v2  ;;  %1223 = vmatprep.subr.bf16.mxu0 %v1346_v2 }
  0x28   : > { %1212 = vmatpush3.bf16.msra.mxu1 %v1308_v34  ;;  %1224 = vmatpush3.bf16.msra.mxu0 %v1309_v37 }
  0x29   : > { %1213 = vmatprep.subr.bf16.mxu1 %v1346_v2  ;;  %1225 = vmatprep.subr.bf16.mxu0 %v1346_v2 }
  0x2c   : > { %1214 = vmatpush3.bf16.msra.mxu1 %v1310_v36  ;;  %1226 = vmatpush3.bf16.msra.mxu0 %v1311_v40 }
  0x2d   : > { %1239 = vmatprep.subr.bf16.mxu1 %v1346_v2  ;;  %1227 = vmatprep.subr.bf16.mxu0 %v1346_v2 }
  0x2f   : > { %1216 = vmatmul.mubr.bf16.vlgmr.msra.gmra.mxu1 %v352_v38 }
  0x30   : > { %1240 = vmatpush3.bf16.msra.mxu1 %v1314_v39  ;;  %1247 = vmatprep.mubr.msk.bf16.mxu1 %vm1347_vm0, %v1346_v2 }
  0x31   : > { %1241 = vmatprep.subr.bf16.mxu1 %v1346_v2  ;;  %1228 = vmatpush3.bf16.msra.mxu0 %v1313_v48 }
  0x32   : > { %1229 = vmatprep.subr.bf16.mxu0 %v1346_v2 }
  0x34   : > { %1242 = vmatpush3.bf16.msra.mxu1 %v1316_v45  ;;  %v963_v45 = vunpack.c.l.s4 %v1349_v44 }
  0x35   : > { %1243 = vmatprep.subr.bf16.mxu1 %v1346_v2  ;;  %1230 = vmatpush3.bf16.msra.mxu0 %v1315_v54 }
  0x36   : > { %1231 = vmatprep.subr.bf16.mxu0 %v1346_v2  ;;  %v964_v47 = vunpack.c.0.s8 %v963_v45 }
  0x38   : > { %1244 = vmatpush3.bf16.msra.mxu1 %v1318_v52  ;;  %v967_v53 = vsub.s32 %v964_v47, %v1427_v21 }
  0x39   : > { %1245 = vmatprep.subr.bf16.mxu1 %v1346_v2  ;;  %1232 = vmatpush3.bf16.msra.mxu0 %v1317_v56 }
  0x3a   : > { %1233 = vmatprep.subr.bf16.mxu0 %v1346_v2 }
  0x3c   : > { %1246 = vmatpush3.bf16.msra.mxu1 %v1320_v57 }
  0x3d   : > { %1271 = vmatprep.subr.bf16.mxu1 %v1346_v2  ;;  %1234 = vmatpush3.bf16.msra.mxu0 %v1319_v4 }
  0x3e   : > { %1251 = vmatprep.subr.bf16.mxu0 %v1346_v2 }
  0x3f   : > { %1248 = vmatmul.mubr.msk.bf16.vlgmr.msra.gmra.mxu1 %vm292_vm1, %v628_v62 }
  0x40   : > { %1272 = vmatpush3.bf16.msra.mxu1 %v1326_v0  ;;  %1279 = vmatprep.mubr.msk.bf16.mxu1 %vm1347_vm0, %v1346_v2 }
  0x41   : > { %1273 = vmatprep.subr.bf16.mxu1 %v1346_v2  ;;  %1236 = vmatmul.mubr.bf16.vlgmr.msra.gmra.mxu0 %v477_v6 }
  0x42   : > { %1252 = vmatpush3.bf16.msra.mxu0 %v1322_v9  ;;  %1267 = vmatprep.mubr.msk.bf16.mxu0 %vm1347_vm0, %v1346_v2  ;;  %vm972_vm0 = vcmask 1024  }
  0x43   : > { %1253 = vmatprep.subr.bf16.mxu0 %v1346_v2 }
  0x44   : > { %1274 = vmatpush3.bf16.msra.mxu1 %v1328_v7 }
  0x45   : > { %1275 = vmatprep.subr.bf16.mxu1 %v1346_v2 }
  0x46   : > { %1254 = vmatpush3.bf16.msra.mxu0 %v1323_v12 }
  0x47   : > { %1255 = vmatprep.subr.bf16.mxu0 %v1346_v2 }
  0x48   : > { %1276 = vmatpush3.bf16.msra.mxu1 %v1330_v11 }
  0x49   : > { %1277 = vmatprep.subr.bf16.mxu1 %v1346_v2 }
  0x4a   : > { %1256 = vmatpush3.bf16.msra.mxu0 %v1324_v15 }
  0x4b   : > { %1257 = vmatprep.subr.bf16.mxu0 %v1346_v2 }
  0x4c   : > { %1278 = vmatpush3.bf16.msra.mxu1 %v1332_v14 }
  0x4e   : > { %1258 = vmatpush3.bf16.msra.mxu0 %v1325_v17 }
  0x4f   : > { %1280 = vmatmul.mubr.msk.bf16.vlgmr.msra.gmra.mxu1 %vm292_vm1, %v884_v16  ;;  %1259 = vmatprep.subr.bf16.mxu0 %v1346_v2 }
  0x52   : > { %1260 = vmatpush3.bf16.msra.mxu0 %v1327_v18 }
  0x53   : > { %1261 = vmatprep.subr.bf16.mxu0 %v1346_v2 }
  0x56   : > { %1262 = vmatpush3.bf16.msra.mxu0 %v1329_v19 }
  0x57   : > { %1263 = vmatprep.subr.bf16.mxu0 %v1346_v2 }
  0x5a   : > { %1264 = vmatpush3.bf16.msra.mxu0 %v1331_v20 }
  0x5b   : > { %1265 = vmatprep.subr.bf16.mxu0 %v1346_v2 }
  0x5e   : > { %1266 = vmatpush3.bf16.msra.mxu0 %v1333_v22 }
  0x61   : > { %1268 = vmatmul.mubr.bf16.vlgmr.msra.gmra.mxu0 %v733_v5 }
  0xdf   : > { %v330_v23 = vpop.f32.mrf.mxu0 }
  0xe1   : > { %v1197_v24 = vpop.f32.mrf.mxu0 }
  0xe3   : > { %v333_v25 = vpop.f32.mrf.mxu0 }
  0xe5   : > { %v1198_v26 = vpop.f32.mrf.mxu0 }
  0xef   : > { %v436_v27 = vpop.f32.mrf.mxu1 }
  0xf0   : > { %v437_v42 = vadd.f32 %v436_v27, %v330_v23 }
  0xf1   : > { %v1217_v28 = vpop.f32.mrf.mxu1 }
  0xf3   : > { %v439_v29 = vpop.f32.mrf.mxu1 }
  0xf5   : > { %v1218_v30 = vpop.f32.mrf.mxu1 }
  0xff   : > { %v690_v31 = vpop.f32.mrf.mxu1 }
 0x101   : > { %v1249_v32 = vpop.f32.mrf.mxu1  ;;  %v561_v34 = vpop.f32.mrf.mxu0 }
 0x102   : > { %v567_v43 = vadd.f32 %v561_v34, %v437_v42 }
 0x103   : > { %v693_v33 = vpop.f32.mrf.mxu1  ;;  %v1237_v36 = vpop.f32.mrf.mxu0 }
 0x104   : > { %v696_v46 = vadd.f32 %v690_v31, %v567_v43 }
 0x105   : > { %v1250_v35 = vpop.f32.mrf.mxu1  ;;  %v564_v37 = vpop.f32.mrf.mxu0 }
 0x107   : > { %v1238_v38 = vpop.f32.mrf.mxu0 }
 0x10f   : > { %v946_v2 = vpop.f32.mrf.mxu1 }
 0x111   : > { %v1281_v39 = vpop.f32.mrf.mxu1 }
 0x113   : > { %v949_v40 = vpop.f32.mrf.mxu1 }
 0x115   : > { %v1282_v41 = vpop.f32.mrf.mxu1 }
 0x121   : > { %v817_v48 = vpop.f32.mrf.mxu0 }
 0x122   : > { %v823_v49 = vadd.f32 %v817_v48, %v696_v46 }
 0x123   : > { %v1269_v51 = vpop.f32.mrf.mxu0 }
 0x124   : > { %v952_v52 = vadd.f32 %v946_v2, %v823_v49 }
 0x125   : > { %v820_v54 = vpop.f32.mrf.mxu0 }
 0x126   : > { %v960_v55 = vadd.f32 %v1141_v50, %v952_v52 }
 0x127   : > { %v1270_v56 = vpop.f32.mrf.mxu0 }
 0x128   : > { %v968_v57 = vrot.slane %v960_v55, %v967_v53 }
 0x12a   : > { %v969_v58 = vcombine.high %v968_v57, %v968_v57  ;;  %973 = vst.msk [vmem:[%s172_s2] sm:$0x3] %vm972_vm0, %v968_v57 }
 0x12c   : > { %974 = vst.msk [vmem:[%s172_s2 + $0x2] sm:$0x3] %vm972_vm0, %v969_v58 }
 0x12d PF: > { %s15_s14 = sadd.s32 1, %s1344_s14  }
 0x12e   : > { %p12_p4 = scmp.ge.s32.totalorder %s15_s14, 4  }
 0x130   :  { %14 = sbr.rel (!%p12_p4) target bundleno = 3 (0x3), region = 65 }

</bundles_post_ra>
